<compile_context>
chip_gen: v5e
topology: v5e:2x2
jax: 0.10.0
libtpu: 0.0.40
codegen_flags: <defaults>
</compile_context>

<pallas_src>
import functools

import jax
import jax.numpy as jnp
from jax.experimental import pallas as pl
from jax.experimental.pallas import tpu as pltpu

INPUT_DIM = 28 * 28   # 784
HIDDEN_DIM = 400
LATENT_DIM = 2


def _vae_kernel(x_ref, eps_ref,
                w1_ref, b1_ref, w2_ref, b2_ref, w3_ref, b3_ref,
                w4_ref, b4_ref, w5_ref, b5_ref, w6_ref, b6_ref,
                recon_ref, mulogvar_ref):
    """Fused encoder -> reparameterize -> decoder for one batch tile."""
    # ---- encoder (bf16 MXU matmuls, f32 accumulation) ----
    x = x_ref[...].astype(jnp.bfloat16)                            # (TB, 784)
    h = jnp.dot(x, w1_ref[...],
                preferred_element_type=jnp.float32) + b1_ref[...]
    h = jnp.maximum(h, 0.0)                                        # (TB, 400)
    h = jnp.dot(h.astype(jnp.bfloat16), w2_ref[...],
                preferred_element_type=jnp.float32) + b2_ref[...]
    h = jnp.maximum(h, 0.0)                                        # (TB, 400)
    mulogvar = jnp.dot(h.astype(jnp.bfloat16), w3_ref[...],
                       preferred_element_type=jnp.float32) + b3_ref[...]

    mu = mulogvar[:, :LATENT_DIM]                                  # (TB, 2)
    logvar = mulogvar[:, LATENT_DIM:]                              # (TB, 2)

    # ---- reparameterize: z = mu + eps * exp(0.5 * logvar)  (exp -> EUP) ----
    std = jnp.exp(0.5 * logvar)
    z = mu + eps_ref[...] * std                                    # (TB, 2)

    # ---- decoder ----
    # First decoder layer has contraction dim == LATENT_DIM == 2: do it as
    # VPU broadcast-FMAs instead of a degenerate MXU matmul.
    w4 = w4_ref[...]                                               # (2, 400) f32
    d = b4_ref[...]
    for j in range(LATENT_DIM):                                    # unrolled (2)
        d = d + z[:, j:j + 1] * w4[j:j + 1, :]
    d = jnp.maximum(d, 0.0)                                        # (TB, 400)

    d = jnp.dot(d.astype(jnp.bfloat16), w5_ref[...],
                preferred_element_type=jnp.float32) + b5_ref[...]
    d = jnp.maximum(d, 0.0)                                        # (TB, 400)
    logits = jnp.dot(d.astype(jnp.bfloat16), w6_ref[...],
                     preferred_element_type=jnp.float32) + b6_ref[...]

    # recon stored in recon_ref's dtype (bf16 by default -> half the HBM write)
    recon_ref[...] = jax.nn.sigmoid(logits).astype(recon_ref.dtype)
    mulogvar_ref[...] = mulogvar                                   # (TB, 4) f32


def _round_up(v, m):
    return ((v + m - 1) // m) * m


def prepare_params(*params):
    """One-time conversion of parameters into kernel-ready form.

    Expects weights already transposed to (in_features, out_features) and
    biases of shape (out_features,) or (1, out_features).  (Raw PyTorch
    nn.Linear stores (out, in) / (out,) — transpose weights before calling.)
    MXU-bound weights are cached in bf16 here so the per-call jitted path
    never re-converts them; w4 (K=2, VPU path) and all biases stay f32.
    """
    w1, b1, w2, b2, w3, b3, w4, b4, w5, b5, w6, b6 = params
    bf16, f32 = jnp.bfloat16, jnp.float32

    def bias(v):
        return jnp.asarray(v, f32).reshape(1, -1)

    return (jnp.asarray(w1, bf16), bias(b1),
            jnp.asarray(w2, bf16), bias(b2),
            jnp.asarray(w3, bf16), bias(b3),
            jnp.asarray(w4, f32),  bias(b4),
            jnp.asarray(w5, bf16), bias(b5),
            jnp.asarray(w6, bf16), bias(b6))


@functools.partial(jax.jit, static_argnames=("tile_batch", "recon_dtype"))
def _vae_forward_jit(x, eps, prepared, tile_batch, recon_dtype):
    xf = x.reshape(-1, INPUT_DIM).astype(jnp.float32)
    B = xf.shape[0]

    # --- batch tile (TB) and grid -----------------------------------------
    # No forced multi-step split: grid steps are a serial loop on single-TC
    # chips, so small batches run as one step; large batches naturally get
    # multiple "parallel" steps (sharded across cores on v7x).
    Bp = _round_up(B, 8)
    TB = min(tile_batch, Bp)
    Bp = _round_up(Bp, TB)

    pad = Bp - B
    if pad:
        xf = jnp.pad(xf, ((0, pad), (0, 0)))
        epsf = jnp.pad(eps.astype(jnp.float32), ((0, pad), (0, 0)))
    else:
        epsf = eps.astype(jnp.float32)

    grid = (Bp // TB,)

    def batch_spec(cols):
        return pl.BlockSpec((TB, cols), lambda i: (i, 0))

    def resident_spec(shape):
        # Constant index_map: same block reused every grid step -> a single
        # buffer suffices (halves the weights' VMEM footprint, one DMA total).
        return pl.BlockSpec(shape, lambda i: (0, 0),
                            pipeline_mode=pl.Buffered(1))

    in_specs = [batch_spec(INPUT_DIM), batch_spec(LATENT_DIM)]
    in_specs += [resident_spec(p.shape) for p in prepared]

    out_specs = (batch_spec(INPUT_DIM), batch_spec(2 * LATENT_DIM))
    out_shape = (jax.ShapeDtypeStruct((Bp, INPUT_DIM), recon_dtype),
                 jax.ShapeDtypeStruct((Bp, 2 * LATENT_DIM), jnp.float32))

    recon, mulogvar = pl.pallas_call(
        _vae_kernel,
        grid=grid,
        in_specs=in_specs,
        out_specs=out_specs,
        out_shape=out_shape,
        compiler_params=pltpu.CompilerParams(
            dimension_semantics=("parallel",),
            vmem_limit_bytes=32 * 1024 * 1024),
    )(xf, epsf, *prepared)

    recon = recon[:B].reshape(B, 1, 28, 28)
    mu = mulogvar[:B, :LATENT_DIM]
    logvar = mulogvar[:B, LATENT_DIM:]
    return recon, mu, logvar


def vae_mlp_forward(x, eps, prepared_params, *,
                    tile_batch=512, recon_dtype=jnp.bfloat16):
    """x: (B, 1, 28, 28); eps: (B, latent_dim) reparameterization noise.

    prepared_params: output of prepare_params() (bf16 weights cached once).
    tile_batch: rows per grid step (512 good for v6e/v7x; use 128-256 on v5e).
    recon_dtype: dtype of the reconstruction output (bf16 halves HBM writes;
    pass jnp.float32 if exact f32 outputs are required).
    """
    return _vae_forward_jit(x, eps, tuple(prepared_params),
                            tile_batch, recon_dtype)


def init_params(key):
    """Deterministic parameter init (shapes match the PyTorch module),
    already in (in_features, out_features) / (out_features,) layout."""
    dims = [
        (INPUT_DIM, HIDDEN_DIM),        # encoder.0
        (HIDDEN_DIM, HIDDEN_DIM),       # encoder.2
        (HIDDEN_DIM, 2 * LATENT_DIM),   # encoder.4
        (LATENT_DIM, HIDDEN_DIM),       # decoder.0
        (HIDDEN_DIM, HIDDEN_DIM),       # decoder.2
        (HIDDEN_DIM, INPUT_DIM),        # decoder.4
    ]
    params = []
    for i, (fan_in, fan_out) in enumerate(dims):
        kw, kb = jax.random.split(jax.random.fold_in(key, i))
        bound = 1.0 / jnp.sqrt(fan_in)
        w = jax.random.uniform(kw, (fan_in, fan_out), jnp.float32, -bound, bound)
        b = jax.random.uniform(kb, (fan_out,), jnp.float32, -bound, bound)
        params.extend([w, b])
    return params


def _reference_forward(x, eps, params):
    """Pure-JAX (f32) reference of the PyTorch forward pass."""
    w1, b1, w2, b2, w3, b3, w4, b4, w5, b5, w6, b6 = params
    xf = x.reshape(-1, INPUT_DIM)
    h = jax.nn.relu(xf @ w1 + b1)
    h = jax.nn.relu(h @ w2 + b2)
    h = h @ w3 + b3
    mu, logvar = h[:, :LATENT_DIM], h[:, LATENT_DIM:]
    z = mu + eps * jnp.exp(0.5 * logvar)
    d = jax.nn.relu(z @ w4 + b4)
    d = jax.nn.relu(d @ w5 + b5)
    recon = jax.nn.sigmoid(d @ w6 + b6)
    return recon.reshape(-1, 1, 28, 28), mu, logvar


if __name__ == "__main__":
    key = jax.random.PRNGKey(0)
    k_param, k_x, k_eps = jax.random.split(key, 3)

    B = 4
    x = jax.random.uniform(k_x, (B, 1, 28, 28), jnp.float32)       # NCHW input
    # torch.randn_like noise is passed explicitly so the kernel is deterministic.
    eps = jax.random.normal(k_eps, (B, LATENT_DIM), jnp.float32)
    params = init_params(k_param)
    prepared = prepare_params(*params)          # one-time bf16 weight cache

    recon, mu, logvar = vae_mlp_forward(x, eps, prepared)
    jax.block_until_ready((recon, mu, logvar))

    assert recon.shape == (B, 1, 28, 28)
    assert mu.shape == (B, LATENT_DIM) and logvar.shape == (B, LATENT_DIM)
    recon_f32 = recon.astype(jnp.float32)
    assert bool(jnp.all((recon_f32 >= 0.0) & (recon_f32 <= 1.0)))

    # Validate against the f32 reference with a relaxed tolerance
    # (bf16 MXU inputs with f32 accumulation; bf16 recon output).
    r_ref, mu_ref, lv_ref = _reference_forward(x, eps, params)
    assert bool(jnp.allclose(recon_f32, r_ref, atol=5e-2, rtol=5e-2))
    assert bool(jnp.allclose(mu, mu_ref, atol=5e-2, rtol=5e-2))
    assert bool(jnp.allclose(logvar, lv_ref, atol=5e-2, rtol=5e-2))

    print("KERNEL_OK")
</pallas_src>

<mosaic_0001>
module attributes {stable_mosaic.version = 11 : i64} {
  func.func @_vae_kernel(%arg0: i32, %arg1: memref<8x784xf32, #tpu.memory_space<vmem>>, %arg2: memref<8x2xf32, #tpu.memory_space<vmem>>, %arg3: memref<784x400xbf16, #tpu.memory_space<vmem>>, %arg4: memref<1x400xf32, #tpu.memory_space<vmem>>, %arg5: memref<400x400xbf16, #tpu.memory_space<vmem>>, %arg6: memref<1x400xf32, #tpu.memory_space<vmem>>, %arg7: memref<400x4xbf16, #tpu.memory_space<vmem>>, %arg8: memref<1x4xf32, #tpu.memory_space<vmem>>, %arg9: memref<2x400xf32, #tpu.memory_space<vmem>>, %arg10: memref<1x400xf32, #tpu.memory_space<vmem>>, %arg11: memref<400x400xbf16, #tpu.memory_space<vmem>>, %arg12: memref<1x400xf32, #tpu.memory_space<vmem>>, %arg13: memref<400x784xbf16, #tpu.memory_space<vmem>>, %arg14: memref<1x784xf32, #tpu.memory_space<vmem>>, %arg15: memref<8x784xbf16, #tpu.memory_space<vmem>>, %arg16: memref<8x4xf32, #tpu.memory_space<vmem>>) attributes {dimension_semantics = [#tpu.dimension_semantics<parallel>], iteration_bounds = array<i64: 1>, scalar_prefetch = 0 : i64, scratch_operands = 0 : i64, tpu.core_type = #tpu.core_type<tc>, window_params = [{transform_indices = @transform_0, window_bounds = array<i64: 8, 784>}, {transform_indices = @transform_1, window_bounds = array<i64: 8, 2>}, {pipeline_mode = #tpu.pipeline_mode<synchronous>, transform_indices = @transform_2, window_bounds = array<i64: 784, 400>}, {pipeline_mode = #tpu.pipeline_mode<synchronous>, transform_indices = @transform_3, window_bounds = array<i64: 1, 400>}, {pipeline_mode = #tpu.pipeline_mode<synchronous>, transform_indices = @transform_4, window_bounds = array<i64: 400, 400>}, {pipeline_mode = #tpu.pipeline_mode<synchronous>, transform_indices = @transform_5, window_bounds = array<i64: 1, 400>}, {pipeline_mode = #tpu.pipeline_mode<synchronous>, transform_indices = @transform_6, window_bounds = array<i64: 400, 4>}, {pipeline_mode = #tpu.pipeline_mode<synchronous>, transform_indices = @transform_7, window_bounds = array<i64: 1, 4>}, {pipeline_mode = #tpu.pipeline_mode<synchronous>, transform_indices = @transform_8, window_bounds = array<i64: 2, 400>}, {pipeline_mode = #tpu.pipeline_mode<synchronous>, transform_indices = @transform_9, window_bounds = array<i64: 1, 400>}, {pipeline_mode = #tpu.pipeline_mode<synchronous>, transform_indices = @transform_10, window_bounds = array<i64: 400, 400>}, {pipeline_mode = #tpu.pipeline_mode<synchronous>, transform_indices = @transform_11, window_bounds = array<i64: 1, 400>}, {pipeline_mode = #tpu.pipeline_mode<synchronous>, transform_indices = @transform_12, window_bounds = array<i64: 400, 784>}, {pipeline_mode = #tpu.pipeline_mode<synchronous>, transform_indices = @transform_13, window_bounds = array<i64: 1, 784>}, {transform_indices = @transform_14, window_bounds = array<i64: 8, 784>}, {transform_indices = @transform_15, window_bounds = array<i64: 8, 4>}]} {
    %c0 = arith.constant 0 : index
    %c0_0 = arith.constant 0 : index
    %0 = vector.load %arg1[%c0, %c0_0] : memref<8x784xf32, #tpu.memory_space<vmem>>, vector<8x784xf32>
    %1 = arith.truncf %0 : vector<8x784xf32> to vector<8x784xbf16>
    %c0_1 = arith.constant 0 : index
    %c0_2 = arith.constant 0 : index
    %2 = vector.load %arg3[%c0_1, %c0_2] : memref<784x400xbf16, #tpu.memory_space<vmem>>, vector<784x400xbf16>
    %cst = arith.constant dense<0.000000e+00> : vector<8x400xf32>
    %3 = tpu.matmul %1, %2, %cst {dimension_numbers = #tpu.dot_dimension_numbers<[1], [0], [0], [1], [0, 0, 1, 1], [], []>} : vector<8x784xbf16>, vector<784x400xbf16>, vector<8x400xf32> -> vector<8x400xf32>
    %c0_3 = arith.constant 0 : index
    %c0_4 = arith.constant 0 : index
    %4 = vector.load %arg4[%c0_3, %c0_4] : memref<1x400xf32, #tpu.memory_space<vmem>>, vector<1x400xf32>
    %5 = vector.broadcast %4 : vector<1x400xf32> to vector<8x400xf32>
    %6 = arith.addf %3, %5 : vector<8x400xf32>
    %cst_5 = arith.constant 0.000000e+00 : f32
    %7 = vector.broadcast %cst_5 : f32 to vector<8x400xf32>
    %8 = arith.maximumf %6, %7 : vector<8x400xf32>
    %9 = arith.truncf %8 : vector<8x400xf32> to vector<8x400xbf16>
    %c0_6 = arith.constant 0 : index
    %c0_7 = arith.constant 0 : index
    %10 = vector.load %arg5[%c0_6, %c0_7] : memref<400x400xbf16, #tpu.memory_space<vmem>>, vector<400x400xbf16>
    %cst_8 = arith.constant dense<0.000000e+00> : vector<8x400xf32>
    %11 = tpu.matmul %9, %10, %cst_8 {dimension_numbers = #tpu.dot_dimension_numbers<[1], [0], [0], [1], [0, 0, 1, 1], [], []>} : vector<8x400xbf16>, vector<400x400xbf16>, vector<8x400xf32> -> vector<8x400xf32>
    %c0_9 = arith.constant 0 : index
    %c0_10 = arith.constant 0 : index
    %12 = vector.load %arg6[%c0_9, %c0_10] : memref<1x400xf32, #tpu.memory_space<vmem>>, vector<1x400xf32>
    %13 = vector.broadcast %12 : vector<1x400xf32> to vector<8x400xf32>
    %14 = arith.addf %11, %13 : vector<8x400xf32>
    %cst_11 = arith.constant 0.000000e+00 : f32
    %15 = vector.broadcast %cst_11 : f32 to vector<8x400xf32>
    %16 = arith.maximumf %14, %15 : vector<8x400xf32>
    %17 = arith.truncf %16 : vector<8x400xf32> to vector<8x400xbf16>
    %c0_12 = arith.constant 0 : index
    %c0_13 = arith.constant 0 : index
    %18 = vector.load %arg7[%c0_12, %c0_13] : memref<400x4xbf16, #tpu.memory_space<vmem>>, vector<400x4xbf16>
    %cst_14 = arith.constant dense<0.000000e+00> : vector<8x4xf32>
    %19 = tpu.matmul %17, %18, %cst_14 {dimension_numbers = #tpu.dot_dimension_numbers<[1], [0], [0], [1], [0, 0, 1, 1], [], []>} : vector<8x400xbf16>, vector<400x4xbf16>, vector<8x4xf32> -> vector<8x4xf32>
    %c0_15 = arith.constant 0 : index
    %c0_16 = arith.constant 0 : index
    %20 = vector.load %arg8[%c0_15, %c0_16] : memref<1x4xf32, #tpu.memory_space<vmem>>, vector<1x4xf32>
    %21 = vector.broadcast %20 : vector<1x4xf32> to vector<8x4xf32>
    %22 = arith.addf %19, %21 : vector<8x4xf32>
    %23 = vector.extract_strided_slice %22 {offsets = [0, 0], sizes = [8, 2], strides = [1, 1]} : vector<8x4xf32> to vector<8x2xf32>
    %24 = vector.extract_strided_slice %22 {offsets = [0, 2], sizes = [8, 2], strides = [1, 1]} : vector<8x4xf32> to vector<8x2xf32>
    %cst_17 = arith.constant 5.000000e-01 : f32
    %25 = vector.broadcast %cst_17 : f32 to vector<8x2xf32>
    %26 = arith.mulf %25, %24 : vector<8x2xf32>
    %27 = math.exp %26 : vector<8x2xf32>
    %c0_18 = arith.constant 0 : index
    %c0_19 = arith.constant 0 : index
    %28 = vector.load %arg2[%c0_18, %c0_19] : memref<8x2xf32, #tpu.memory_space<vmem>>, vector<8x2xf32>
    %29 = arith.mulf %28, %27 : vector<8x2xf32>
    %30 = arith.addf %23, %29 : vector<8x2xf32>
    %c0_20 = arith.constant 0 : index
    %c0_21 = arith.constant 0 : index
    %31 = vector.load %arg9[%c0_20, %c0_21] : memref<2x400xf32, #tpu.memory_space<vmem>>, vector<2x400xf32>
    %c0_22 = arith.constant 0 : index
    %c0_23 = arith.constant 0 : index
    %32 = vector.load %arg10[%c0_22, %c0_23] : memref<1x400xf32, #tpu.memory_space<vmem>>, vector<1x400xf32>
    %33 = vector.extract_strided_slice %30 {offsets = [0, 0], sizes = [8, 1], strides = [1, 1]} : vector<8x2xf32> to vector<8x1xf32>
    %34 = vector.extract_strided_slice %31 {offsets = [0, 0], sizes = [1, 400], strides = [1, 1]} : vector<2x400xf32> to vector<1x400xf32>
    %35 = vector.broadcast %33 : vector<8x1xf32> to vector<8x400xf32>
    %36 = vector.broadcast %34 : vector<1x400xf32> to vector<8x400xf32>
    %37 = arith.mulf %35, %36 : vector<8x400xf32>
    %38 = vector.broadcast %32 : vector<1x400xf32> to vector<8x400xf32>
    %39 = arith.addf %38, %37 : vector<8x400xf32>
    %40 = vector.extract_strided_slice %30 {offsets = [0, 1], sizes = [8, 1], strides = [1, 1]} : vector<8x2xf32> to vector<8x1xf32>
    %41 = vector.extract_strided_slice %31 {offsets = [1, 0], sizes = [1, 400], strides = [1, 1]} : vector<2x400xf32> to vector<1x400xf32>
    %42 = vector.broadcast %40 : vector<8x1xf32> to vector<8x400xf32>
    %43 = vector.broadcast %41 : vector<1x400xf32> to vector<8x400xf32>
    %44 = arith.mulf %42, %43 : vector<8x400xf32>
    %45 = arith.addf %39, %44 : vector<8x400xf32>
    %cst_24 = arith.constant 0.000000e+00 : f32
    %46 = vector.broadcast %cst_24 : f32 to vector<8x400xf32>
    %47 = arith.maximumf %45, %46 : vector<8x400xf32>
    %48 = arith.truncf %47 : vector<8x400xf32> to vector<8x400xbf16>
    %c0_25 = arith.constant 0 : index
    %c0_26 = arith.constant 0 : index
    %49 = vector.load %arg11[%c0_25, %c0_26] : memref<400x400xbf16, #tpu.memory_space<vmem>>, vector<400x400xbf16>
    %cst_27 = arith.constant dense<0.000000e+00> : vector<8x400xf32>
    %50 = tpu.matmul %48, %49, %cst_27 {dimension_numbers = #tpu.dot_dimension_numbers<[1], [0], [0], [1], [0, 0, 1, 1], [], []>} : vector<8x400xbf16>, vector<400x400xbf16>, vector<8x400xf32> -> vector<8x400xf32>
    %c0_28 = arith.constant 0 : index
    %c0_29 = arith.constant 0 : index
    %51 = vector.load %arg12[%c0_28, %c0_29] : memref<1x400xf32, #tpu.memory_space<vmem>>, vector<1x400xf32>
    %52 = vector.broadcast %51 : vector<1x400xf32> to vector<8x400xf32>
    %53 = arith.addf %50, %52 : vector<8x400xf32>
    %cst_30 = arith.constant 0.000000e+00 : f32
    %54 = vector.broadcast %cst_30 : f32 to vector<8x400xf32>
    %55 = arith.maximumf %53, %54 : vector<8x400xf32>
    %56 = arith.truncf %55 : vector<8x400xf32> to vector<8x400xbf16>
    %c0_31 = arith.constant 0 : index
    %c0_32 = arith.constant 0 : index
    %57 = vector.load %arg13[%c0_31, %c0_32] : memref<400x784xbf16, #tpu.memory_space<vmem>>, vector<400x784xbf16>
    %cst_33 = arith.constant dense<0.000000e+00> : vector<8x784xf32>
    %58 = tpu.matmul %56, %57, %cst_33 {dimension_numbers = #tpu.dot_dimension_numbers<[1], [0], [0], [1], [0, 0, 1, 1], [], []>} : vector<8x400xbf16>, vector<400x784xbf16>, vector<8x784xf32> -> vector<8x784xf32>
    %c0_34 = arith.constant 0 : index
    %c0_35 = arith.constant 0 : index
    %59 = vector.load %arg14[%c0_34, %c0_35] : memref<1x784xf32, #tpu.memory_space<vmem>>, vector<1x784xf32>
    %60 = vector.broadcast %59 : vector<1x784xf32> to vector<8x784xf32>
    %61 = arith.addf %58, %60 : vector<8x784xf32>
    %62 = arith.negf %61 : vector<8x784xf32>
    %63 = math.exp %62 : vector<8x784xf32>
    %cst_36 = arith.constant 1.000000e+00 : f32
    %64 = vector.broadcast %cst_36 : f32 to vector<8x784xf32>
    %65 = arith.addf %64, %63 : vector<8x784xf32>
    %66 = arith.divf %64, %65 : vector<8x784xf32>
    %67 = arith.truncf %66 : vector<8x784xf32> to vector<8x784xbf16>
    %c0_37 = arith.constant 0 : index
    %c0_38 = arith.constant 0 : index
    %68 = vector.load %arg15[%c0_37, %c0_38] : memref<8x784xbf16, #tpu.memory_space<vmem>>, vector<8x784xbf16>
    tpu.vector_store %arg15[%c0_37, %c0_38], %67 {strides = array<i32>} : memref<8x784xbf16, #tpu.memory_space<vmem>>, vector<8x784xbf16>,
    %c0_39 = arith.constant 0 : index
    %c0_40 = arith.constant 0 : index
    %69 = vector.load %arg16[%c0_39, %c0_40] : memref<8x4xf32, #tpu.memory_space<vmem>>, vector<8x4xf32>
    tpu.vector_store %arg16[%c0_39, %c0_40], %22 {strides = array<i32>} : memref<8x4xf32, #tpu.memory_space<vmem>>, vector<8x4xf32>,
    return
  }
  func.func @transform_0(%arg0: i32) -> (i32, i32) {
    %c0_i32 = arith.constant 0 : i32
    %c0_i32_0 = arith.constant 0 : i32
    return %arg0, %c0_i32 : i32, i32
  }
  func.func @transform_1(%arg0: i32) -> (i32, i32) {
    %c0_i32 = arith.constant 0 : i32
    %c0_i32_0 = arith.constant 0 : i32
    return %arg0, %c0_i32 : i32, i32
  }
  func.func @transform_2(%arg0: i32) -> (i32, i32) {
    %c0_i32 = arith.constant 0 : i32
    %c0_i32_0 = arith.constant 0 : i32
    %c0_i32_1 = arith.constant 0 : i32
    return %c0_i32, %c0_i32_0 : i32, i32
  }
  func.func @transform_3(%arg0: i32) -> (i32, i32) {
    %c0_i32 = arith.constant 0 : i32
    %c0_i32_0 = arith.constant 0 : i32
    %c0_i32_1 = arith.constant 0 : i32
    return %c0_i32, %c0_i32_0 : i32, i32
  }
  func.func @transform_4(%arg0: i32) -> (i32, i32) {
    %c0_i32 = arith.constant 0 : i32
    %c0_i32_0 = arith.constant 0 : i32
    %c0_i32_1 = arith.constant 0 : i32
    return %c0_i32, %c0_i32_0 : i32, i32
  }
  func.func @transform_5(%arg0: i32) -> (i32, i32) {
    %c0_i32 = arith.constant 0 : i32
    %c0_i32_0 = arith.constant 0 : i32
    %c0_i32_1 = arith.constant 0 : i32
    return %c0_i32, %c0_i32_0 : i32, i32
  }
  func.func @transform_6(%arg0: i32) -> (i32, i32) {
    %c0_i32 = arith.constant 0 : i32
    %c0_i32_0 = arith.constant 0 : i32
    %c0_i32_1 = arith.constant 0 : i32
    return %c0_i32, %c0_i32_0 : i32, i32
  }
  func.func @transform_7(%arg0: i32) -> (i32, i32) {
    %c0_i32 = arith.constant 0 : i32
    %c0_i32_0 = arith.constant 0 : i32
    %c0_i32_1 = arith.constant 0 : i32
    return %c0_i32, %c0_i32_0 : i32, i32
  }
  func.func @transform_8(%arg0: i32) -> (i32, i32) {
    %c0_i32 = arith.constant 0 : i32
    %c0_i32_0 = arith.constant 0 : i32
    %c0_i32_1 = arith.constant 0 : i32
    return %c0_i32, %c0_i32_0 : i32, i32
  }
  func.func @transform_9(%arg0: i32) -> (i32, i32) {
    %c0_i32 = arith.constant 0 : i32
    %c0_i32_0 = arith.constant 0 : i32
    %c0_i32_1 = arith.constant 0 : i32
    return %c0_i32, %c0_i32_0 : i32, i32
  }
  func.func @transform_10(%arg0: i32) -> (i32, i32) {
    %c0_i32 = arith.constant 0 : i32
    %c0_i32_0 = arith.constant 0 : i32
    %c0_i32_1 = arith.constant 0 : i32
    return %c0_i32, %c0_i32_0 : i32, i32
  }
  func.func @transform_11(%arg0: i32) -> (i32, i32) {
    %c0_i32 = arith.constant 0 : i32
    %c0_i32_0 = arith.constant 0 : i32
    %c0_i32_1 = arith.constant 0 : i32
    return %c0_i32, %c0_i32_0 : i32, i32
  }
  func.func @transform_12(%arg0: i32) -> (i32, i32) {
    %c0_i32 = arith.constant 0 : i32
    %c0_i32_0 = arith.constant 0 : i32
    %c0_i32_1 = arith.constant 0 : i32
    return %c0_i32, %c0_i32_0 : i32, i32
  }
  func.func @transform_13(%arg0: i32) -> (i32, i32) {
    %c0_i32 = arith.constant 0 : i32
    %c0_i32_0 = arith.constant 0 : i32
    %c0_i32_1 = arith.constant 0 : i32
    return %c0_i32, %c0_i32_0 : i32, i32
  }
  func.func @transform_14(%arg0: i32) -> (i32, i32) {
    %c0_i32 = arith.constant 0 : i32
    %c0_i32_0 = arith.constant 0 : i32
    return %arg0, %c0_i32 : i32, i32
  }
  func.func @transform_15(%arg0: i32) -> (i32, i32) {
    %c0_i32 = arith.constant 0 : i32
    %c0_i32_0 = arith.constant 0 : i32
    return %arg0, %c0_i32 : i32, i32
  }
}

</mosaic_0001>

<bundles_post_ra>
// kernel: _vae_forward_jit.1
= control target key start
LH: loop header
LB: loop body
LE: loop exit
PB: predicated region body
PF: predicated region fallthrough
CT: control target
= control target key end

     0   :  { %vm1250_vm0 = vcmask 130048   ;;  %vm5247_vm1 = vcmask 31744   ;;  %s12176_s2 = inlined_call_operand.vmem [shape: bf16[784,400], index: 2, kind: input, shape index: {}]   ;;  %s12177_s0 = inlined_call_operand.vmem [shape: f32[8,784], index: 0, kind: input, shape index: {}]   ;;  %s12178_s3 = inlined_call_operand.vmem [shape: f32[1,400], index: 3, kind: input, shape index: {}]   ;;  %s12179_s4 = inlined_call_operand.vmem [shape: bf16[400,400], index: 4, kind: input, shape index: {}]   ;;  %s12180_s5 = inlined_call_operand.vmem [shape: f32[1,400], index: 5, kind: input, shape index: {}]   ;;  %s12181_s7 = inlined_call_operand.vmem [shape: f32[1,4], index: 7, kind: input, shape index: {}]   ;;  %s12182_s6 = inlined_call_operand.vmem [shape: bf16[400,4], index: 6, kind: input, shape index: {}]   ;;  %s12183_s15 = inlined_call_operand.vmem [shape: f32[8,4], index: 15, kind: output, shape index: {1}]   ;;  %s12184_s10 = inlined_call_operand.vmem [shape: bf16[400,400], index: 10, kind: input, shape index: {}]   ;;  %s12185_s1 = inlined_call_operand.vmem [shape: f32[8,2], index: 1, kind: input, shape index: {}]   ;;  %s12186_s8 = inlined_call_operand.vmem [shape: f32[2,400], index: 8, kind: input, shape index: {}]   ;;  %s12187_s9 = inlined_call_operand.vmem [shape: f32[1,400], index: 9, kind: input, shape index: {}]   ;;  %s12188_s12 = inlined_call_operand.vmem [shape: bf16[400,784], index: 12, kind: input, shape index: {}]   ;;  %s12189_s11 = inlined_call_operand.vmem [shape: f32[1,400], index: 11, kind: input, shape index: {}]   ;;  %s12190_s13 = inlined_call_operand.vmem [shape: f32[1,784], index: 13, kind: input, shape index: {}]   ;;  %s12191_s14 = inlined_call_operand.vmem [shape: bf16[8,784], index: 14, kind: output, shape index: {0}]  }
   0x1   :  { %v5371_v0 = vld [vmem:[%s12176_s2 + $0xe0] sm:$0xf]  ;;  %v7698_v1 = vld [vmem:[%s12176_s2 + $0xec] sm:$0xf0] }
   0x2   :  { %v5499_v2 = vld [vmem:[%s12176_s2 + $0x1e0] sm:$0xf]  ;;  %v5372_v3 = vor.u32 %v7698_v1, %v5371_v0  ;;  %v7730_v4 = vld [vmem:[%s12176_s2 + $0x1ec] sm:$0xf0] }
   0x3   :  { %v5627_v5 = vld [vmem:[%s12176_s2 + $0x2e0] sm:$0xf]  ;;  %v7762_v6 = vld [vmem:[%s12176_s2 + $0x2ec] sm:$0xf0]  ;;  %v5500_v7 = vor.u32 %v7730_v4, %v5499_v2 }
   0x4   :  { %v5628_v8 = vor.u32 %v7762_v6, %v5627_v5  ;;  %v5755_v9 = vld [vmem:[%s12176_s2 + $0x3e0] sm:$0xf]  ;;  %v7794_v10 = vld [vmem:[%s12176_s2 + $0x3ec] sm:$0xf0]  ;;  %1254 = vmatpush.bf16.msra.mxu0 %v5372_v3 }
   0x5   :  { %v5355_v11 = vld [vmem:[%s12176_s2 + $0xc0] sm:$0xf]  ;;  %v5756_v12 = vor.u32 %v7794_v10, %v5755_v9  ;;  %v7694_v13 = vld [vmem:[%s12176_s2 + $0xcc] sm:$0xf0]  ;;  %1267 = vmatpush.bf16.msra.mxu1 %v5500_v7 }
   0x6   :  { %v5483_v14 = vld [vmem:[%s12176_s2 + $0x1c0] sm:$0xf]  ;;  %v7726_v15 = vld [vmem:[%s12176_s2 + $0x1cc] sm:$0xf0]  ;;  %1280 = vmatpush.bf16.msra.mxu2 %v5628_v8  ;;  %v5356_v16 = vor.u32 %v7694_v13, %v5355_v11 }
   0x7   :  { %v5484_v17 = vor.u32 %v7726_v15, %v5483_v14  ;;  %v5611_v18 = vld [vmem:[%s12176_s2 + $0x2c0] sm:$0xf]  ;;  %v7758_v19 = vld [vmem:[%s12176_s2 + $0x2cc] sm:$0xf0]  ;;  %1293 = vmatpush.bf16.msra.mxu3 %v5756_v12 }
   0x8   :  { %v5739_v20 = vld [vmem:[%s12176_s2 + $0x3c0] sm:$0xf]  ;;  %v5612_v21 = vor.u32 %v7758_v19, %v5611_v18  ;;  %v7790_v22 = vld [vmem:[%s12176_s2 + $0x3cc] sm:$0xf0]  ;;  %1255 = vmatpush.bf16.msra.mxu0 %v5356_v16 }
   0x9   :  { %v5339_v23 = vld [vmem:[%s12176_s2 + $0xa0] sm:$0xf]  ;;  %v7690_v24 = vld [vmem:[%s12176_s2 + $0xac] sm:$0xf0]  ;;  %v5740_v25 = vor.u32 %v7790_v22, %v5739_v20  ;;  %1268 = vmatpush.bf16.msra.mxu1 %v5484_v17 }
   0xa   :  { %v5467_v26 = vld [vmem:[%s12176_s2 + $0x1a0] sm:$0xf]  ;;  %v7722_v27 = vld [vmem:[%s12176_s2 + $0x1ac] sm:$0xf0]  ;;  %v5340_v29 = vor.u32 %v7690_v24, %v5339_v23  ;;  %1281 = vmatpush.bf16.msra.mxu2 %v5612_v21 }
   0xb   :  { %v5595_v28 = vld [vmem:[%s12176_s2 + $0x2a0] sm:$0xf]  ;;  %v7754_v30 = vld [vmem:[%s12176_s2 + $0x2ac] sm:$0xf0]  ;;  %v5468_v33 = vor.u32 %v7722_v27, %v5467_v26  ;;  %1294 = vmatpush.bf16.msra.mxu3 %v5740_v25 }
   0xc   :  { %v5723_v31 = vld [vmem:[%s12176_s2 + $0x3a0] sm:$0xf]  ;;  %v7786_v32 = vld [vmem:[%s12176_s2 + $0x3ac] sm:$0xf0]  ;;  %v5596_v34 = vor.u32 %v7754_v30, %v5595_v28  ;;  %1256 = vmatpush.bf16.msra.mxu0 %v5340_v29 }
   0xd   :  { %v5323_v35 = vld [vmem:[%s12176_s2 + $0x80] sm:$0xf]  ;;  %v7686_v36 = vld [vmem:[%s12176_s2 + $0x8c] sm:$0xf0]  ;;  %v5724_v38 = vor.u32 %v7786_v32, %v5723_v31  ;;  %1269 = vmatpush.bf16.msra.mxu1 %v5468_v33  ;;  %v7696_v33 = vld [vmem:[%s12176_s2 + $0xe4] sm:$0xf] }
   0xe   :  { %v5451_v37 = vld [vmem:[%s12176_s2 + $0x180] sm:$0xf]  ;;  %v7718_v39 = vld [vmem:[%s12176_s2 + $0x18c] sm:$0xf0]  ;;  %v5324_v44 = vor.u32 %v7686_v36, %v5323_v35  ;;  %1282 = vmatpush.bf16.msra.mxu2 %v5596_v34  ;;  %v5373_v34 = vld [vmem:[%s12176_s2 + $0xf0] sm:$0xf0] }
   0xf   :  { %v5579_v40 = vld [vmem:[%s12176_s2 + $0x280] sm:$0xf]  ;;  %v7750_v41 = vld [vmem:[%s12176_s2 + $0x28c] sm:$0xf0]  ;;  %v5452_v45 = vor.u32 %v7718_v39, %v5451_v37  ;;  %1295 = vmatpush.bf16.msra.mxu3 %v5724_v38 }
  0x10   :  { %v5707_v42 = vld [vmem:[%s12176_s2 + $0x380] sm:$0xf]  ;;  %v7782_v43 = vld [vmem:[%s12176_s2 + $0x38c] sm:$0xf0]  ;;  %v5580_v46 = vor.u32 %v7750_v41, %v5579_v40  ;;  %1257 = vmatpush.bf16.msra.mxu0 %v5324_v44  ;;  %v5501_v44 = vld [vmem:[%s12176_s2 + $0x1f0] sm:$0xf0] }
  0x11   :  { %v5307_v47 = vld [vmem:[%s12176_s2 + $0x60] sm:$0xf]  ;;  %v7682_v48 = vld [vmem:[%s12176_s2 + $0x6c] sm:$0xf0]  ;;  %v5708_v50 = vor.u32 %v7782_v43, %v5707_v42  ;;  %1270 = vmatpush.bf16.msra.mxu1 %v5452_v45  ;;  %v7728_v43 = vld [vmem:[%s12176_s2 + $0x1e4] sm:$0xf] }
  0x12   :  { %v5435_v49 = vld [vmem:[%s12176_s2 + $0x160] sm:$0xf]  ;;  %v7714_v51 = vld [vmem:[%s12176_s2 + $0x16c] sm:$0xf0]  ;;  %v5308_v56 = vor.u32 %v7682_v48, %v5307_v47  ;;  %1283 = vmatpush.bf16.msra.mxu2 %v5580_v46  ;;  %v53_v45 = vld [vmem:[%s12177_s0 + $0x18] sm:$0xff]  ;;  %v5376_v47 = vor.u32 %v7696_v33, %v5373_v34 }
  0x13   :  { %v5563_v52 = vld [vmem:[%s12176_s2 + $0x260] sm:$0xf]  ;;  %v7746_v53 = vld [vmem:[%s12176_s2 + $0x26c] sm:$0xf0]  ;;  %v5436_v57 = vor.u32 %v7714_v51, %v5435_v49  ;;  %1296 = vmatpush.bf16.msra.mxu3 %v5708_v50 }
  0x14   :  { %v5691_v54 = vld [vmem:[%s12176_s2 + $0x360] sm:$0xf]  ;;  %v7778_v55 = vld [vmem:[%s12176_s2 + $0x36c] sm:$0xf0]  ;;  %v5564_v58 = vor.u32 %v7746_v53, %v5563_v52  ;;  %1258 = vmatpush.bf16.msra.mxu0 %v5308_v56  ;;  %v7692_v53 = vld [vmem:[%s12176_s2 + $0xc4] sm:$0xf] }
  0x15   :  { %v5291_v59 = vld [vmem:[%s12176_s2 + $0x40] sm:$0xf]  ;;  %v7678_v60 = vld [vmem:[%s12176_s2 + $0x4c] sm:$0xf0]  ;;  %v5692_v62 = vor.u32 %v7778_v55, %v5691_v54  ;;  %1271 = vmatpush.bf16.msra.mxu1 %v5436_v57  ;;  %v5357_v54 = vld [vmem:[%s12176_s2 + $0xd0] sm:$0xf0]  ;;  %v8637_v57 = vpack.c.bf16 %v53_v45, %v53_v45 }
  0x16   :  { %v5419_v61 = vld [vmem:[%s12176_s2 + $0x140] sm:$0xf]  ;;  %v7710_v63 = vld [vmem:[%s12176_s2 + $0x14c] sm:$0xf0]  ;;  %v5292_v4 = vor.u32 %v7678_v60, %v5291_v59  ;;  %1284 = vmatpush.bf16.msra.mxu2 %v5564_v58  ;;  %v51_v58 = vld [vmem:[%s12177_s0 + $0x8] sm:$0xff]  ;;  %v5504_v59 = vor.u32 %v7728_v43, %v5501_v44 }
  0x17   :  { %v5547_v0 = vld [vmem:[%s12176_s2 + $0x240] sm:$0xf]  ;;  %v7742_v1 = vld [vmem:[%s12176_s2 + $0x24c] sm:$0xf0]  ;;  %v5420_v5 = vor.u32 %v7710_v63, %v5419_v61  ;;  %1297 = vmatpush.bf16.msra.mxu3 %v5692_v62  ;;  %v7724_v61 = vld [vmem:[%s12176_s2 + $0x1c4] sm:$0xf] }
  0x18   :  { %v5675_v2 = vld [vmem:[%s12176_s2 + $0x340] sm:$0xf]  ;;  %v7774_v3 = vld [vmem:[%s12176_s2 + $0x34c] sm:$0xf0]  ;;  %v5548_v6 = vor.u32 %v7742_v1, %v5547_v0  ;;  %1259 = vmatpush.bf16.msra.mxu0 %v5292_v4  ;;  %v5485_v62 = vld [vmem:[%s12176_s2 + $0x1d0] sm:$0xf0]  ;;  %v5360_v0 = vor.u32 %v7692_v53, %v5357_v54 }
  0x19   :  { %v5275_v7 = vld [vmem:[%s12176_s2 + $0x20] sm:$0xf]  ;;  %v7674_v8 = vld [vmem:[%s12176_s2 + $0x2c] sm:$0xf0]  ;;  %v5676_v10 = vor.u32 %v7774_v3, %v5675_v2  ;;  %1272 = vmatpush.bf16.msra.mxu1 %v5420_v5  ;;  %v7688_v5 = vld [vmem:[%s12176_s2 + $0xa4] sm:$0xf] }
  0x1a   :  { %v5403_v9 = vld [vmem:[%s12176_s2 + $0x120] sm:$0xf]  ;;  %v7706_v11 = vld [vmem:[%s12176_s2 + $0x12c] sm:$0xf0]  ;;  %v5276_v16 = vor.u32 %v7674_v8, %v5275_v7  ;;  %1285 = vmatpush.bf16.msra.mxu2 %v5548_v6  ;;  %v5341_v6 = vld [vmem:[%s12176_s2 + $0xb0] sm:$0xf0]  ;;  %v8668_v7 = vpack.c.bf16 %v51_v58, %v51_v58  ;;  %v5488_v8 = vor.u32 %v7724_v61, %v5485_v62 }
  0x1b   :  { %v5531_v12 = vld [vmem:[%s12176_s2 + $0x220] sm:$0xf]  ;;  %v7738_v13 = vld [vmem:[%s12176_s2 + $0x22c] sm:$0xf0]  ;;  %v5404_v20 = vor.u32 %v7706_v11, %v5403_v9  ;;  %1298 = vmatpush.bf16.msra.mxu3 %v5676_v10  ;;  %v7720_v10 = vld [vmem:[%s12176_s2 + $0x1a4] sm:$0xf] }
  0x1c   :  { %v5659_v14 = vld [vmem:[%s12176_s2 + $0x320] sm:$0xf]  ;;  %v7770_v15 = vld [vmem:[%s12176_s2 + $0x32c] sm:$0xf0]  ;;  %v5532_v21 = vor.u32 %v7738_v13, %v5531_v12  ;;  %1260 = vmatpush.bf16.msra.mxu0 %v5276_v16  ;;  %v5469_v11 = vld [vmem:[%s12176_s2 + $0x1b0] sm:$0xf0]  ;;  %v5344_v13 = vor.u32 %v7688_v5, %v5341_v6 }
  0x1d   :  { %v5259_v17 = vld [vmem:[%s12176_s2] sm:$0xf]  ;;  %v7670_v18 = vld [vmem:[%s12176_s2 + $0xc] sm:$0xf0]  ;;  %v5660_v25 = vor.u32 %v7770_v15, %v5659_v14  ;;  %1273 = vmatpush.bf16.msra.mxu1 %v5404_v20  ;;  %v5472_v20 = vor.u32 %v7720_v10, %v5469_v11  ;;  %v7676_v43 = vld [vmem:[%s12176_s2 + $0x44] sm:$0xf] }
  0x1e   :  { %v5387_v19 = vld [vmem:[%s12176_s2 + $0x100] sm:$0xf]  ;;  %v7702_v22 = vld [vmem:[%s12176_s2 + $0x10c] sm:$0xf0]  ;;  %v5260_v32 = vor.u32 %v7670_v18, %v5259_v17  ;;  %1286 = vmatpush.bf16.msra.mxu2 %v5532_v21  ;;  %v7684_v18 = vld [vmem:[%s12176_s2 + $0x84] sm:$0xf] }
  0x1f   :  { %v5515_v23 = vld [vmem:[%s12176_s2 + $0x200] sm:$0xf]  ;;  %v7734_v24 = vld [vmem:[%s12176_s2 + $0x20c] sm:$0xf0]  ;;  %v5388_v36 = vor.u32 %v7702_v22, %v5387_v19  ;;  %1299 = vmatpush.bf16.msra.mxu3 %v5660_v25  ;;  %v5325_v19 = vld [vmem:[%s12176_s2 + $0x90] sm:$0xf0] }
  0x20   :  { %v5643_v26 = vld [vmem:[%s12176_s2 + $0x300] sm:$0xf]  ;;  %v7766_v27 = vld [vmem:[%s12176_s2 + $0x30c] sm:$0xf0]  ;;  %v5516_v37 = vor.u32 %v7734_v24, %v5515_v23  ;;  %1261 = vmatpush.bf16.msra.mxu0 %v5260_v32  ;;  %v7716_v22 = vld [vmem:[%s12176_s2 + $0x184] sm:$0xf]  ;;  %v5328_v25 = vor.u32 %v7684_v18, %v5325_v19 }
  0x21   :  { %v5883_v28 = vld [vmem:[%s12176_s2 + $0x4e0] sm:$0xf]  ;;  %v7826_v29 = vld [vmem:[%s12176_s2 + $0x4ec] sm:$0xf0]  ;;  %v5644_v41 = vor.u32 %v7766_v27, %v5643_v26  ;;  %1274 = vmatpush.bf16.msra.mxu1 %v5388_v36  ;;  %v5453_v23 = vld [vmem:[%s12176_s2 + $0x190] sm:$0xf0] }
  0x22   :  { %v6011_v30 = vld [vmem:[%s12176_s2 + $0x5e0] sm:$0xf]  ;;  %v7858_v31 = vld [vmem:[%s12176_s2 + $0x5ec] sm:$0xf0]  ;;  %v5884_v42 = vor.u32 %v7826_v29, %v5883_v28  ;;  %1287 = vmatpush.bf16.msra.mxu2 %v5516_v37  ;;  %v5456_v33 = vor.u32 %v7716_v22, %v5453_v23  ;;  %v5437_v36 = vld [vmem:[%s12176_s2 + $0x170] sm:$0xf0] }
  0x23   :  { %v52_v35 = vld [vmem:[%s12177_s0 + $0x10] sm:$0xff]  ;;  %v6027_v38 = vld [vmem:[%s12176_s2 + $0x600] sm:$0xf]  ;;  %v6012_v46 = vor.u32 %v7858_v31, %v6011_v30  ;;  %1300 = vmatpush.bf16.msra.mxu3 %v5644_v41  ;;  %v7680_v30 = vld [vmem:[%s12176_s2 + $0x64] sm:$0xf] }
  0x24   :  { %v7862_v39 = vld [vmem:[%s12176_s2 + $0x60c] sm:$0xf0]  ;;  %v50_v40 = vld [vmem:[%s12177_s0] sm:$0xff]  ;;  %v8624_v51 = vpack.c.bf16 %v52_v35, %v52_v35  ;;  %1306 = vmatpush.bf16.msrb.mxu0 %v5884_v42  ;;  %1275 = vmatmul.bf16.vlgmr.msra.gmra.mxu1 %v8668_v7  ;;  %v5309_v31 = vld [vmem:[%s12176_s2 + $0x70] sm:$0xf0] }
  0x25   :  { %v5867_v48 = vld [vmem:[%s12176_s2 + $0x4c0] sm:$0xf]  ;;  %v7822_v49 = vld [vmem:[%s12176_s2 + $0x4cc] sm:$0xf0]  ;;  %v8635_v55 = vpack.c.bf16 %v50_v40, %v50_v40  ;;  %v6028_v56 = vor.u32 %v7862_v39, %v6027_v38  ;;  %1319 = vmatpush.bf16.msrb.mxu1 %v6012_v46  ;;  %v7712_v35 = vld [vmem:[%s12176_s2 + $0x164] sm:$0xf]  ;;  %v5312_v38 = vor.u32 %v7680_v30, %v5309_v31 }
  0x26   :  { %v5995_v50 = vld [vmem:[%s12176_s2 + $0x5c0] sm:$0xf]  ;;  %v7854_v52 = vld [vmem:[%s12176_s2 + $0x5cc] sm:$0xf0]  ;;  %v5868_v60 = vor.u32 %v7822_v49, %v5867_v48  ;;  %1288 = vmatmul.bf16.vlgmr.msra.gmra.mxu2 %v8624_v51  ;;  %1301 = vmatmul.bf16.vlgmr.msra.gmra.mxu3 %v8637_v57  ;;  %v5293_v44 = vld [vmem:[%s12176_s2 + $0x50] sm:$0xf0]  ;;  %v5440_v46 = vor.u32 %v7712_v35, %v5437_v36 }
  0x27   :  { %1345 = vmatpush.bf16.msrb.mxu3 %v5376_v47  ;;  %v5996_v63 = vor.u32 %v7854_v52, %v5995_v50  ;;  %v5851_v1 = vld [vmem:[%s12176_s2 + $0x4a0] sm:$0xf]  ;;  %v7818_v2 = vld [vmem:[%s12176_s2 + $0x4ac] sm:$0xf0]  ;;  %1262 = vmatmul.bf16.vlgmr.msra.gmra.mxu0 %v8635_v55  ;;  %v7708_v48 = vld [vmem:[%s12176_s2 + $0x144] sm:$0xf]  ;;  %v5296_v52 = vor.u32 %v7676_v43, %v5293_v44 }
  0x28   :  { %v5979_v3 = vld [vmem:[%s12176_s2 + $0x5a0] sm:$0xf]  ;;  %v7850_v4 = vld [vmem:[%s12176_s2 + $0x5ac] sm:$0xf0]  ;;  %1339 = vmatpush.bf16.msrb.mxu2 %v6028_v56  ;;  %1307 = vmatpush.bf16.msrb.mxu0 %v5868_v60  ;;  %v5852_v9 = vor.u32 %v7818_v2, %v5851_v1  ;;  %v5421_v49 = vld [vmem:[%s12176_s2 + $0x150] sm:$0xf0] }
  0x29   :  { %1320 = vmatpush.bf16.msrb.mxu1 %v5996_v63  ;;  %v5980_v12 = vor.u32 %v7850_v4, %v5979_v3  ;;  %v5835_v14 = vld [vmem:[%s12176_s2 + $0x480] sm:$0xf]  ;;  %v7814_v15 = vld [vmem:[%s12176_s2 + $0x48c] sm:$0xf0]  ;;  %v5277_v60 = vld [vmem:[%s12176_s2 + $0x30] sm:$0xf0]  ;;  %v5424_v61 = vor.u32 %v7708_v48, %v5421_v49 }
  0x2a   :  { %v5963_v16 = vld [vmem:[%s12176_s2 + $0x580] sm:$0xf]  ;;  %v7846_v17 = vld [vmem:[%s12176_s2 + $0x58c] sm:$0xf0]  ;;  %v5836_v21 = vor.u32 %v7814_v15, %v5835_v14  ;;  %v7704_v63 = vld [vmem:[%s12176_s2 + $0x124] sm:$0xf] }
  0x2b   :  { %1346 = vmatpush.bf16.msrb.mxu3 %v5360_v0  ;;  %v5964_v24 = vor.u32 %v7846_v17, %v5963_v16  ;;  %v5819_v26 = vld [vmem:[%s12176_s2 + $0x460] sm:$0xf]  ;;  %v7810_v27 = vld [vmem:[%s12176_s2 + $0x46c] sm:$0xf0]  ;;  %v5405_v0 = vld [vmem:[%s12176_s2 + $0x130] sm:$0xf0] }
  0x2c   :  { %1358 = vmatpush.bf16.msra.mxu2 %v5504_v59  ;;  %1308 = vmatpush.bf16.msrb.mxu0 %v5852_v9  ;;  %v5947_v28 = vld [vmem:[%s12176_s2 + $0x560] sm:$0xf]  ;;  %v7842_v29 = vld [vmem:[%s12176_s2 + $0x56c] sm:$0xf0]  ;;  %v5820_v34 = vor.u32 %v7810_v27, %v5819_v26  ;;  %v7672_v59 = vld [vmem:[%s12176_s2 + $0x24] sm:$0xf]  ;;  %v5408_v14 = vor.u32 %v7704_v63, %v5405_v0 }
  0x2d   :  { %1321 = vmatpush.bf16.msrb.mxu1 %v5980_v12  ;;  %v56_v32 = vld [vmem:[%s12177_s0 + $0x30] sm:$0xff]  ;;  %v5948_v37 = vor.u32 %v7842_v29, %v5947_v28  ;;  %v5803_v39 = vld [vmem:[%s12176_s2 + $0x440] sm:$0xf]  ;;  %v5280_v3 = vor.u32 %v7672_v59, %v5277_v60  ;;  %v7760_v10 = vld [vmem:[%s12176_s2 + $0x2e4] sm:$0xf] }
  0x2e   :  { %v7806_v40 = vld [vmem:[%s12176_s2 + $0x44c] sm:$0xf0]  ;;  %v5931_v41 = vld [vmem:[%s12176_s2 + $0x540] sm:$0xf]  ;;  %v8747_v45 = vpack.c.bf16 %v56_v32, %v56_v32  ;;  %v5261_v9 = vld [vmem:[%s12176_s2 + $0x10] sm:$0xf0] }
  0x2f   :  { %1347 = vmatpush.bf16.msrb.mxu3 %v5344_v13  ;;  %v7838_v42 = vld [vmem:[%s12176_s2 + $0x54c] sm:$0xf0]  ;;  %v5804_v47 = vor.u32 %v7806_v40, %v5803_v39  ;;  %v5787_v53 = vld [vmem:[%s12176_s2 + $0x420] sm:$0xf]  ;;  %v5629_v11 = vld [vmem:[%s12176_s2 + $0x2f0] sm:$0xf0] }
  0x30   :  { %1359 = vmatpush.bf16.msra.mxu2 %v5488_v8  ;;  %1309 = vmatpush.bf16.msrb.mxu0 %v5836_v21  ;;  %v5932_v50 = vor.u32 %v7838_v42, %v5931_v41  ;;  %v7802_v54 = vld [vmem:[%s12176_s2 + $0x42c] sm:$0xf0]  ;;  %v5915_v56 = vld [vmem:[%s12176_s2 + $0x520] sm:$0xf]  ;;  %v7668_v8 = vld [vmem:[%s12176_s2 + $0x4] sm:$0xf] }
  0x31   :  { %1322 = vmatpush.bf16.msrb.mxu1 %v5964_v24  ;;  %v7834_v58 = vld [vmem:[%s12176_s2 + $0x52c] sm:$0xf0]  ;;  %v5788_v62 = vor.u32 %v7802_v54, %v5787_v53  ;;  %v5771_v1 = vld [vmem:[%s12176_s2 + $0x400] sm:$0xf]  ;;  %v7792_v12 = vld [vmem:[%s12176_s2 + $0x3e4] sm:$0xf]  ;;  %v5632_v24 = vor.u32 %v7760_v10, %v5629_v11 }
  0x32   :  { %v5916_v2 = vor.u32 %v7834_v58, %v5915_v56  ;;  %v7798_v4 = vld [vmem:[%s12176_s2 + $0x40c] sm:$0xf0]  ;;  %v5899_v5 = vld [vmem:[%s12176_s2 + $0x500] sm:$0xf]  ;;  %v5757_v13 = vld [vmem:[%s12176_s2 + $0x3f0] sm:$0xf0] }
  0x33   :  { %1348 = vmatpush.bf16.msrb.mxu3 %v5328_v25  ;;  %v7830_v6 = vld [vmem:[%s12176_s2 + $0x50c] sm:$0xf0]  ;;  %v5772_v15 = vor.u32 %v7798_v4, %v5771_v1  ;;  %v7824_v16 = vld [vmem:[%s12176_s2 + $0x4e4] sm:$0xf]  ;;  %v5885_v17 = vld [vmem:[%s12176_s2 + $0x4f0] sm:$0xf0]  ;;  %v5760_v25 = vor.u32 %v7792_v12, %v5757_v13 }
  0x34   :  { %1360 = vmatpush.bf16.msra.mxu2 %v5472_v20  ;;  %1310 = vmatpush.bf16.msrb.mxu0 %v5820_v34  ;;  %v54_v18 = vld [vmem:[%s12177_s0 + $0x20] sm:$0xff]  ;;  %v5900_v19 = vor.u32 %v7830_v6, %v5899_v5  ;;  %v5264_v20 = vor.u32 %v7668_v8, %v5261_v9  ;;  %v5389_v22 = vld [vmem:[%s12176_s2 + $0x110] sm:$0xf0]  ;;  %v55_v23 = vld [vmem:[%s12177_s0 + $0x28] sm:$0xff]  ;;  %v5888_v29 = vor.u32 %v7824_v16, %v5885_v17 }
  0x35   :  { %1323 = vmatpush.bf16.msrb.mxu1 %v5948_v37  ;;  %v7700_v21 = vld [vmem:[%s12176_s2 + $0x104] sm:$0xf]  ;;  %v6013_v27 = vld [vmem:[%s12176_s2 + $0x5f0] sm:$0xf0]  ;;  %v8838_v30 = vpack.c.bf16 %v54_v18, %v54_v18  ;;  %v8849_v35 = vpack.c.bf16 %v55_v23, %v55_v23 }
  0x36   :  { %6041 = vmatmul.msk.bf16.vlgmr.msrb.gmra.mxu2 %vm1250_vm0, %v8747_v45  ;;  %v7856_v26 = vld [vmem:[%s12176_s2 + $0x5e4] sm:$0xf]  ;;  %v5613_v31 = vld [vmem:[%s12176_s2 + $0x2d0] sm:$0xf0]  ;;  %v5392_v34 = vor.u32 %v7700_v21, %v5389_v22 }
  0x37   :  { %1349 = vmatpush.bf16.msrb.mxu3 %v5312_v38  ;;  %v7756_v28 = vld [vmem:[%s12176_s2 + $0x2c4] sm:$0xf]  ;;  %v5869_v37 = vld [vmem:[%s12176_s2 + $0x4d0] sm:$0xf0]  ;;  %v6016_v38 = vor.u32 %v7856_v26, %v6013_v27 }
  0x38   :  { %1361 = vmatpush.bf16.msra.mxu2 %v5456_v33  ;;  %1311 = vmatpush.bf16.msrb.mxu0 %v5804_v47  ;;  %v7788_v32 = vld [vmem:[%s12176_s2 + $0x3c4] sm:$0xf]  ;;  %v5741_v33 = vld [vmem:[%s12176_s2 + $0x3d0] sm:$0xf0]  ;;  %v5616_v39 = vor.u32 %v7756_v28, %v5613_v31 }
  0x39   :  { %1324 = vmatpush.bf16.msrb.mxu1 %v5932_v50  ;;  %v7820_v36 = vld [vmem:[%s12176_s2 + $0x4c4] sm:$0xf]  ;;  %v5744_v40 = vor.u32 %v7788_v32, %v5741_v33  ;;  %v5997_v42 = vld [vmem:[%s12176_s2 + $0x5d0] sm:$0xf0] }
  0x3a   :  { %v7852_v41 = vld [vmem:[%s12176_s2 + $0x5c4] sm:$0xf]  ;;  %v5872_v44 = vor.u32 %v7820_v36, %v5869_v37  ;;  %v5725_v48 = vld [vmem:[%s12176_s2 + $0x3b0] sm:$0xf0] }
  0x3b   :  { %1350 = vmatpush.bf16.msrb.mxu3 %v5296_v52  ;;  %v7752_v43 = vld [vmem:[%s12176_s2 + $0x2a4] sm:$0xf]  ;;  %v5853_v50 = vld [vmem:[%s12176_s2 + $0x4b0] sm:$0xf0]  ;;  %v6000_v52 = vor.u32 %v7852_v41, %v5997_v42 }
  0x3c   :  { %1362 = vmatpush.bf16.msra.mxu2 %v5440_v46  ;;  %1312 = vmatpush.bf16.msrb.mxu0 %v5788_v62  ;;  %v5597_v46 = vld [vmem:[%s12176_s2 + $0x2b0] sm:$0xf0]  ;;  %v7784_v47 = vld [vmem:[%s12176_s2 + $0x3a4] sm:$0xf] }
  0x3d   :  { %1325 = vmatpush.bf16.msrb.mxu1 %v5916_v2  ;;  %v7816_v49 = vld [vmem:[%s12176_s2 + $0x4a4] sm:$0xf]  ;;  %v5600_v53 = vor.u32 %v7752_v43, %v5597_v46  ;;  %v5728_v54 = vor.u32 %v7784_v47, %v5725_v48  ;;  %v5981_v58 = vld [vmem:[%s12176_s2 + $0x5b0] sm:$0xf0] }
  0x3e   :  { %v7848_v56 = vld [vmem:[%s12176_s2 + $0x5a4] sm:$0xf]  ;;  %v5856_v60 = vor.u32 %v7816_v49, %v5853_v50  ;;  %v5709_v63 = vld [vmem:[%s12176_s2 + $0x390] sm:$0xf0] }
  0x3f   :  { %1351 = vmatpush.bf16.msrb.mxu3 %v5280_v3  ;;  %v7748_v59 = vld [vmem:[%s12176_s2 + $0x284] sm:$0xf]  ;;  %v5837_v1 = vld [vmem:[%s12176_s2 + $0x490] sm:$0xf0]  ;;  %v5984_v2 = vor.u32 %v7848_v56, %v5981_v58  ;;  %v5379_v56 = vld [vmem:[%s12176_s2 + $0xe8] sm:$0xf] }
  0x40   :  { %1363 = vmatpush.bf16.msra.mxu2 %v5424_v61  ;;  %1313 = vmatpush.bf16.msrb.mxu0 %v5772_v15  ;;  %v5581_v61 = vld [vmem:[%s12176_s2 + $0x290] sm:$0xf0]  ;;  %v7780_v62 = vld [vmem:[%s12176_s2 + $0x384] sm:$0xf]  ;;  %v7699_v58 = vld [vmem:[%s12176_s2 + $0xf4] sm:$0xf0] }
  0x41   :  { %1326 = vmatpush.bf16.msrb.mxu1 %v5900_v19  ;;  %v7812_v0 = vld [vmem:[%s12176_s2 + $0x484] sm:$0xf]  ;;  %v5584_v3 = vor.u32 %v7748_v59, %v5581_v61  ;;  %v5712_v4 = vor.u32 %v7780_v62, %v5709_v63  ;;  %v5965_v6 = vld [vmem:[%s12176_s2 + $0x590] sm:$0xf0]  ;;  %v5507_v59 = vld [vmem:[%s12176_s2 + $0x1e8] sm:$0xf] }
  0x42   :  { %v7844_v5 = vld [vmem:[%s12176_s2 + $0x584] sm:$0xf]  ;;  %v5840_v9 = vor.u32 %v7812_v0, %v5837_v1  ;;  %v5565_v10 = vld [vmem:[%s12176_s2 + $0x270] sm:$0xf0]  ;;  %v7731_v61 = vld [vmem:[%s12176_s2 + $0x1f4] sm:$0xf0] }
  0x43   :  { %1352 = vmatpush.bf16.msrb.mxu3 %v5264_v20  ;;  %1314 = vmatmul.bf16.vlgmr.msrb.gmra.mxu0 %v8838_v30  ;;  %v7744_v8 = vld [vmem:[%s12176_s2 + $0x264] sm:$0xf]  ;;  %v5693_v12 = vld [vmem:[%s12176_s2 + $0x370] sm:$0xf0]  ;;  %v5968_v15 = vor.u32 %v7844_v5, %v5965_v6  ;;  %v5380_v6 = vor.u32 %v7699_v58, %v5379_v56  ;;  %v7683_v56 = vld [vmem:[%s12176_s2 + $0x74] sm:$0xf0] }
  0x44   :  { %1364 = vmatpush.bf16.msra.mxu2 %v5408_v14  ;;  %1371 = vmatpush.bf16.msra.mxu0 %v5632_v24  ;;  %v7776_v11 = vld [vmem:[%s12176_s2 + $0x364] sm:$0xf]  ;;  %v5821_v14 = vld [vmem:[%s12176_s2 + $0x470] sm:$0xf0]  ;;  %v5568_v16 = vor.u32 %v7744_v8, %v5565_v10  ;;  %v7763_v8 = vld [vmem:[%s12176_s2 + $0x2f4] sm:$0xf0] }
  0x45   :  { %1384 = vmatpush.bf16.msra.mxu1 %v5760_v25  ;;  %v7808_v13 = vld [vmem:[%s12176_s2 + $0x464] sm:$0xf]  ;;  %v5696_v17 = vor.u32 %v7776_v11, %v5693_v12  ;;  %v5949_v19 = vld [vmem:[%s12176_s2 + $0x570] sm:$0xf0]  ;;  %v7795_v10 = vld [vmem:[%s12176_s2 + $0x3f4] sm:$0xf0]  ;;  %v5508_v11 = vor.u32 %v7731_v61, %v5507_v59 }
  0x46   :  { %1327 = vmatmul.bf16.vlgmr.msrb.gmra.mxu1 %v8849_v35  ;;  %1353 = vmatmul.bf16.vlgmr.msrb.gmra.mxu3 %v8635_v55  ;;  %v7840_v18 = vld [vmem:[%s12176_s2 + $0x564] sm:$0xf]  ;;  %v5824_v21 = vor.u32 %v7808_v13, %v5821_v14  ;;  %v5549_v22 = vld [vmem:[%s12176_s2 + $0x250] sm:$0xf0]  ;;  %v5363_v13 = vld [vmem:[%s12176_s2 + $0xc8] sm:$0xf] }
  0x47   :  { %1397 = vmatpush.bf16.msra.mxu3 %v5888_v29  ;;  %v7740_v20 = vld [vmem:[%s12176_s2 + $0x244] sm:$0xf]  ;;  %v5677_v24 = vld [vmem:[%s12176_s2 + $0x350] sm:$0xf0]  ;;  %v5952_v27 = vor.u32 %v7840_v18, %v5949_v19  ;;  %v7695_v14 = vld [vmem:[%s12176_s2 + $0xd4] sm:$0xf0] }
  0x48   :  { %1365 = vmatpush.bf16.msra.mxu2 %v5392_v34  ;;  %1372 = vmatpush.bf16.msra.mxu0 %v5616_v39  ;;  %v7772_v23 = vld [vmem:[%s12176_s2 + $0x344] sm:$0xf]  ;;  %v5805_v26 = vld [vmem:[%s12176_s2 + $0x450] sm:$0xf0]  ;;  %v5552_v28 = vor.u32 %v7740_v20, %v5549_v22  ;;  %v5619_v20 = vld [vmem:[%s12176_s2 + $0x2c8] sm:$0xf] }
  0x49   :  { %1385 = vmatpush.bf16.msra.mxu1 %v5744_v40  ;;  %v7804_v25 = vld [vmem:[%s12176_s2 + $0x444] sm:$0xf]  ;;  %v5680_v29 = vor.u32 %v7772_v23, %v5677_v24  ;;  %v5933_v32 = vld [vmem:[%s12176_s2 + $0x550] sm:$0xf0]  ;;  %v7759_v22 = vld [vmem:[%s12176_s2 + $0x2d4] sm:$0xf0] }
  0x4a   :  { %v7836_v31 = vld [vmem:[%s12176_s2 + $0x544] sm:$0xf]  ;;  %v5808_v34 = vor.u32 %v7804_v25, %v5805_v26  ;;  %v5533_v36 = vld [vmem:[%s12176_s2 + $0x230] sm:$0xf0]  ;;  %v5747_v23 = vld [vmem:[%s12176_s2 + $0x3c8] sm:$0xf] }
  0x4b   :  { %1398 = vmatpush.bf16.msra.mxu3 %v5872_v44  ;;  %1366 = vmatmul.bf16.vlgmr.msra.gmra.mxu2 %v8668_v7  ;;  %v7736_v33 = vld [vmem:[%s12176_s2 + $0x224] sm:$0xf]  ;;  %v5789_v40 = vld [vmem:[%s12176_s2 + $0x430] sm:$0xf0]  ;;  %v5936_v41 = vor.u32 %v7836_v31, %v5933_v32  ;;  %v7791_v24 = vld [vmem:[%s12176_s2 + $0x3d4] sm:$0xf0]  ;;  %v5620_v31 = vor.u32 %v7759_v22, %v5619_v20 }
  0x4c   :  { %1410 = vmatpush.bf16.msrb.mxu2 %v6016_v38  ;;  %1373 = vmatpush.bf16.msra.mxu0 %v5600_v53  ;;  %v7768_v37 = vld [vmem:[%s12176_s2 + $0x324] sm:$0xf]  ;;  %v5661_v38 = vld [vmem:[%s12176_s2 + $0x330] sm:$0xf0]  ;;  %v5536_v44 = vor.u32 %v7736_v33, %v5533_v36  ;;  %v5347_v26 = vld [vmem:[%s12176_s2 + $0xa8] sm:$0xf]  ;;  %v5748_v32 = vor.u32 %v7791_v24, %v5747_v23 }
  0x4d   :  { %1386 = vmatpush.bf16.msra.mxu1 %v5728_v54  ;;  %v7800_v39 = vld [vmem:[%s12176_s2 + $0x424] sm:$0xf]  ;;  %v5917_v43 = vld [vmem:[%s12176_s2 + $0x530] sm:$0xf0]  ;;  %v5664_v46 = vor.u32 %v7768_v37, %v5661_v38  ;;  %v5603_v33 = vld [vmem:[%s12176_s2 + $0x2a8] sm:$0xf] }
  0x4e   :  { %v7832_v42 = vld [vmem:[%s12176_s2 + $0x524] sm:$0xf]  ;;  %v5517_v48 = vld [vmem:[%s12176_s2 + $0x210] sm:$0xf0]  ;;  %v5792_v50 = vor.u32 %v7800_v39, %v5789_v40  ;;  %v7755_v36 = vld [vmem:[%s12176_s2 + $0x2b4] sm:$0xf0] }
  0x4f   :  { %1399 = vmatpush.bf16.msra.mxu3 %v5856_v60  ;;  %v7732_v47 = vld [vmem:[%s12176_s2 + $0x204] sm:$0xf]  ;;  %v5773_v54 = vld [vmem:[%s12176_s2 + $0x410] sm:$0xf0]  ;;  %v5920_v60 = vor.u32 %v7832_v42, %v5917_v43  ;;  %v5731_v37 = vld [vmem:[%s12176_s2 + $0x3a8] sm:$0xf] }
  0x50   :  { %1411 = vmatpush.bf16.msrb.mxu2 %v6000_v52  ;;  %1374 = vmatpush.bf16.msra.mxu0 %v5584_v3  ;;  %v7764_v49 = vld [vmem:[%s12176_s2 + $0x304] sm:$0xf]  ;;  %v5645_v52 = vld [vmem:[%s12176_s2 + $0x310] sm:$0xf0]  ;;  %v5520_v0 = vor.u32 %v7732_v47, %v5517_v48  ;;  %v7787_v38 = vld [vmem:[%s12176_s2 + $0x3b4] sm:$0xf0] }
  0x51   :  { %1387 = vmatpush.bf16.msra.mxu1 %v5712_v4  ;;  %v7796_v53 = vld [vmem:[%s12176_s2 + $0x404] sm:$0xf]  ;;  %v6029_v63 = vld [vmem:[%s12176_s2 + $0x610] sm:$0xf0]  ;;  %v5648_v1 = vor.u32 %v7764_v49, %v5645_v52  ;;  %v5635_v4 = vld [vmem:[%s12176_s2 + $0x2e8] sm:$0xf] }
  0x52   :  { %v7860_v62 = vld [vmem:[%s12176_s2 + $0x604] sm:$0xf]  ;;  %v5901_v3 = vld [vmem:[%s12176_s2 + $0x510] sm:$0xf0]  ;;  %v5776_v5 = vor.u32 %v7796_v53, %v5773_v54  ;;  %v5636_v18 = vor.u32 %v7763_v8, %v5635_v4  ;;  %v5331_v40 = vld [vmem:[%s12176_s2 + $0x88] sm:$0xf] }
  0x53   :  { %1400 = vmatpush.bf16.msra.mxu3 %v5840_v9  ;;  %v5763_v9 = vld [vmem:[%s12176_s2 + $0x3e8] sm:$0xf]  ;;  %v6032_v12 = vor.u32 %v7860_v62, %v6029_v63  ;;  %v7719_v43 = vld [vmem:[%s12176_s2 + $0x194] sm:$0xf0] }
  0x54   :  { %1412 = vmatpush.bf16.msrb.mxu2 %v5984_v2  ;;  %1375 = vmatpush.bf16.msra.mxu0 %v5568_v16  ;;  %v7828_v2 = vld [vmem:[%s12176_s2 + $0x504] sm:$0xf]  ;;  %v5491_v16 = vld [vmem:[%s12176_s2 + $0x1c8] sm:$0xf]  ;;  %v5764_v19 = vor.u32 %v7795_v10, %v5763_v9  ;;  %v7751_v49 = vld [vmem:[%s12176_s2 + $0x294] sm:$0xf0] }
  0x55   :  { %1388 = vmatpush.bf16.msra.mxu1 %v5696_v17  ;;  %v7727_v17 = vld [vmem:[%s12176_s2 + $0x1d4] sm:$0xf0]  ;;  %v5459_v42 = vld [vmem:[%s12176_s2 + $0x188] sm:$0xf] }
  0x56   :  { %v5492_v25 = vor.u32 %v7727_v17, %v5491_v16  ;;  %v5587_v47 = vld [vmem:[%s12176_s2 + $0x288] sm:$0xf]  ;;  %v7783_v52 = vld [vmem:[%s12176_s2 + $0x394] sm:$0xf0]  ;;  %v5460_v53 = vor.u32 %v7719_v43, %v5459_v42 }
  0x57   :  { %1401 = vmatpush.bf16.msra.mxu3 %v5824_v21  ;;  %v5364_v21 = vor.u32 %v7695_v14, %v5363_v13  ;;  %v5315_v54 = vld [vmem:[%s12176_s2 + $0x68] sm:$0xf]  ;;  %v7715_v59 = vld [vmem:[%s12176_s2 + $0x174] sm:$0xf0] }
  0x58   :  { %1413 = vmatpush.bf16.msrb.mxu2 %v5968_v15  ;;  %1376 = vmatpush.bf16.msra.mxu0 %v5552_v28  ;;  %v5904_v15 = vor.u32 %v7828_v2, %v5901_v3  ;;  %v5475_v28 = vld [vmem:[%s12176_s2 + $0x1a8] sm:$0xf]  ;;  %v5316_v63 = vor.u32 %v7683_v56, %v5315_v54  ;;  %v7779_v2 = vld [vmem:[%s12176_s2 + $0x374] sm:$0xf0] }
  0x59   :  { %1389 = vmatpush.bf16.msra.mxu1 %v5680_v29  ;;  %v7723_v29 = vld [vmem:[%s12176_s2 + $0x1b4] sm:$0xf0]  ;;  %v5443_v58 = vld [vmem:[%s12176_s2 + $0x168] sm:$0xf] }
  0x5a   :  { %v5476_v39 = vor.u32 %v7723_v29, %v5475_v28  ;;  %v5571_v62 = vld [vmem:[%s12176_s2 + $0x268] sm:$0xf]  ;;  %v5444_v3 = vor.u32 %v7715_v59, %v5443_v58  ;;  %v7711_v8 = vld [vmem:[%s12176_s2 + $0x154] sm:$0xf0] }
  0x5b   :  { %1402 = vmatpush.bf16.msra.mxu3 %v5808_v34  ;;  %v5299_v4 = vld [vmem:[%s12176_s2 + $0x48] sm:$0xf]  ;;  %v7743_v13 = vld [vmem:[%s12176_s2 + $0x254] sm:$0xf0] }
  0x5c   :  { %1414 = vmatpush.bf16.msrb.mxu2 %v5952_v27  ;;  %1377 = vmatpush.bf16.msra.mxu0 %v5536_v44  ;;  %v7691_v27 = vld [vmem:[%s12176_s2 + $0xb4] sm:$0xf0]  ;;  %v5604_v44 = vor.u32 %v7755_v36, %v5603_v33  ;;  %v5683_v14 = vld [vmem:[%s12176_s2 + $0x348] sm:$0xf] }
  0x5d   :  { %1390 = vmatpush.bf16.msra.mxu1 %v5664_v46  ;;  %v5348_v34 = vor.u32 %v7691_v27, %v5347_v26  ;;  %v5732_v46 = vor.u32 %v7787_v38, %v5731_v37  ;;  %v5283_v17 = vld [vmem:[%s12176_s2 + $0x28] sm:$0xf]  ;;  %v7707_v20 = vld [vmem:[%s12176_s2 + $0x134] sm:$0xf0] }
  0x5e   :  { %v5539_v23 = vld [vmem:[%s12176_s2 + $0x228] sm:$0xf]  ;;  %v7739_v24 = vld [vmem:[%s12176_s2 + $0x234] sm:$0xf0] }
  0x5f   :  { %1403 = vmatpush.bf16.msra.mxu3 %v5792_v50  ;;  %v5715_v50 = vld [vmem:[%s12176_s2 + $0x388] sm:$0xf]  ;;  %v7771_v27 = vld [vmem:[%s12176_s2 + $0x334] sm:$0xf0]  ;;  %v5540_v38 = vor.u32 %v7739_v24, %v5539_v23 }
  0x60   :  { %1415 = vmatpush.bf16.msrb.mxu2 %v5936_v41  ;;  %1378 = vmatpush.bf16.msra.mxu0 %v5520_v0  ;;  %v7687_v41 = vld [vmem:[%s12176_s2 + $0x94] sm:$0xf0]  ;;  %v5716_v61 = vor.u32 %v7783_v52, %v5715_v50  ;;  %v5667_v26 = vld [vmem:[%s12176_s2 + $0x328] sm:$0xf]  ;;  %v5381_v50 = vld [vmem:[%s12176_s2 + $0xf8] sm:$0xf0] }
  0x61   :  { %1391 = vmatpush.bf16.msra.mxu1 %v5648_v1  ;;  %v5332_v48 = vor.u32 %v7687_v41, %v5331_v40  ;;  %v7747_v0 = vld [vmem:[%s12176_s2 + $0x274] sm:$0xf0]  ;;  %v5699_v1 = vld [vmem:[%s12176_s2 + $0x368] sm:$0xf] }
  0x62   :  { %v5572_v9 = vor.u32 %v7747_v0, %v5571_v62  ;;  %v5700_v10 = vor.u32 %v7779_v2, %v5699_v1  ;;  %v5267_v28 = vld [vmem:[%s12176_s2 + $0x8] sm:$0xf]  ;;  %v7703_v33 = vld [vmem:[%s12176_s2 + $0x114] sm:$0xf0]  ;;  %v7729_v1 = vld [vmem:[%s12176_s2 + $0x1ec] sm:$0xf] }
  0x63   :  { %1404 = vmatpush.bf16.msra.mxu3 %v5776_v5  ;;  %1379 = vmatmul.bf16.vlgmr.msra.gmra.mxu0 %v8624_v51  ;;  %v7679_v5 = vld [vmem:[%s12176_s2 + $0x54] sm:$0xf0]  ;;  %v6019_v37 = vld [vmem:[%s12176_s2 + $0x5e8] sm:$0xf]  ;;  %v5509_v2 = vld [vmem:[%s12176_s2 + $0x1f8] sm:$0xf0] }
  0x64   :  { %1416 = vmatpush.bf16.msrb.mxu2 %v5920_v60  ;;  %1430 = vmatpush.bf16.msrb.mxu0 %v6032_v12  ;;  %v5588_v60 = vor.u32 %v7751_v49, %v5587_v47  ;;  %v5300_v12 = vor.u32 %v7679_v5, %v5299_v4  ;;  %v7827_v36 = vld [vmem:[%s12176_s2 + $0x4f4] sm:$0xf0]  ;;  %v5523_v41 = vld [vmem:[%s12176_s2 + $0x208] sm:$0xf]  ;;  %v7697_v47 = vld [vmem:[%s12176_s2 + $0xec] sm:$0xf] }
  0x65   :  { %1436 = vmatpush.bf16.msrb.mxu1 %v5380_v6  ;;  %v5427_v6 = vld [vmem:[%s12176_s2 + $0x148] sm:$0xf]  ;;  %v7859_v40 = vld [vmem:[%s12176_s2 + $0x5f4] sm:$0xf0]  ;;  %v7693_v4 = vld [vmem:[%s12176_s2 + $0xcc] sm:$0xf] }
  0x66   :  { %1405 = vmatmul.bf16.vlgmr.msra.gmra.mxu3 %v8838_v30  ;;  %1392 = vmatmul.bf16.vlgmr.msra.gmra.mxu1 %v8637_v57  ;;  %v5428_v16 = vor.u32 %v7711_v8, %v5427_v6  ;;  %v7735_v42 = vld [vmem:[%s12176_s2 + $0x214] sm:$0xf0]  ;;  %v6035_v52 = vld [vmem:[%s12176_s2 + $0x608] sm:$0xf]  ;;  %v6020_v54 = vor.u32 %v7859_v40, %v6019_v37  ;;  %v5365_v5 = vld [vmem:[%s12176_s2 + $0xd8] sm:$0xf0] }
  0x67   :  { %1449 = vmatpush.bf16.msrb.mxu3 %v5508_v11  ;;  %v5555_v11 = vld [vmem:[%s12176_s2 + $0x248] sm:$0xf]  ;;  %v7823_v58 = vld [vmem:[%s12176_s2 + $0x4d4] sm:$0xf0]  ;;  %v5524_v59 = vor.u32 %v7735_v42, %v5523_v41  ;;  %v7717_v40 = vld [vmem:[%s12176_s2 + $0x18c] sm:$0xf] }
  0x68   :  { %1417 = vmatpush.bf16.msrb.mxu2 %v5904_v15  ;;  %1462 = vmatpush.bf16.msra.mxu0 %v5636_v18  ;;  %v7775_v15 = vld [vmem:[%s12176_s2 + $0x354] sm:$0xf0]  ;;  %v5875_v56 = vld [vmem:[%s12176_s2 + $0x4c8] sm:$0xf]  ;;  %v5461_v41 = vld [vmem:[%s12176_s2 + $0x198] sm:$0xf0] }
  0x69   :  { %1437 = vmatpush.bf16.msrb.mxu1 %v5364_v21  ;;  %v7675_v18 = vld [vmem:[%s12176_s2 + $0x34] sm:$0xf0]  ;;  %v5556_v21 = vor.u32 %v7743_v13, %v5555_v11  ;;  %v5684_v22 = vor.u32 %v7775_v15, %v5683_v14  ;;  %v5859_v8 = vld [vmem:[%s12176_s2 + $0x4a8] sm:$0xf]  ;;  %v5368_v13 = vor.u32 %v7693_v4, %v5365_v5  ;;  %v7725_v14 = vld [vmem:[%s12176_s2 + $0x1cc] sm:$0xf] }
  0x6a   :  { %v7855_v62 = vld [vmem:[%s12176_s2 + $0x5d4] sm:$0xf0]  ;;  %v5987_v11 = vld [vmem:[%s12176_s2 + $0x5a8] sm:$0xf]  ;;  %v5493_v15 = vld [vmem:[%s12176_s2 + $0x1d8] sm:$0xf0] }
  0x6b   :  { %1450 = vmatpush.bf16.msrb.mxu3 %v5492_v25  ;;  %1418 = vmatmul.bf16.vlgmr.msrb.gmra.mxu2 %v8849_v35  ;;  %v5284_v25 = vor.u32 %v7675_v18, %v5283_v17  ;;  %v7689_v17 = vld [vmem:[%s12176_s2 + $0xac] sm:$0xf]  ;;  %v5349_v18 = vld [vmem:[%s12176_s2 + $0xb8] sm:$0xf0]  ;;  %v5971_v23 = vld [vmem:[%s12176_s2 + $0x588] sm:$0xf] }
  0x6c   :  { %1475 = vmatpush.bf16.msra.mxu2 %v5764_v19  ;;  %1463 = vmatpush.bf16.msra.mxu0 %v5620_v31  ;;  %v5411_v19 = vld [vmem:[%s12176_s2 + $0x128] sm:$0xf]  ;;  %v7671_v31 = vld [vmem:[%s12176_s2 + $0x14] sm:$0xf0]  ;;  %v7709_v4 = vld [vmem:[%s12176_s2 + $0x14c] sm:$0xf] }
  0x6d   :  { %1438 = vmatpush.bf16.msrb.mxu1 %v5348_v34  ;;  %v5412_v29 = vor.u32 %v7707_v20, %v5411_v19  ;;  %v5891_v34 = vld [vmem:[%s12176_s2 + $0x4e8] sm:$0xf]  ;;  %v5268_v43 = vor.u32 %v7671_v31, %v5267_v28  ;;  %v7847_v24 = vld [vmem:[%s12176_s2 + $0x594] sm:$0xf0]  ;;  %v5333_v31 = vld [vmem:[%s12176_s2 + $0x98] sm:$0xf0] }
  0x6e   :  { %v5892_v49 = vor.u32 %v7827_v36, %v5891_v34  ;;  %v5843_v20 = vld [vmem:[%s12176_s2 + $0x488] sm:$0xf]  ;;  %v7811_v34 = vld [vmem:[%s12176_s2 + $0x474] sm:$0xf0]  ;;  %v5429_v5 = vld [vmem:[%s12176_s2 + $0x158] sm:$0xf0] }
  0x6f   :  { %1451 = vmatpush.bf16.msrb.mxu3 %v5476_v39  ;;  %v5668_v39 = vor.u32 %v7771_v27, %v5667_v26  ;;  %v7721_v26 = vld [vmem:[%s12176_s2 + $0x1ac] sm:$0xf]  ;;  %v5477_v27 = vld [vmem:[%s12176_s2 + $0x1b8] sm:$0xf0]  ;;  %v5955_v37 = vld [vmem:[%s12176_s2 + $0x568] sm:$0xf] }
  0x70   :  { %1476 = vmatpush.bf16.msra.mxu2 %v5748_v32  ;;  %1464 = vmatpush.bf16.msra.mxu0 %v5604_v44  ;;  %v5395_v32 = vld [vmem:[%s12176_s2 + $0x108] sm:$0xf]  ;;  %v5480_v36 = vor.u32 %v7721_v26, %v5477_v27 }
  0x71   :  { %1439 = vmatpush.bf16.msrb.mxu1 %v5332_v48  ;;  %v5651_v44 = vld [vmem:[%s12176_s2 + $0x308] sm:$0xf]  ;;  %v5396_v48 = vor.u32 %v7703_v33, %v5395_v32  ;;  %v5972_v32 = vor.u32 %v7847_v24, %v5971_v23  ;;  %v7669_v24 = vld [vmem:[%s12176_s2 + $0xc] sm:$0xf] }
  0x72   :  { %v5827_v33 = vld [vmem:[%s12176_s2 + $0x468] sm:$0xf] }
  0x73   :  { %1452 = vmatpush.bf16.msrb.mxu3 %v5460_v53  ;;  %6042 = vmatmul.msk.bf16.vlgmr.msrb.gmra.mxu0 %vm1250_vm0, %v8747_v45  ;;  %v7863_v53 = vld [vmem:[%s12176_s2 + $0x614] sm:$0xf0]  ;;  %v5828_v42 = vor.u32 %v7811_v34, %v5827_v33  ;;  %v7757_v33 = vld [vmem:[%s12176_s2 + $0x2cc] sm:$0xf]  ;;  %v5621_v34 = vld [vmem:[%s12176_s2 + $0x2d8] sm:$0xf0] }
  0x74   :  { %1477 = vmatpush.bf16.msra.mxu2 %v5732_v46  ;;  %1465 = vmatpush.bf16.msra.mxu0 %v5588_v60  ;;  %v7767_v46 = vld [vmem:[%s12176_s2 + $0x314] sm:$0xf0]  ;;  %v6036_v0 = vor.u32 %v7863_v53, %v6035_v52 }
  0x75   :  { %1440 = vmatpush.bf16.msrb.mxu1 %v5316_v63  ;;  %v5652_v60 = vor.u32 %v7767_v46, %v5651_v44  ;;  %v5384_v63 = vor.u32 %v7697_v47, %v5381_v50  ;;  %v5317_v44 = vld [vmem:[%s12176_s2 + $0x78] sm:$0xf0]  ;;  %v5811_v47 = vld [vmem:[%s12176_s2 + $0x448] sm:$0xf]  ;;  %v7839_v52 = vld [vmem:[%s12176_s2 + $0x554] sm:$0xf0] }
  0x76   :  { %v5939_v50 = vld [vmem:[%s12176_s2 + $0x548] sm:$0xf] }
  0x77   :  { %1453 = vmatpush.bf16.msrb.mxu3 %v5444_v3  ;;  %v5876_v3 = vor.u32 %v7823_v58, %v5875_v56  ;;  %v5445_v56 = vld [vmem:[%s12176_s2 + $0x178] sm:$0xf0] }
  0x78   :  { %1478 = vmatpush.bf16.msra.mxu2 %v5716_v61  ;;  %1466 = vmatpush.bf16.msra.mxu0 %v5572_v9  ;;  %v6003_v61 = vld [vmem:[%s12176_s2 + $0x5c8] sm:$0xf]  ;;  %v7819_v9 = vld [vmem:[%s12176_s2 + $0x4b4] sm:$0xf0] }
  0x79   :  { %1441 = vmatpush.bf16.msrb.mxu1 %v5300_v12  ;;  %v6004_v6 = vor.u32 %v7855_v62, %v6003_v61  ;;  %v7851_v12 = vld [vmem:[%s12176_s2 + $0x5b4] sm:$0xf0]  ;;  %v5940_v61 = vor.u32 %v7839_v52, %v5939_v50  ;;  %v5795_v62 = vld [vmem:[%s12176_s2 + $0x428] sm:$0xf]  ;;  %v7753_v50 = vld [vmem:[%s12176_s2 + $0x2ac] sm:$0xf] }
  0x7a   :  { %v5988_v19 = vor.u32 %v7851_v12, %v5987_v11  ;;  %v7799_v12 = vld [vmem:[%s12176_s2 + $0x414] sm:$0xf0]  ;;  %v5605_v52 = vld [vmem:[%s12176_s2 + $0x2b8] sm:$0xf0] }
  0x7b   :  { %1454 = vmatpush.bf16.msrb.mxu3 %v5428_v16  ;;  %v5860_v16 = vor.u32 %v7819_v9, %v5859_v8  ;;  %v7673_v8 = vld [vmem:[%s12176_s2 + $0x2c] sm:$0xf]  ;;  %v5285_v9 = vld [vmem:[%s12176_s2 + $0x38] sm:$0xf0] }
  0x7c   :  { %1479 = vmatpush.bf16.msra.mxu2 %v5700_v10  ;;  %1467 = vmatpush.bf16.msra.mxu0 %v5556_v21  ;;  %v5512_v10 = vor.u32 %v7729_v1, %v5509_v2  ;;  %v7815_v21 = vld [vmem:[%s12176_s2 + $0x494] sm:$0xf0]  ;;  %v5923_v1 = vld [vmem:[%s12176_s2 + $0x528] sm:$0xf] }
  0x7d   :  { %1442 = vmatpush.bf16.msrb.mxu1 %v5284_v25  ;;  %v5352_v25 = vor.u32 %v7689_v17, %v5349_v18  ;;  %v5844_v28 = vor.u32 %v7815_v21, %v5843_v20  ;;  %v7835_v2 = vld [vmem:[%s12176_s2 + $0x534] sm:$0xf0]  ;;  %v5637_v17 = vld [vmem:[%s12176_s2 + $0x2f8] sm:$0xf0]  ;;  %v7793_v18 = vld [vmem:[%s12176_s2 + $0x3ec] sm:$0xf] }
  0x7e   :  { %v5924_v11 = vor.u32 %v7835_v2, %v5923_v1  ;;  %v5765_v20 = vld [vmem:[%s12176_s2 + $0x3f8] sm:$0xf0]  ;;  %v7705_v21 = vld [vmem:[%s12176_s2 + $0x12c] sm:$0xf] }
  0x7f   :  { %1455 = vmatpush.bf16.msrb.mxu3 %v5412_v29  ;;  %v7685_v29 = vld [vmem:[%s12176_s2 + $0x8c] sm:$0xf]  ;;  %v5589_v2 = vld [vmem:[%s12176_s2 + $0x298] sm:$0xf0] }
  0x80   :  { %1480 = vmatpush.bf16.msra.mxu2 %v5684_v22  ;;  %1468 = vmatpush.bf16.msra.mxu0 %v5540_v38  ;;  %v5496_v22 = vor.u32 %v7725_v14, %v5493_v15  ;;  %v7843_v38 = vld [vmem:[%s12176_s2 + $0x574] sm:$0xf0]  ;;  %v5432_v15 = vor.u32 %v7709_v4, %v5429_v5  ;;  %v7749_v1 = vld [vmem:[%s12176_s2 + $0x28c] sm:$0xf]  ;;  %v5717_v5 = vld [vmem:[%s12176_s2 + $0x398] sm:$0xf0] }
  0x81   :  { %1443 = vmatpush.bf16.msrb.mxu1 %v5268_v43  ;;  %v7681_v43 = vld [vmem:[%s12176_s2 + $0x6c] sm:$0xf]  ;;  %v5956_v46 = vor.u32 %v7843_v38, %v5955_v37  ;;  %v7831_v14 = vld [vmem:[%s12176_s2 + $0x514] sm:$0xf0]  ;;  %v5749_v38 = vld [vmem:[%s12176_s2 + $0x3d8] sm:$0xf0] }
  0x82   :  { %v5320_v53 = vor.u32 %v7681_v43, %v5317_v44  ;;  %v6021_v43 = vld [vmem:[%s12176_s2 + $0x5f8] sm:$0xf0]  ;;  %v5624_v44 = vor.u32 %v7757_v33, %v5621_v34  ;;  %v7781_v4 = vld [vmem:[%s12176_s2 + $0x38c] sm:$0xf] }
  0x83   :  { %1456 = vmatpush.bf16.msrb.mxu3 %v5396_v48  ;;  %v7807_v48 = vld [vmem:[%s12176_s2 + $0x454] sm:$0xf0]  ;;  %v7841_v33 = vld [vmem:[%s12176_s2 + $0x56c] sm:$0xf]  ;;  %v5957_v34 = vld [vmem:[%s12176_s2 + $0x578] sm:$0xf0] }
  0x84   :  { %1481 = vmatpush.bf16.msra.mxu2 %v5668_v39  ;;  %1469 = vmatpush.bf16.msra.mxu0 %v5524_v59  ;;  %v5336_v39 = vor.u32 %v7685_v29, %v5333_v31  ;;  %v5812_v58 = vor.u32 %v7807_v48, %v5811_v47  ;;  %v7677_v59 = vld [vmem:[%s12176_s2 + $0x4c] sm:$0xf]  ;;  %v5893_v29 = vld [vmem:[%s12176_s2 + $0x4f8] sm:$0xf0]  ;;  %v5768_v31 = vor.u32 %v7793_v18, %v5765_v20 }
  0x85   :  { %1488 = vmatpush.bf16.msra.mxu1 %v5892_v49  ;;  %v5464_v49 = vor.u32 %v7717_v40, %v5461_v41  ;;  %v5397_v40 = vld [vmem:[%s12176_s2 + $0x118] sm:$0xf0] }
  0x86   :  { %1457 = vmatmul.bf16.vlgmr.msrb.gmra.mxu3 %v8668_v7  ;;  %1444 = vmatmul.bf16.vlgmr.msrb.gmra.mxu1 %v8635_v55  ;;  %v5877_v47 = vld [vmem:[%s12176_s2 + $0x4d8] sm:$0xf0] }
  0x87   :  { %1501 = vmatpush.bf16.msra.mxu3 %v6020_v54  ;;  %1470 = vmatmul.bf16.vlgmr.msra.gmra.mxu0 %v8624_v51  ;;  %v7713_v54 = vld [vmem:[%s12176_s2 + $0x16c] sm:$0xf]  ;;  %v5973_v20 = vld [vmem:[%s12176_s2 + $0x598] sm:$0xf0] }
  0x88   :  { %1482 = vmatpush.bf16.msra.mxu2 %v5652_v60  ;;  %1521 = vmatpush.bf16.msrb.mxu0 %v6036_v0  ;;  %v5301_v60 = vld [vmem:[%s12176_s2 + $0x58] sm:$0xf0]  ;;  %v5448_v0 = vor.u32 %v7713_v54, %v5445_v56  ;;  %v7785_v54 = vld [vmem:[%s12176_s2 + $0x3ac] sm:$0xf] }
  0x89   :  { %1489 = vmatpush.bf16.msra.mxu1 %v5876_v3  ;;  %v5304_v3 = vor.u32 %v7677_v59, %v5301_v60  ;;  %v5733_v56 = vld [vmem:[%s12176_s2 + $0x3b8] sm:$0xf0]  ;;  %v7853_v59 = vld [vmem:[%s12176_s2 + $0x5cc] sm:$0xf] }
  0x8a   :  { %v6005_v60 = vld [vmem:[%s12176_s2 + $0x5d8] sm:$0xf0] }
  0x8b   :  { %1502 = vmatpush.bf16.msra.mxu3 %v6004_v6  ;;  %1483 = vmatmul.bf16.vlgmr.msra.gmra.mxu2 %v8637_v57 }
  0x8c   :  { %1527 = vmatpush.bf16.msrb.mxu2 %v5384_v63  ;;  %1540 = vmatpush.bf16.msra.mxu0 %v5512_v10  ;;  %v7803_v63 = vld [vmem:[%s12176_s2 + $0x434] sm:$0xf0]  ;;  %v5779_v10 = vld [vmem:[%s12176_s2 + $0x408] sm:$0xf] }
  0x8d   :  { %1490 = vmatpush.bf16.msra.mxu1 %v5860_v16  ;;  %v5796_v6 = vor.u32 %v7803_v63, %v5795_v62  ;;  %v7761_v16 = vld [vmem:[%s12176_s2 + $0x2ec] sm:$0xf]  ;;  %v5780_v23 = vor.u32 %v7799_v12, %v5779_v10  ;;  %v5861_v63 = vld [vmem:[%s12176_s2 + $0x4b8] sm:$0xf0]  ;;  %v5592_v10 = vor.u32 %v7749_v1, %v5589_v2  ;;  %v5720_v12 = vor.u32 %v7781_v4, %v5717_v5  ;;  %v6159_v1 = vld [vmem:[%s12179_s4 + $0xe0] sm:$0xf] }
  0x8e   :  { %v5640_v27 = vor.u32 %v7761_v16, %v5637_v17  ;;  %v7817_v62 = vld [vmem:[%s12176_s2 + $0x4ac] sm:$0xf]  ;;  %v6037_v4 = vld [vmem:[%s12176_s2 + $0x618] sm:$0xf0] }
  0x8f   :  { %1503 = vmatpush.bf16.msra.mxu3 %v5988_v19  ;;  %v5288_v19 = vor.u32 %v7673_v8, %v5285_v9  ;;  %v7849_v8 = vld [vmem:[%s12176_s2 + $0x5ac] sm:$0xf]  ;;  %v5989_v9 = vld [vmem:[%s12176_s2 + $0x5b8] sm:$0xf0] }
  0x90   :  { %1528 = vmatpush.bf16.msrb.mxu2 %v5368_v13  ;;  %1541 = vmatpush.bf16.msra.mxu0 %v5496_v22  ;;  %v5907_v13 = vld [vmem:[%s12176_s2 + $0x508] sm:$0xf]  ;;  %v5413_v22 = vld [vmem:[%s12176_s2 + $0x138] sm:$0xf0]  ;;  %v7777_v16 = vld [vmem:[%s12176_s2 + $0x36c] sm:$0xf] }
  0x91   :  { %1491 = vmatpush.bf16.msra.mxu1 %v5844_v28  ;;  %v5908_v26 = vor.u32 %v7831_v14, %v5907_v13  ;;  %v7825_v28 = vld [vmem:[%s12176_s2 + $0x4ec] sm:$0xf]  ;;  %v5573_v14 = vld [vmem:[%s12176_s2 + $0x278] sm:$0xf0] }
  0x92   :  { %v5896_v41 = vor.u32 %v7825_v28, %v5893_v29  ;;  %v7745_v13 = vld [vmem:[%s12176_s2 + $0x26c] sm:$0xf] }
  0x93   :  { %1504 = vmatpush.bf16.msra.mxu3 %v5972_v32  ;;  %v5416_v32 = vor.u32 %v7705_v21, %v5413_v22  ;;  %v5576_v21 = vor.u32 %v7745_v13, %v5573_v14  ;;  %v7809_v22 = vld [vmem:[%s12176_s2 + $0x46c] sm:$0xf] }
  0x94   :  { %1529 = vmatpush.bf16.msrb.mxu2 %v5352_v25  ;;  %1542 = vmatpush.bf16.msra.mxu0 %v5480_v36  ;;  %v5269_v25 = vld [vmem:[%s12176_s2 + $0x18] sm:$0xf0]  ;;  %v7789_v36 = vld [vmem:[%s12176_s2 + $0x3cc] sm:$0xf] }
  0x95   :  { %1492 = vmatpush.bf16.msra.mxu1 %v5828_v42  ;;  %v5272_v37 = vor.u32 %v7669_v24, %v5269_v25  ;;  %v7857_v42 = vld [vmem:[%s12176_s2 + $0x5ec] sm:$0xf]  ;;  %v5752_v48 = vor.u32 %v7789_v36, %v5749_v38 }
  0x96   :  { %v7741_v25 = vld [vmem:[%s12176_s2 + $0x24c] sm:$0xf] }
  0x97   :  { %1505 = vmatpush.bf16.msra.mxu3 %v5956_v46  ;;  %6043 = vmatmul.msk.bf16.vlgmr.msrb.gmra.mxu0 %vm1250_vm0, %v8747_v45  ;;  %v7821_v46 = vld [vmem:[%s12176_s2 + $0x4cc] sm:$0xf] }
  0x98   :  { %1530 = vmatpush.bf16.msrb.mxu2 %v5336_v39  ;;  %1543 = vmatpush.bf16.msra.mxu0 %v5464_v49  ;;  %v7701_v39 = vld [vmem:[%s12176_s2 + $0x10c] sm:$0xf] }
  0x99   :  { %1493 = vmatpush.bf16.msra.mxu1 %v5812_v58  ;;  %v5400_v49 = vor.u32 %v7701_v39, %v5397_v40  ;;  %v5880_v58 = vor.u32 %v7821_v46, %v5877_v47  ;;  %v7773_v29 = vld [vmem:[%s12176_s2 + $0x34c] sm:$0xf]  ;;  %v5813_v39 = vld [vmem:[%s12176_s2 + $0x458] sm:$0xf0] }
  0x9a   :  { %v7805_v38 = vld [vmem:[%s12176_s2 + $0x44c] sm:$0xf]  ;;  %v5669_v47 = vld [vmem:[%s12176_s2 + $0x338] sm:$0xf0] }
  0x9b   :  { %1506 = vmatpush.bf16.msra.mxu3 %v5940_v61  ;;  %v5608_v61 = vor.u32 %v7753_v50, %v5605_v52  ;;  %v7769_v46 = vld [vmem:[%s12176_s2 + $0x32c] sm:$0xf]  ;;  %v5941_v52 = vld [vmem:[%s12176_s2 + $0x558] sm:$0xf0] }
  0x9c   :  { %1531 = vmatpush.bf16.msrb.mxu2 %v5320_v53  ;;  %1544 = vmatpush.bf16.msra.mxu0 %v5448_v0  ;;  %v6024_v53 = vor.u32 %v7857_v42, %v6021_v43  ;;  %v5736_v0 = vor.u32 %v7785_v54, %v5733_v56  ;;  %v7737_v42 = vld [vmem:[%s12176_s2 + $0x22c] sm:$0xf]  ;;  %v5541_v43 = vld [vmem:[%s12176_s2 + $0x238] sm:$0xf0] }
  0x9d   :  { %1494 = vmatpush.bf16.msra.mxu1 %v5796_v6  ;;  %v5864_v6 = vor.u32 %v7817_v62, %v5861_v63  ;;  %v7837_v50 = vld [vmem:[%s12176_s2 + $0x54c] sm:$0xf]  ;;  %v5544_v54 = vor.u32 %v7737_v42, %v5541_v43  ;;  %v5653_v63 = vld [vmem:[%s12176_s2 + $0x318] sm:$0xf0]  ;;  %v7882_v42 = vld [vmem:[%s12179_s4 + $0x8c] sm:$0xf0] }
  0x9e   :  { %v7801_v56 = vld [vmem:[%s12176_s2 + $0x42c] sm:$0xf] }
  0x9f   :  { %1507 = vmatpush.bf16.msra.mxu3 %v5924_v11  ;;  %v7813_v11 = vld [vmem:[%s12176_s2 + $0x48c] sm:$0xf] }
  0xa0   :  { %1532 = vmatpush.bf16.msrb.mxu2 %v5304_v3  ;;  %1545 = vmatpush.bf16.msra.mxu0 %v5432_v15  ;;  %v6008_v3 = vor.u32 %v7853_v59, %v6005_v60  ;;  %v5992_v15 = vor.u32 %v7849_v8, %v5989_v9  ;;  %v7733_v59 = vld [vmem:[%s12176_s2 + $0x20c] sm:$0xf]  ;;  %v5672_v60 = vor.u32 %v7769_v46, %v5669_v47  ;;  %v5925_v9 = vld [vmem:[%s12176_s2 + $0x538] sm:$0xf0]  ;;  %v6095_v46 = vld [vmem:[%s12179_s4 + $0x60] sm:$0xf] }
  0xa1   :  { %1495 = vmatpush.bf16.msra.mxu1 %v5780_v23  ;;  %v5829_v23 = vld [vmem:[%s12176_s2 + $0x478] sm:$0xf0]  ;;  %v9545_v28 = vpop.f32.mrf.mxu1  ;;  %v7765_v62 = vld [vmem:[%s12176_s2 + $0x30c] sm:$0xf] }
  0xa2   :  { %v7833_v8 = vld [vmem:[%s12176_s2 + $0x52c] sm:$0xf]  ;;  %v5656_v14 = vor.u32 %v7765_v62, %v5653_v63  ;;  %v7910_v62 = vld [vmem:[%s12179_s4 + $0x16c] sm:$0xf0] }
  0xa3   :  { %1508 = vmatpush.bf16.msra.mxu3 %v5908_v26  ;;  %v5557_v26 = vld [vmem:[%s12176_s2 + $0x258] sm:$0xf0] }
  0xa4   :  { %1533 = vmatpush.bf16.msrb.mxu2 %v5288_v19  ;;  %1546 = vmatpush.bf16.msra.mxu0 %v5416_v32  ;;  %v9525_v17 = vpop.f32.mrf.mxu0  ;;  %v7845_v19 = vld [vmem:[%s12176_s2 + $0x58c] sm:$0xf]  ;;  %v5832_v32 = vor.u32 %v7809_v22, %v5829_v23  ;;  %v6287_v22 = vld [vmem:[%s12179_s4 + $0x1e0] sm:$0xf]  ;;  %v7926_v23 = vld [vmem:[%s12179_s4 + $0x1ec] sm:$0xf0] }
  0xa5   :  { %1553 = vmatpush.bf16.msrb.mxu1 %v5640_v27  ;;  %v5976_v27 = vor.u32 %v7845_v19, %v5973_v20  ;;  %v6143_v19 = vld [vmem:[%s12179_s4 + $0xc0] sm:$0xf] }
  0xa6   :  { %1496 = vmatmul.bf16.vlgmr.msra.gmra.mxu1 %v8838_v30  ;;  %1509 = vmatmul.bf16.vlgmr.msra.gmra.mxu3 %v8849_v35 }
  0xa7   :  { %1566 = vmatpush.bf16.msrb.mxu3 %v5768_v31  ;;  %v5685_v31 = vld [vmem:[%s12176_s2 + $0x358] sm:$0xf0] }
  0xa8   :  { %1534 = vmatpush.bf16.msrb.mxu2 %v5272_v37  ;;  %1547 = vmatpush.bf16.msra.mxu0 %v5400_v49  ;;  %v5560_v37 = vor.u32 %v7741_v25, %v5557_v26  ;;  %v5688_v40 = vor.u32 %v7773_v29, %v5685_v31  ;;  %v5816_v49 = vor.u32 %v7805_v38, %v5813_v39  ;;  %v5909_v25 = vld [vmem:[%s12176_s2 + $0x518] sm:$0xf0]  ;;  %v6127_v31 = vld [vmem:[%s12179_s4 + $0xa0] sm:$0xf] }
  0xa9   :  { %1554 = vmatpush.bf16.msrb.mxu1 %v5624_v44  ;;  %v9559_v36 = vpop.f32.mrf.mxu2  ;;  %v5960_v44 = vor.u32 %v7841_v33, %v5957_v34  ;;  %v1278_v2 = vpop.f32.mrf.mxu1  ;;  %v6288_v26 = vor.u32 %v7926_v23, %v6287_v22  ;;  %v7886_v33 = vld [vmem:[%s12179_s4 + $0xac] sm:$0xf0]  ;;  %v6175_v22 = vld [vmem:[%s12179_s4 + $0x100] sm:$0xf] }
  0xaa   :  { %v7922_v34 = vld [vmem:[%s12179_s4 + $0x1cc] sm:$0xf0]  ;;  %v6128_v39 = vor.u32 %v7886_v33, %v6127_v31  ;;  %v7884_v33 = vld [vmem:[%s12179_s4 + $0xa4] sm:$0xf] }
  0xab   :  { %1567 = vmatpush.bf16.msrb.mxu3 %v5752_v48  ;;  %1535 = vmatmul.bf16.vlgmr.msrb.gmra.mxu2 %v8635_v55  ;;  %v5845_v55 = vld [vmem:[%s12176_s2 + $0x498] sm:$0xf0]  ;;  %v7870_v2 = vld [vmem:[%s12179_s4 + $0x2c] sm:$0xf0] }
  0xac   :  { %1579 = vmatpush.bf16.msra.mxu2 %v5896_v41  ;;  %1592 = vmatpush.bf16.msrb.mxu0 %v6024_v53  ;;  %v5848_v18 = vor.u32 %v7813_v11, %v5845_v55  ;;  %v9567_v41 = vpop.f32.mrf.mxu3  ;;  %v1265_v48 = vpop.f32.mrf.mxu0  ;;  %v9590_v53 = vld [vmem:[%s12178_s3] sm:$0xf]  ;;  %v7797_v55 = vld [vmem:[%s12176_s2 + $0x40c] sm:$0xf]  ;;  %v7898_v23 = vld [vmem:[%s12179_s4 + $0x10c] sm:$0xf0] }
  0xad   :  { %1555 = vmatpush.bf16.msrb.mxu1 %v5608_v61  ;;  %1548 = vmatmul.bf16.vlgmr.msra.gmra.mxu0 %v8668_v7  ;;  %v5701_v7 = vld [vmem:[%s12176_s2 + $0x378] sm:$0xf0]  ;;  %v262_v13 = vperm.slane %v9590_v53, 0  ;;  %v7878_v48 = vld [vmem:[%s12179_s4 + $0x6c] sm:$0xf0] }
  0xae   :  { %v5704_v24 = vor.u32 %v7777_v16, %v5701_v7  ;;  %v5525_v61 = vld [vmem:[%s12176_s2 + $0x218] sm:$0xf0] }
  0xaf   :  { %1568 = vmatpush.bf16.msrb.mxu3 %v5736_v0  ;;  %v5944_v0 = vor.u32 %v7837_v50, %v5941_v52  ;;  %v5528_v11 = vor.u32 %v7733_v59, %v5525_v61  ;;  %v6223_v61 = vld [vmem:[%s12179_s4 + $0x160] sm:$0xf] }
  0xb0   :  { %1580 = vmatpush.bf16.msra.mxu2 %v5880_v58  ;;  %1593 = vmatpush.bf16.msrb.mxu0 %v6008_v3  ;;  %v5797_v58 = vld [vmem:[%s12176_s2 + $0x438] sm:$0xf0]  ;;  %v7861_v3 = vld [vmem:[%s12176_s2 + $0x60c] sm:$0xf] }
  0xb1   :  { %1556 = vmatpush.bf16.msrb.mxu1 %v5592_v10  ;;  %v5800_v5 = vor.u32 %v7801_v56, %v5797_v58  ;;  %v1291_v10 = vpop.f32.mrf.mxu2  ;;  %v6096_v56 = vor.u32 %v7878_v48, %v6095_v46  ;;  %v6079_v58 = vld [vmem:[%s12179_s4 + $0x40] sm:$0xf]  ;;  %v6081_v46 = vld [vmem:[%s12179_s4 + $0x50] sm:$0xf0] }
  0xb3   :  { %1569 = vmatpush.bf16.msrb.mxu3 %v5720_v12  ;;  %v5781_v12 = vld [vmem:[%s12176_s2 + $0x418] sm:$0xf0] }
  0xb4   :  { %1581 = vmatpush.bf16.msra.mxu2 %v5864_v6  ;;  %1594 = vmatpush.bf16.msrb.mxu0 %v5992_v15  ;;  %v7894_v6 = vld [vmem:[%s12179_s4 + $0xec] sm:$0xf0]  ;;  %v6040_v15 = vor.u32 %v7861_v3, %v6037_v4  ;;  %v1304_v16 = vpop.f32.mrf.mxu3  ;;  %v5784_v20 = vor.u32 %v7797_v55, %v5781_v12 }
  0xb5   :  { %1557 = vmatpush.bf16.msrb.mxu1 %v5576_v21  ;;  %v6160_v7 = vor.u32 %v7894_v6, %v6159_v1  ;;  %v7890_v21 = vld [vmem:[%s12179_s4 + $0xcc] sm:$0xf0]  ;;  %v6161_v16 = vld [vmem:[%s12179_s4 + $0xf0] sm:$0xf0] }
  0xb6   :  { %v6144_v29 = vor.u32 %v7890_v21, %v6143_v19  ;;  %v7906_v6 = vld [vmem:[%s12179_s4 + $0x14c] sm:$0xf0] }
  0xb7   :  { %1570 = vmatpush.bf16.msrb.mxu3 %v5704_v24  ;;  %v7829_v24 = vld [vmem:[%s12176_s2 + $0x50c] sm:$0xf]  ;;  %v7866_v12 = vld [vmem:[%s12179_s4 + $0xc] sm:$0xf0] }
  0xb8   :  { %1582 = vmatpush.bf16.msra.mxu2 %v5848_v18  ;;  %1595 = vmatpush.bf16.msrb.mxu0 %v5976_v27  ;;  %v5928_v18 = vor.u32 %v7833_v8, %v5925_v9  ;;  %v1264_v27 = vadd.f32 %v9525_v17, %v262_v13  ;;  %v6271_v17 = vld [vmem:[%s12179_s4 + $0x1c0] sm:$0xf] }
  0xb9   :  { %1558 = vmatpush.bf16.msrb.mxu1 %v5560_v37  ;;  %v1341_v37 = vpop.f32.mrf.mxu2  ;;  %v6272_v38 = vor.u32 %v7922_v34, %v6271_v17  ;;  %v6191_v13 = vld [vmem:[%s12179_s4 + $0x120] sm:$0xf]  ;;  %v6129_v17 = vld [vmem:[%s12179_s4 + $0xb0] sm:$0xf0] }
  0xbb   :  { %1571 = vmatpush.bf16.msrb.mxu3 %v5688_v40  ;;  %v6111_v40 = vld [vmem:[%s12179_s4 + $0x80] sm:$0xf] }
  0xbc   :  { %1583 = vmatpush.bf16.msra.mxu2 %v5832_v32  ;;  %1596 = vmatpush.bf16.msrb.mxu0 %v5960_v44  ;;  %v5912_v32 = vor.u32 %v7829_v24, %v5909_v25  ;;  %v6112_v44 = vor.u32 %v7882_v42, %v6111_v40  ;;  %v7888_v24 = vld [vmem:[%s12179_s4 + $0xc4] sm:$0xf]  ;;  %v6145_v25 = vld [vmem:[%s12179_s4 + $0xd0] sm:$0xf0] }
  0xbd   :  { %1559 = vmatpush.bf16.msrb.mxu1 %v5544_v54  ;;  %v7876_v42 = vld [vmem:[%s12179_s4 + $0x64] sm:$0xf] }
  0xbf   :  { %1572 = vmatpush.bf16.msrb.mxu3 %v5672_v60  ;;  %v7874_v60 = vld [vmem:[%s12179_s4 + $0x4c] sm:$0xf0] }
  0xc0   :  { %1584 = vmatpush.bf16.msra.mxu2 %v5816_v49  ;;  %1597 = vmatpush.bf16.msrb.mxu0 %v5944_v0  ;;  %v1315_v47 = vpop.f32.mrf.mxu0  ;;  %v6239_v49 = vld [vmem:[%s12179_s4 + $0x180] sm:$0xf]  ;;  %v6080_v63 = vor.u32 %v7874_v60, %v6079_v58  ;;  %v7956_v58 = vld [vmem:[%s12179_s4 + $0x2e4] sm:$0xf] }
  0xc1   :  { %1560 = vmatpush.bf16.msrb.mxu1 %v5528_v11  ;;  %v1343_v50 = vpop.f32.mrf.mxu2  ;;  %v6063_v0 = vld [vmem:[%s12179_s4 + $0x20] sm:$0xf] }
  0xc2   :  { %v6047_v11 = vld [vmem:[%s12179_s4] sm:$0xf] }
  0xc3   :  { %1573 = vmatpush.bf16.msrb.mxu3 %v5656_v14  ;;  %v7902_v14 = vld [vmem:[%s12179_s4 + $0x12c] sm:$0xf0] }
  0xc4   :  { %1585 = vmatpush.bf16.msra.mxu2 %v5800_v5  ;;  %1598 = vmatpush.bf16.msrb.mxu0 %v5928_v18  ;;  %v6207_v5 = vld [vmem:[%s12179_s4 + $0x140] sm:$0xf]  ;;  %v6048_v18 = vor.u32 %v7866_v12, %v6047_v11 }
  0xc5   :  { %1612 = vmatpush.bf16.msra.mxu1 %v6040_v15  ;;  %v6208_v9 = vor.u32 %v7906_v6, %v6207_v5  ;;  %v7892_v15 = vld [vmem:[%s12179_s4 + $0xe4] sm:$0xf]  ;;  %v6295_v5 = vld [vmem:[%s12179_s4 + $0x1e8] sm:$0xf]  ;;  %v7927_v6 = vld [vmem:[%s12179_s4 + $0x1f4] sm:$0xf0] }
  0xc6   :  { %1561 = vmatmul.bf16.vlgmr.msrb.gmra.mxu1 %v8624_v51  ;;  %1574 = vmatmul.bf16.vlgmr.msrb.gmra.mxu3 %v8637_v57  ;;  %v1277_v51 = vadd.f32 %v9545_v28, %v1264_v27  ;;  %v6255_v57 = vld [vmem:[%s12179_s4 + $0x1a0] sm:$0xf]  ;;  %v7918_v28 = vld [vmem:[%s12179_s4 + $0x1ac] sm:$0xf0]  ;;  %v6296_v12 = vor.u32 %v7927_v6, %v6295_v5  ;;  %v6199_v6 = vld [vmem:[%s12179_s4 + $0x128] sm:$0xf] }
  0xc7   :  { %2239 = vmatpush.bf16.msra.mxu3 %v6160_v7  ;;  %v6192_v7 = vor.u32 %v7902_v14, %v6191_v13  ;;  %v6279_v13 = vld [vmem:[%s12179_s4 + $0x1c8] sm:$0xf]  ;;  %v7923_v14 = vld [vmem:[%s12179_s4 + $0x1d4] sm:$0xf0] }
  0xc8   :  { %1586 = vmatpush.bf16.msra.mxu2 %v5784_v20  ;;  %1599 = vmatpush.bf16.msrb.mxu0 %v5912_v32  ;;  %v1290_v43 = vadd.f32 %v9559_v36, %v1277_v51  ;;  %v7914_v36 = vld [vmem:[%s12179_s4 + $0x18c] sm:$0xf0]  ;;  %v1317_v3 = vpop.f32.mrf.mxu0  ;;  %v6164_v20 = vor.u32 %v7892_v15, %v6161_v16  ;;  %v6148_v32 = vor.u32 %v7888_v24, %v6145_v25  ;;  %v6113_v51 = vld [vmem:[%s12179_s4 + $0x90] sm:$0xf0] }
  0xc9   :  { %2252 = vmatpush.bf16.msrb.mxu1 %v6288_v26  ;;  %v6240_v52 = vor.u32 %v7914_v36, %v6239_v49  ;;  %v1354_v4 = vpop.f32.mrf.mxu3  ;;  %v6176_v26 = vor.u32 %v7898_v23, %v6175_v22  ;;  %v7868_v36 = vld [vmem:[%s12179_s4 + $0x24] sm:$0xf]  ;;  %v7954_v3 = vld [vmem:[%s12179_s4 + $0x2cc] sm:$0xf0]  ;;  %v6385_v23 = vld [vmem:[%s12179_s4 + $0x2b0] sm:$0xf0] }
  0xca   :  { %v1303_v54 = vadd.f32 %v9567_v41, %v1290_v43  ;;  %v6224_v41 = vor.u32 %v7910_v62, %v6223_v61  ;;  %v6417_v62 = vld [vmem:[%s12179_s4 + $0x2f0] sm:$0xf0] }
  0xcb   :  { %2240 = vmatpush.bf16.msra.mxu3 %v6144_v29  ;;  %1587 = vmatmul.bf16.vlgmr.msra.gmra.mxu2 %v8838_v30  ;;  %v6256_v30 = vor.u32 %v7918_v28, %v6255_v57  ;;  %v263_v29 = vperm.slane %v9590_v53, 1  ;;  %v6097_v57 = vld [vmem:[%s12179_s4 + $0x70] sm:$0xf0] }
  0xcc   :  { %1600 = vmatmul.bf16.vlgmr.msrb.gmra.mxu0 %v8849_v35  ;;  %v1328_v35 = vpop.f32.mrf.mxu1  ;;  %v1316_v59 = vadd.f32 %v1315_v47, %v1303_v54  ;;  %v6100_v43 = vor.u32 %v7876_v42, %v6097_v57  ;;  %v6415_v54 = vld [vmem:[%s12179_s4 + $0x2e0] sm:$0xf]  ;;  %v7915_v42 = vld [vmem:[%s12179_s4 + $0x194] sm:$0xf0] }
  0xcd   :  { %2253 = vmatpush.bf16.msrb.mxu1 %v6272_v38  ;;  %v1355_v34 = vadd.f32 %v1354_v4, %v263_v29  ;;  %v7880_v38 = vld [vmem:[%s12179_s4 + $0x84] sm:$0xf]  ;;  %v7919_v29 = vld [vmem:[%s12179_s4 + $0x1b4] sm:$0xf0] }
  0xce   :  { %v1329_v1 = vadd.f32 %v1328_v35, %v1316_v59  ;;  %v1367_v10 = vpop.f32.mrf.mxu2  ;;  %v6116_v40 = vor.u32 %v7880_v38, %v6113_v51  ;;  %v6065_v35 = vld [vmem:[%s12179_s4 + $0x30] sm:$0xf0]  ;;  %v7952_v4 = vld [vmem:[%s12179_s4 + $0x2c4] sm:$0xf] }
  0xcf   :  { %2241 = vmatpush.bf16.msra.mxu3 %v6128_v39  ;;  %v1368_v39 = vadd.f32 %v1367_v10, %v1355_v34  ;;  %v6401_v10 = vld [vmem:[%s12179_s4 + $0x2d0] sm:$0xf0] }
  0xd0   :  { %v1342_v55 = vadd.f32 %v1341_v37, %v1329_v1  ;;  %v6132_v37 = vor.u32 %v7884_v33, %v6129_v17  ;;  %v6420_v1 = vor.u32 %v7956_v58, %v6417_v62  ;;  %v6404_v11 = vor.u32 %v7952_v4, %v6401_v10  ;;  %v7946_v33 = vld [vmem:[%s12179_s4 + $0x28c] sm:$0xf0]  ;;  %v7944_v17 = vld [vmem:[%s12179_s4 + $0x284] sm:$0xf]  ;;  %v6369_v38 = vld [vmem:[%s12179_s4 + $0x290] sm:$0xf0] }
  0xd1   :  { %2254 = vmatpush.bf16.msrb.mxu1 %v6256_v30  ;;  %v1356_v21 = vpop.f32.mrf.mxu3  ;;  %v6372_v51 = vor.u32 %v7944_v17, %v6369_v38  ;;  %v7930_v10 = vld [vmem:[%s12179_s4 + $0x20c] sm:$0xf0] }
  0xd2   :  { %v1618_v19 = vmax.f32 %v1342_v55, 0.0 }
  0xd3   :  { %2242 = vmatpush.bf16.msra.mxu3 %v6112_v44  ;;  %v7872_v44 = vld [vmem:[%s12179_s4 + $0x44] sm:$0xf] }
  0xd4   :  { %v1330_v8 = vpop.f32.mrf.mxu1  ;;  %v9754_v31 = vpack.c.bf16 %v1618_v19, %v1618_v19  ;;  %v6084_v49 = vor.u32 %v7872_v44, %v6081_v46  ;;  %v7948_v19 = vld [vmem:[%s12179_s4 + $0x2a4] sm:$0xf]  ;;  %v6353_v46 = vld [vmem:[%s12179_s4 + $0x270] sm:$0xf0] }
  0xd5   :  { %2255 = vmatpush.bf16.msrb.mxu1 %v6240_v52  ;;  %v6388_v24 = vor.u32 %v7948_v19, %v6385_v23  ;;  %v7957_v19 = vld [vmem:[%s12179_s4 + $0x2ec] sm:$0xf] }
  0xd6   :  { %6044 = vmatmul.msk.bf16.vlgmr.msra.gmra.mxu1 %vm1250_vm0, %v8747_v45  ;;  %v6064_v45 = vor.u32 %v7870_v2, %v6063_v0  ;;  %v1369_v27 = vpop.f32.mrf.mxu2  ;;  %v6049_v0 = vld [vmem:[%s12179_s4 + $0x10] sm:$0xf0]  ;;  %v6399_v2 = vld [vmem:[%s12179_s4 + $0x2c0] sm:$0xf] }
  0xd7   :  { %2243 = vmatpush.bf16.msra.mxu3 %v6096_v56  ;;  %v7958_v56 = vld [vmem:[%s12179_s4 + $0x2ec] sm:$0xf0]  ;;  %v6263_v27 = vld [vmem:[%s12179_s4 + $0x1a8] sm:$0xf] }
  0xd8   :  { %v6416_v61 = vor.u32 %v7958_v56, %v6415_v54  ;;  %v6337_v56 = vld [vmem:[%s12179_s4 + $0x250] sm:$0xf0] }
  0xd9   :  { %2256 = vmatpush.bf16.msrb.mxu1 %v6224_v41  ;;  %v6068_v41 = vor.u32 %v7868_v36, %v6065_v35  ;;  %v7911_v36 = vld [vmem:[%s12179_s4 + $0x174] sm:$0xf0]  ;;  %v6335_v35 = vld [vmem:[%s12179_s4 + $0x240] sm:$0xf] }
  0xda   :  { %2265 = vmatpush.bf16.msrb.mxu2 %v6416_v61  ;;  %v7907_v61 = vld [vmem:[%s12179_s4 + $0x154] sm:$0xf0] }
  0xdb   :  { %2244 = vmatpush.bf16.msra.mxu3 %v6080_v63  ;;  %v7864_v63 = vld [vmem:[%s12179_s4 + $0x4] sm:$0xf] }
  0xdc   :  { %v6052_v55 = vor.u32 %v7864_v63, %v6049_v0  ;;  %v7934_v63 = vld [vmem:[%s12179_s4 + $0x22c] sm:$0xf0]  ;;  %v7932_v0 = vld [vmem:[%s12179_s4 + $0x224] sm:$0xf] }
  0xdd   :  { %2257 = vmatpush.bf16.msrb.mxu1 %v6208_v9  ;;  %v6400_v9 = vor.u32 %v7954_v3, %v6399_v2  ;;  %v6321_v3 = vld [vmem:[%s12179_s4 + $0x230] sm:$0xf0] }
  0xde   :  { %v6324_v4 = vor.u32 %v7932_v0, %v6321_v3  ;;  %v6241_v3 = vld [vmem:[%s12179_s4 + $0x190] sm:$0xf0] }
  0xdf   :  { %2245 = vmatpush.bf16.msra.mxu3 %v6064_v45  ;;  %2266 = vmatpush.bf16.msrb.mxu2 %v6400_v9  ;;  %v6303_v9 = vld [vmem:[%s12179_s4 + $0x200] sm:$0xf] }
  0xe0   :  { %v1380_v28 = vpop.f32.mrf.mxu0 }
  0xe1   :  { %2258 = vmatpush.bf16.msrb.mxu1 %v6192_v7  ;;  %v1381_v30 = vadd.f32 %v1380_v28, %v1368_v39  ;;  %v6383_v7 = vld [vmem:[%s12179_s4 + $0x2a0] sm:$0xf]  ;;  %v6264_v39 = vor.u32 %v7919_v29, %v6263_v27  ;;  %v264_v27 = vperm.slane %v9590_v53, 2 }
  0xe2   :  { %v6351_v28 = vld [vmem:[%s12179_s4 + $0x260] sm:$0xf] }
  0xe3   :  { %2246 = vmatpush.bf16.msra.mxu3 %v6048_v18  ;;  %v1393_v47 = vpop.f32.mrf.mxu1  ;;  %v7950_v18 = vld [vmem:[%s12179_s4 + $0x2ac] sm:$0xf0]  ;;  %v6431_v29 = vld [vmem:[%s12179_s4 + $0x300] sm:$0xf] }
  0xe4   :  { %v1394_v48 = vadd.f32 %v1393_v47, %v1381_v30  ;;  %v6384_v22 = vor.u32 %v7950_v18, %v6383_v7  ;;  %v7942_v30 = vld [vmem:[%s12179_s4 + $0x26c] sm:$0xf0]  ;;  %v7899_v7 = vld [vmem:[%s12179_s4 + $0x114] sm:$0xf0] }
  0xe5   :  { %2259 = vmatpush.bf16.msrb.mxu1 %v6176_v26  ;;  %v6280_v26 = vor.u32 %v7923_v14, %v6279_v13  ;;  %v6352_v44 = vor.u32 %v7942_v30, %v6351_v28 }
  0xe6   :  { %2247 = vmatmul.bf16.vlgmr.msra.gmra.mxu3 %v9754_v31  ;;  %2267 = vmatpush.bf16.msrb.mxu2 %v6384_v22 }
  0xe7   :  { %2291 = vmatpush.bf16.msrb.mxu3 %v6164_v20 }
  0xe8   :  { %v1382_v50 = vpop.f32.mrf.mxu0 }
  0xe9   :  { %v1406_v52 = vpop.f32.mrf.mxu3  ;;  %2317 = vmatpush.bf16.msra.mxu1 %v6420_v1  ;;  %v7938_v50 = vld [vmem:[%s12179_s4 + $0x24c] sm:$0xf0] }
  0xea   :  { %v1407_v59 = vadd.f32 %v1406_v52, %v1394_v48  ;;  %v7936_v52 = vld [vmem:[%s12179_s4 + $0x244] sm:$0xf]  ;;  %v6336_v54 = vor.u32 %v7938_v50, %v6335_v35  ;;  %v6377_v35 = vld [vmem:[%s12179_s4 + $0x298] sm:$0xf0] }
  0xeb   :  { %2292 = vmatpush.bf16.msrb.mxu3 %v6148_v32  ;;  %v1395_v8 = vpop.f32.mrf.mxu1  ;;  %v6367_v32 = vld [vmem:[%s12179_s4 + $0x280] sm:$0xf]  ;;  %v6340_v58 = vor.u32 %v7936_v52, %v6337_v56  ;;  %v7916_v56 = vld [vmem:[%s12179_s4 + $0x1a4] sm:$0xf] }
  0xec   :  { %v7903_v8 = vld [vmem:[%s12179_s4 + $0x134] sm:$0xf0] }
  0xed   :  { %2318 = vmatpush.bf16.msra.mxu1 %v6404_v11  ;;  %v6200_v14 = vor.u32 %v7903_v8, %v6199_v6  ;;  %v7963_v6 = vld [vmem:[%s12179_s4 + $0x314] sm:$0xf0] }
  0xee   :  { %v1419_v60 = vpop.f32.mrf.mxu2 }
  0xef   :  { %2293 = vmatpush.bf16.msrb.mxu3 %v6132_v37  ;;  %v1420_v45 = vadd.f32 %v1419_v60, %v1407_v59  ;;  %v6368_v37 = vor.u32 %v7946_v33, %v6367_v32  ;;  %v6215_v60 = vld [vmem:[%s12179_s4 + $0x148] sm:$0xf]  ;;  %v7962_v32 = vld [vmem:[%s12179_s4 + $0x30c] sm:$0xf0]  ;;  %v7960_v33 = vld [vmem:[%s12179_s4 + $0x304] sm:$0xf] }
  0xf0   :  { %v1432_v15 = vpop.f32.mrf.mxu0  ;;  %v6216_v5 = vor.u32 %v7907_v61, %v6215_v60  ;;  %v6432_v38 = vor.u32 %v7962_v32, %v6431_v29  ;;  %v6361_v60 = vld [vmem:[%s12179_s4 + $0x278] sm:$0xf0]  ;;  %v7929_v29 = vld [vmem:[%s12179_s4 + $0x20c] sm:$0xf] }
  0xf1   :  { %v1408_v16 = vpop.f32.mrf.mxu3  ;;  %v1433_v20 = vadd.f32 %v1432_v15, %v1420_v45  ;;  %2319 = vmatpush.bf16.msra.mxu1 %v6388_v24  ;;  %2268 = vmatpush.bf16.msrb.mxu2 %v6368_v37  ;;  %v7928_v45 = vld [vmem:[%s12179_s4 + $0x204] sm:$0xf]  ;;  %v7953_v24 = vld [vmem:[%s12179_s4 + $0x2cc] sm:$0xf]  ;;  %v6313_v32 = vld [vmem:[%s12179_s4 + $0x218] sm:$0xf0] }
  0xf2   :  { %v6183_v16 = vld [vmem:[%s12179_s4 + $0x108] sm:$0xf]  ;;  %2285 = vmatpush.bf16.msra.mxu0 %v6432_v38 }
  0xf3   :  { %2294 = vmatpush.bf16.msrb.mxu3 %v6116_v40  ;;  %v1619_v25 = vmax.f32 %v1433_v20, 0.0  ;;  %v6247_v40 = vld [vmem:[%s12179_s4 + $0x188] sm:$0xf]  ;;  %v6425_v20 = vld [vmem:[%s12179_s4 + $0x2f8] sm:$0xf0]  ;;  %v6184_v22 = vor.u32 %v7899_v7, %v6183_v16 }
  0xf4   :  { %v6248_v48 = vor.u32 %v7915_v42, %v6247_v40  ;;  %v6428_v23 = vor.u32 %v7957_v19, %v6425_v20  ;;  %v6289_v40 = vld [vmem:[%s12179_s4 + $0x1f0] sm:$0xf0]  ;;  %v7949_v42 = vld [vmem:[%s12179_s4 + $0x2ac] sm:$0xf]  ;;  %v6167_v19 = vld [vmem:[%s12179_s4 + $0xe8] sm:$0xf] }
  0xf5   :  { %v9856_v34 = vpack.c.bf16 %v1619_v25, %v1619_v25  ;;  %2320 = vmatpush.bf16.msra.mxu1 %v6372_v51  ;;  %2269 = vmatpush.bf16.msrb.mxu2 %v6352_v44  ;;  %v6409_v25 = vld [vmem:[%s12179_s4 + $0x2d8] sm:$0xf0]  ;;  %v6433_v51 = vld [vmem:[%s12179_s4 + $0x310] sm:$0xf0]  ;;  %v7920_v44 = vld [vmem:[%s12179_s4 + $0x1c4] sm:$0xf] }
  0xf6   :  { %v1421_v21 = vpop.f32.mrf.mxu2  ;;  %v6412_v17 = vor.u32 %v7953_v24, %v6409_v25  ;;  %v6436_v30 = vor.u32 %v7960_v33, %v6433_v51  ;;  %v7895_v20 = vld [vmem:[%s12179_s4 + $0xf4] sm:$0xf0]  ;;  %v6169_v25 = vld [vmem:[%s12179_s4 + $0xf8] sm:$0xf0]  ;;  %v6151_v38 = vld [vmem:[%s12179_s4 + $0xc8] sm:$0xf] }
  0xf7   :  { %2295 = vmatpush.bf16.msrb.mxu3 %v6100_v43  ;;  %2260 = vmatmul.bf16.vlgmr.msrb.gmra.mxu1 %v9856_v34  ;;  %v7940_v43 = vld [vmem:[%s12179_s4 + $0x264] sm:$0xf] }
  0xf8   :  { %v1434_v57 = vpop.f32.mrf.mxu0  ;;  %v6356_v47 = vor.u32 %v7940_v43, %v6353_v46 }
  0xf9   :  { %2270 = vmatpush.bf16.msrb.mxu2 %v6336_v54  ;;  %v6393_v57 = vld [vmem:[%s12179_s4 + $0x2b8] sm:$0xf0] }
  0xfa   :  { %2321 = vmatpush.bf16.msra.mxu1 %v6356_v47  ;;  %v6273_v47 = vld [vmem:[%s12179_s4 + $0x1d0] sm:$0xf0] }
  0xfb   :  { %2296 = vmatpush.bf16.msrb.mxu3 %v6084_v49  ;;  %v6231_v49 = vld [vmem:[%s12179_s4 + $0x168] sm:$0xf] }
  0xfc   :  { %v6232_v59 = vor.u32 %v7911_v36, %v6231_v49  ;;  %v6396_v49 = vor.u32 %v7949_v42, %v6393_v57  ;;  %v7945_v36 = vld [vmem:[%s12179_s4 + $0x28c] sm:$0xf]  ;;  %v7891_v57 = vld [vmem:[%s12179_s4 + $0xd4] sm:$0xf0] }
  0xfd   :  { %v6380_v52 = vor.u32 %v7945_v36, %v6377_v35  ;;  %v7887_v35 = vld [vmem:[%s12179_s4 + $0xb4] sm:$0xf0] }
  0xfe   :  { %2322 = vmatpush.bf16.msra.mxu1 %v6340_v58  ;;  %v6257_v58 = vld [vmem:[%s12179_s4 + $0x1b0] sm:$0xf0] }
  0xff   :  { %2297 = vmatpush.bf16.msrb.mxu3 %v6068_v41  ;;  %v6319_v41 = vld [vmem:[%s12179_s4 + $0x220] sm:$0xf]  ;;  %v6260_v61 = vor.u32 %v7916_v56, %v6257_v58  ;;  %v7885_v56 = vld [vmem:[%s12179_s4 + $0xac] sm:$0xf]  ;;  %v6137_v58 = vld [vmem:[%s12179_s4 + $0xb8] sm:$0xf0] }
 0x100   :  { %v6320_v2 = vor.u32 %v7934_v63, %v6319_v41 }
 0x102   :  { %2271 = vmatpush.bf16.msrb.mxu2 %v6320_v2  ;;  %2323 = vmatpush.bf16.msra.mxu1 %v6324_v4  ;;  %v7912_v2 = vld [vmem:[%s12179_s4 + $0x184] sm:$0xf] }
 0x103   :  { %2298 = vmatpush.bf16.msrb.mxu3 %v6052_v55  ;;  %v1445_v1 = vpop.f32.mrf.mxu1  ;;  %v6304_v55 = vor.u32 %v7930_v10, %v6303_v9  ;;  %v6244_v4 = vor.u32 %v7912_v2, %v6241_v3  ;;  %v6121_v2 = vld [vmem:[%s12179_s4 + $0x98] sm:$0xf0] }
 0x104   :  { %v9905_v62 = vpop.f32.mrf.mxu0  ;;  %v1446_v46 = vadd.f32 %v1445_v1, %v264_v27  ;;  %v7937_v1 = vld [vmem:[%s12179_s4 + $0x24c] sm:$0xf]  ;;  %v6209_v27 = vld [vmem:[%s12179_s4 + $0x150] sm:$0xf0] }
 0x106   :  { %2299 = vmatmul.bf16.vlgmr.msrb.gmra.mxu3 %v9754_v31  ;;  %2272 = vmatpush.bf16.msrb.mxu2 %v6304_v55  ;;  %v7908_v55 = vld [vmem:[%s12179_s4 + $0x164] sm:$0xf] }
 0x107   :  { %2356 = vmatpush.bf16.msra.mxu3 %v6296_v12  ;;  %v6305_v12 = vld [vmem:[%s12179_s4 + $0x210] sm:$0xf0] }
 0x108   :  { %v6308_v13 = vor.u32 %v7928_v45, %v6305_v12  ;;  %v6225_v12 = vld [vmem:[%s12179_s4 + $0x170] sm:$0xf0] }
 0x109   :  { %v1458_v11 = vpop.f32.mrf.mxu3  ;;  %v6228_v16 = vor.u32 %v7908_v55, %v6225_v12  ;;  %v7875_v55 = vld [vmem:[%s12179_s4 + $0x54] sm:$0xf0] }
 0x10a   :  { %2324 = vmatpush.bf16.msra.mxu1 %v6308_v13  ;;  %2337 = vmatpush.bf16.msra.mxu2 %v6436_v30  ;;  %v1459_v50 = vadd.f32 %v1458_v11, %v1446_v46  ;;  %v6193_v30 = vld [vmem:[%s12179_s4 + $0x130] sm:$0xf0]  ;;  %v6153_v46 = vld [vmem:[%s12179_s4 + $0xd8] sm:$0xf0] }
 0x10b   :  { %2357 = vmatpush.bf16.msra.mxu3 %v6280_v26  ;;  %v1447_v21 = vpop.f32.mrf.mxu1 }
 0x10c   :  { %v1473_v15 = vpop.f32.mrf.mxu0  ;;  %v1472_v41 = vadd.f32 %v9905_v62, %v1459_v50  ;;  %v6345_v62 = vld [vmem:[%s12179_s4 + $0x258] sm:$0xf0]  ;;  %v7893_v21 = vld [vmem:[%s12179_s4 + $0xec] sm:$0xf] }
 0x10d   :  { %v6348_v45 = vor.u32 %v7937_v1, %v6345_v62  ;;  %v6329_v15 = vld [vmem:[%s12179_s4 + $0x238] sm:$0xf0]  ;;  %v6172_v51 = vor.u32 %v7893_v21, %v6169_v25  ;;  %v7881_v1 = vld [vmem:[%s12179_s4 + $0x8c] sm:$0xf]  ;;  %v6103_v62 = vld [vmem:[%s12179_s4 + $0x68] sm:$0xf] }
 0x10e   :  { %v1484_v18 = vpop.f32.mrf.mxu2  ;;  %v6073_v21 = vld [vmem:[%s12179_s4 + $0x38] sm:$0xf0] }
 0x10f   :  { %2358 = vmatpush.bf16.msra.mxu3 %v6264_v39  ;;  %v7924_v39 = vld [vmem:[%s12179_s4 + $0x1e4] sm:$0xf]  ;;  %v1485_v8 = vadd.f32 %v1484_v18, %v1472_v41  ;;  %v7883_v41 = vld [vmem:[%s12179_s4 + $0x94] sm:$0xf0] }
 0x110   :  { %v6292_v43 = vor.u32 %v7924_v39, %v6289_v40  ;;  %v6316_v40 = vor.u32 %v7929_v29, %v6313_v32  ;;  %v6055_v29 = vld [vmem:[%s12179_s4 + $0x8] sm:$0xf]  ;;  %v7867_v32 = vld [vmem:[%s12179_s4 + $0x14] sm:$0xf0] }
 0x111   :  { %v1460_v26 = vpop.f32.mrf.mxu3 }
 0x112   :  { %2304 = vmatpush.bf16.msrb.mxu0 %v6292_v43  ;;  %v7904_v26 = vld [vmem:[%s12179_s4 + $0x144] sm:$0xf] }
 0x113   :  { %2359 = vmatpush.bf16.msra.mxu3 %v6248_v48  ;;  %v6276_v48 = vor.u32 %v7920_v44, %v6273_v47  ;;  %v6212_v33 = vor.u32 %v7904_v26, %v6209_v27  ;;  %v7889_v44 = vld [vmem:[%s12179_s4 + $0xcc] sm:$0xf] }
 0x114   :  { %v9965_v37 = vpop.f32.mrf.mxu0  ;;  %v6156_v50 = vor.u32 %v7889_v44, %v6153_v46  ;;  %v6423_v46 = vld [vmem:[%s12179_s4 + $0x2e8] sm:$0xf] }
 0x116   :  { %v1486_v28 = vpop.f32.mrf.mxu2  ;;  %2305 = vmatpush.bf16.msrb.mxu0 %v6276_v48  ;;  %v6152_v48 = vor.u32 %v7891_v57, %v6151_v38 }
 0x117   :  { %2360 = vmatpush.bf16.msra.mxu3 %v6232_v59  ;;  %v7941_v59 = vld [vmem:[%s12179_s4 + $0x26c] sm:$0xf]  ;;  %v7900_v28 = vld [vmem:[%s12179_s4 + $0x124] sm:$0xf] }
 0x118   :  { %v6364_v0 = vor.u32 %v7941_v59, %v6361_v60  ;;  %v6196_v47 = vor.u32 %v7900_v28, %v6193_v30 }
 0x11a   :  { %2306 = vmatpush.bf16.msrb.mxu0 %v6260_v61  ;;  %v6119_v61 = vld [vmem:[%s12179_s4 + $0x88] sm:$0xf] }
 0x11b   :  { %2361 = vmatpush.bf16.msra.mxu3 %v6216_v5  ;;  %v6439_v5 = vld [vmem:[%s12179_s4 + $0x308] sm:$0xf]  ;;  %v6120_v3 = vor.u32 %v7883_v41, %v6119_v61 }
 0x11c   :  { %v1525_v54 = vpop.f32.mrf.mxu0  ;;  %v6440_v9 = vor.u32 %v7963_v6, %v6439_v5  ;;  %v7877_v6 = vld [vmem:[%s12179_s4 + $0x6c] sm:$0xf] }
 0x11d   :  { %v6177_v54 = vld [vmem:[%s12179_s4 + $0x110] sm:$0xf0] }
 0x11e   :  { %2307 = vmatpush.bf16.msrb.mxu0 %v6244_v4  ;;  %2389 = vmatpush.bf16.msrb.mxu1 %v6440_v9  ;;  %v7879_v4 = vld [vmem:[%s12179_s4 + $0x74] sm:$0xf0] }
 0x11f   :  { %2362 = vmatpush.bf16.msra.mxu3 %v6200_v14  ;;  %v7933_v14 = vld [vmem:[%s12179_s4 + $0x22c] sm:$0xf] }
 0x122   :  { %2308 = vmatpush.bf16.msrb.mxu0 %v6228_v16 }
 0x123   :  { %2363 = vmatpush.bf16.msra.mxu3 %v6184_v22  ;;  %v1497_v63 = vpop.f32.mrf.mxu1 }
 0x124   :  { %v1498_v10 = vadd.f32 %v1497_v63, %v1485_v8  ;;  %v6140_v63 = vor.u32 %v7885_v56, %v6137_v58  ;;  %v6105_v8 = vld [vmem:[%s12179_s4 + $0x78] sm:$0xf0]  ;;  %v7955_v56 = vld [vmem:[%s12179_s4 + $0x2d4] sm:$0xf0]  ;;  %v7921_v58 = vld [vmem:[%s12179_s4 + $0x1cc] sm:$0xf] }
 0x125   :  { %v6108_v12 = vor.u32 %v7877_v6, %v6105_v8  ;;  %v6249_v6 = vld [vmem:[%s12179_s4 + $0x198] sm:$0xf0] }
 0x126   :  { %2364 = vmatmul.bf16.vlgmr.msra.gmra.mxu3 %v9856_v34  ;;  %2309 = vmatpush.bf16.msrb.mxu0 %v6212_v33 }
 0x127   :  { %2421 = vmatpush.bf16.msrb.mxu3 %v6428_v23  ;;  %v6332_v23 = vor.u32 %v7933_v14, %v6329_v15  ;;  %v7873_v14 = vld [vmem:[%s12179_s4 + $0x4c] sm:$0xf]  ;;  %v6089_v15 = vld [vmem:[%s12179_s4 + $0x58] sm:$0xf0] }
 0x129   :  { %v1510_v13 = vpop.f32.mrf.mxu3 }
 0x12a   :  { %v10026_v11 = vpop.f32.mrf.mxu0  ;;  %v1511_v7 = vadd.f32 %v1510_v13, %v1498_v10  ;;  %2310 = vmatpush.bf16.msrb.mxu0 %v6196_v47  ;;  %v6104_v10 = vor.u32 %v7879_v4, %v6103_v62  ;;  %v7959_v47 = vld [vmem:[%s12179_s4 + $0x2f4] sm:$0xf0]  ;;  %v6375_v4 = vld [vmem:[%s12179_s4 + $0x288] sm:$0xf] }
 0x12b   :  { %2422 = vmatpush.bf16.msrb.mxu3 %v6412_v17  ;;  %v1499_v18 = vpop.f32.mrf.mxu1 }
 0x12c   :  { %v1524_v22 = vadd.f32 %v9965_v37, %v1511_v7  ;;  %v6168_v37 = vor.u32 %v7895_v20, %v6167_v19  ;;  %v6071_v7 = vld [vmem:[%s12179_s4 + $0x28] sm:$0xf]  ;;  %v7871_v18 = vld [vmem:[%s12179_s4 + $0x34] sm:$0xf0]  ;;  %v7869_v20 = vld [vmem:[%s12179_s4 + $0x2c] sm:$0xf] }
 0x12d   :  { %v6072_v26 = vor.u32 %v7871_v18, %v6071_v7  ;;  %v6076_v33 = vor.u32 %v7869_v20, %v6073_v21  ;;  %v7939_v7 = vld [vmem:[%s12179_s4 + $0x254] sm:$0xf0]  ;;  %v7905_v18 = vld [vmem:[%s12179_s4 + $0x14c] sm:$0xf]  ;;  %v6327_v21 = vld [vmem:[%s12179_s4 + $0x228] sm:$0xf] }
 0x12e   :  { %v1536_v24 = vpop.f32.mrf.mxu2  ;;  %v1620_v17 = vmax.f32 %v1524_v22, 0.0 }
 0x12f   :  { %2423 = vmatpush.bf16.msrb.mxu3 %v6396_v49  ;;  %v6135_v49 = vld [vmem:[%s12179_s4 + $0xa8] sm:$0xf] }
 0x130   :  { %v10068_v39 = vpack.c.bf16 %v1620_v17, %v1620_v17  ;;  %v6136_v60 = vor.u32 %v7887_v35, %v6135_v49  ;;  %v7865_v17 = vld [vmem:[%s12179_s4 + $0xc] sm:$0xf]  ;;  %v6297_v49 = vld [vmem:[%s12179_s4 + $0x1f8] sm:$0xf0]  ;;  %v6424_v35 = vor.u32 %v7959_v47, %v6423_v46 }
 0x131   :  { %v1512_v43 = vpop.f32.mrf.mxu3 }
 0x132   :  { %v1551_v42 = vpop.f32.mrf.mxu0  ;;  %2273 = vmatmul.bf16.vlgmr.msrb.gmra.mxu2 %v10068_v39  ;;  %2325 = vmatmul.bf16.vlgmr.msra.gmra.mxu1 %v10068_v39 }
 0x133   :  { %2424 = vmatpush.bf16.msrb.mxu3 %v6380_v52  ;;  %2343 = vmatpush.bf16.msrb.mxu2 %v6168_v37  ;;  %v7896_v52 = vld [vmem:[%s12179_s4 + $0x104] sm:$0xf]  ;;  %v6057_v37 = vld [vmem:[%s12179_s4 + $0x18] sm:$0xf0] }
 0x134   :  { %2395 = vmatpush.bf16.msra.mxu1 %v6172_v51  ;;  %v6180_v59 = vor.u32 %v7896_v52, %v6177_v54  ;;  %v6056_v51 = vor.u32 %v7867_v32, %v6055_v29  ;;  %v6407_v54 = vld [vmem:[%s12179_s4 + $0x2c8] sm:$0xf]  ;;  %v7931_v29 = vld [vmem:[%s12179_s4 + $0x214] sm:$0xf0]  ;;  %v7897_v32 = vld [vmem:[%s12179_s4 + $0x10c] sm:$0xf] }
 0x135   :  { %v6408_v61 = vor.u32 %v7955_v56, %v6407_v54  ;;  %v7966_v54 = vld [vmem:[%s12182_s6 + $0x10] sm:$0xff] }
 0x136   :  { %v1538_v36 = vpop.f32.mrf.mxu2  ;;  %2311 = vmatpush.bf16.msrb.mxu0 %v6180_v59  ;;  %v6281_v59 = vld [vmem:[%s12179_s4 + $0x1d8] sm:$0xf0] }
 0x137   :  { %2425 = vmatpush.bf16.msrb.mxu3 %v6364_v0  ;;  %2344 = vmatpush.bf16.msrb.mxu2 %v6152_v48  ;;  %v265_v0 = vperm.slane %v9590_v53, 3  ;;  %v6124_v53 = vor.u32 %v7881_v1, %v6121_v2  ;;  %v7925_v48 = vld [vmem:[%s12179_s4 + $0x1ec] sm:$0xf]  ;;  %v6284_v41 = vor.u32 %v7921_v58, %v6281_v59  ;;  %v6265_v2 = vld [vmem:[%s12179_s4 + $0x1b8] sm:$0xf0]  ;;  %v7978_v59 = vld [vmem:[%s12182_s6 + $0x70] sm:$0xff] }
 0x138   :  { %2396 = vmatpush.bf16.msra.mxu1 %v6156_v50  ;;  %v6300_v52 = vor.u32 %v7925_v48, %v6297_v49  ;;  %v7917_v1 = vld [vmem:[%s12179_s4 + $0x1ac] sm:$0xf]  ;;  %v7971_v48 = vld [vmem:[%s12182_s6 + $0x38] sm:$0xff] }
 0x139   :  { %v1537_v5 = vadd.f32 %v1536_v24, %v265_v0  ;;  %v7951_v0 = vld [vmem:[%s12179_s4 + $0x2b4] sm:$0xf0]  ;;  %v6268_v62 = vor.u32 %v7917_v1, %v6265_v2  ;;  %v7969_v49 = vld [vmem:[%s12182_s6 + $0x28] sm:$0xff]  ;;  %v7976_v1 = vld [vmem:[%s12182_s6 + $0x60] sm:$0xff] }
 0x13a   :  { %v7965_v58 = vld [vmem:[%s12182_s6 + $0x8] sm:$0xff]  ;;  %v7987_v2 = vld [vmem:[%s12182_s6 + $0xb8] sm:$0xff] }
 0x13b   :  { %2426 = vmatpush.bf16.msrb.mxu3 %v6348_v45  ;;  %2345 = vmatpush.bf16.msrb.mxu2 %v6136_v60  ;;  %v6087_v45 = vld [vmem:[%s12179_s4 + $0x48] sm:$0xf]  ;;  %v1550_v13 = vadd.f32 %v10026_v11, %v1537_v5  ;;  %v6092_v11 = vor.u32 %v7873_v14, %v6089_v15  ;;  %v7913_v5 = vld [vmem:[%s12179_s4 + $0x18c] sm:$0xf] }
 0x13c   :  { %2397 = vmatpush.bf16.msra.mxu1 %v6140_v63  ;;  %v6088_v16 = vor.u32 %v7875_v55, %v6087_v45  ;;  %v6391_v63 = vld [vmem:[%s12179_s4 + $0x2a8] sm:$0xf]  ;;  %v7943_v45 = vld [vmem:[%s12179_s4 + $0x274] sm:$0xf0]  ;;  %v7909_v55 = vld [vmem:[%s12179_s4 + $0x16c] sm:$0xf] }
 0x13f   :  { %2427 = vmatpush.bf16.msrb.mxu3 %v6332_v23  ;;  %2346 = vmatpush.bf16.msrb.mxu2 %v6120_v3  ;;  %v6392_v3 = vor.u32 %v7951_v0, %v6391_v63 }
 0x140   :  { %2398 = vmatpush.bf16.msra.mxu1 %v6124_v53  ;;  %v7947_v53 = vld [vmem:[%s12179_s4 + $0x294] sm:$0xf0] }
 0x141   :  { %v6376_v8 = vor.u32 %v7947_v53, %v6375_v4  ;;  %v7986_v4 = vld [vmem:[%s12182_s6 + $0xb0] sm:$0xff] }
 0x143   :  { %2428 = vmatpush.bf16.msrb.mxu3 %v6316_v40  ;;  %v1562_v9 = vpop.f32.mrf.mxu1  ;;  %2347 = vmatpush.bf16.msrb.mxu2 %v6104_v10  ;;  %v6060_v40 = vor.u32 %v7865_v17, %v6057_v37  ;;  %v6359_v10 = vld [vmem:[%s12179_s4 + $0x268] sm:$0xf]  ;;  %v7961_v17 = vld [vmem:[%s12179_s4 + $0x30c] sm:$0xf]  ;;  %v6441_v37 = vld [vmem:[%s12179_s4 + $0x318] sm:$0xf0] }
 0x144   :  { %2399 = vmatpush.bf16.msra.mxu1 %v6108_v12  ;;  %v1563_v19 = vadd.f32 %v1562_v9, %v1550_v13  ;;  %v6252_v9 = vor.u32 %v7913_v5, %v6249_v6  ;;  %v6233_v12 = vld [vmem:[%s12179_s4 + $0x178] sm:$0xf0]  ;;  %v6360_v14 = vor.u32 %v7943_v45, %v6359_v10  ;;  %v7974_v5 = vld [vmem:[%s12182_s6 + $0x50] sm:$0xff]  ;;  %v7985_v6 = vld [vmem:[%s12182_s6 + $0xa8] sm:$0xff] }
 0x145   :  { %v6236_v15 = vor.u32 %v7909_v55, %v6233_v12  ;;  %v7972_v10 = vld [vmem:[%s12182_s6 + $0x40] sm:$0xff]  ;;  %v7983_v45 = vld [vmem:[%s12182_s6 + $0x98] sm:$0xff]  ;;  %v7982_v55 = vld [vmem:[%s12182_s6 + $0x90] sm:$0xff] }
 0x146   :  { %2429 = vmatmul.bf16.vlgmr.msrb.gmra.mxu3 %v10068_v39 }
 0x147   :  { %2348 = vmatpush.bf16.msrb.mxu2 %v6088_v16  ;;  %v6343_v16 = vld [vmem:[%s12179_s4 + $0x248] sm:$0xf] }
 0x148   :  { %2400 = vmatpush.bf16.msra.mxu1 %v6092_v11  ;;  %v6217_v11 = vld [vmem:[%s12179_s4 + $0x158] sm:$0xf0] }
 0x149   :  { %v1575_v22 = vpop.f32.mrf.mxu3  ;;  %v1601_v23 = vpop.f32.mrf.mxu0  ;;  %v6220_v20 = vor.u32 %v7905_v18, %v6217_v11  ;;  %v7980_v11 = vld [vmem:[%s12182_s6 + $0x80] sm:$0xff] }
 0x14a   :  { %v1576_v24 = vadd.f32 %v1575_v22, %v1563_v19  ;;  %v6344_v19 = vor.u32 %v7939_v7, %v6343_v16  ;;  %v7935_v22 = vld [vmem:[%s12179_s4 + $0x234] sm:$0xf0]  ;;  %v7981_v16 = vld [vmem:[%s12182_s6 + $0x88] sm:$0xff] }
 0x14b   :  { %v1564_v25 = vpop.f32.mrf.mxu1  ;;  %2349 = vmatpush.bf16.msrb.mxu2 %v6072_v26 }
 0x14c   :  { %2401 = vmatpush.bf16.msra.mxu1 %v6076_v33  ;;  %v6328_v25 = vor.u32 %v7935_v22, %v6327_v21  ;;  %v6185_v33 = vld [vmem:[%s12179_s4 + $0x118] sm:$0xf0] }
 0x14e   :  { %v1588_v27 = vpop.f32.mrf.mxu2 }
 0x14f   :  { %v1589_v38 = vadd.f32 %v1588_v27, %v1576_v24  ;;  %2350 = vmatpush.bf16.msrb.mxu2 %v6056_v51  ;;  %v6311_v27 = vld [vmem:[%s12179_s4 + $0x208] sm:$0xf]  ;;  %v6188_v51 = vor.u32 %v7897_v32, %v6185_v33 }
 0x150   :  { %2402 = vmatpush.bf16.msra.mxu1 %v6060_v40  ;;  %v6444_v40 = vor.u32 %v7961_v17, %v6441_v37 }
 0x151   :  { %v1577_v42 = vpop.f32.mrf.mxu3  ;;  %v1603_v57 = vpop.f32.mrf.mxu0  ;;  %v1602_v28 = vadd.f32 %v1601_v23, %v1589_v38  ;;  %v7901_v23 = vld [vmem:[%s12179_s4 + $0x12c] sm:$0xf]  ;;  %v6312_v38 = vor.u32 %v7931_v29, %v6311_v27  ;;  %v7988_v29 = vld [vmem:[%s12182_s6 + $0xc0] sm:$0xff] }
 0x152   :  { %v10284_v42 = vld [vmem:[%s12180_s5] sm:$0xf]  ;;  %2708 = vmatpush.bf16.msra.mxu3 %v7988_v29 }
 0x153   :  { %v1614_v30 = vpop.f32.mrf.mxu1  ;;  %v1728_v57 = vperm.slane %v10284_v42, 0  ;;  %v1729_v22 = vperm.slane %v10284_v42, 1  ;;  %v1730_v37 = vperm.slane %v10284_v42, 2  ;;  %v6920_v29 = vld [vmem:[%s12184_s10 + $0x2e0] sm:$0xf] }
 0x154   :  { %v1615_v43 = vadd.f32 %v1614_v30, %v1602_v28 }
 0x156   :  { %v1590_v44 = vpop.f32.mrf.mxu2  ;;  %v1621_v36 = vmax.f32 %v1615_v43, 0.0 }
 0x158   :  { %v10180_v50 = vpack.c.bf16 %v1621_v36, %v1621_v36  ;;  %v7979_v36 = vld [vmem:[%s12182_s6 + $0x78] sm:$0xff] }
 0x15a   :  { %6445 = vmatmul.msk.bf16.vlgmr.msra.gmra.mxu0 %vm1250_vm0, %v10180_v50  ;;  %6446 = vmatmul.msk.bf16.vlgmr.msra.gmra.mxu2 %vm1250_vm0, %v10180_v50 }
 0x15b   :  { %6447 = vmatmul.msk.bf16.vlgmr.msrb.gmra.mxu1 %vm1250_vm0, %v10180_v50  ;;  %v1616_v60 = vpop.f32.mrf.mxu1  ;;  %2369 = vmatpush.bf16.msra.mxu0 %v6424_v35  ;;  %v7968_v35 = vld [vmem:[%s12182_s6 + $0x20] sm:$0xff] }
 0x15c   :  { %2408 = vmatpush.bf16.msra.mxu2 %v6300_v52  ;;  %2675 = vmatpush.bf16.msrb.mxu1 %v7979_v36  ;;  %v7967_v52 = vld [vmem:[%s12182_s6 + $0x18] sm:$0xff] }
 0x15f   :  { %2370 = vmatpush.bf16.msra.mxu0 %v6408_v61  ;;  %v7964_v61 = vld [vmem:[%s12182_s6] sm:$0xff] }
 0x160   :  { %2409 = vmatpush.bf16.msra.mxu2 %v6284_v41  ;;  %2676 = vmatpush.bf16.msrb.mxu1 %v7978_v59  ;;  %v7977_v41 = vld [vmem:[%s12182_s6 + $0x68] sm:$0xff] }
 0x163   :  { %2371 = vmatpush.bf16.msra.mxu0 %v6392_v3  ;;  %v7975_v3 = vld [vmem:[%s12182_s6 + $0x58] sm:$0xff] }
 0x164   :  { %2410 = vmatpush.bf16.msra.mxu2 %v6268_v62  ;;  %2677 = vmatpush.bf16.msrb.mxu1 %v7977_v41 }
 0x167   :  { %2372 = vmatpush.bf16.msra.mxu0 %v6376_v8  ;;  %v7973_v8 = vld [vmem:[%s12182_s6 + $0x48] sm:$0xff] }
 0x168   :  { %2411 = vmatpush.bf16.msra.mxu2 %v6252_v9  ;;  %2678 = vmatpush.bf16.msrb.mxu1 %v7976_v1  ;;  %v7984_v9 = vld [vmem:[%s12182_s6 + $0xa0] sm:$0xff] }
 0x169   :  { %v2248_v13 = vpop.f32.mrf.mxu3 }
 0x16a   :  { %2312 = vmatmul.bf16.vlgmr.msrb.gmra.mxu0 %v9856_v34  ;;  %2351 = vmatmul.bf16.vlgmr.msrb.gmra.mxu2 %v9754_v31  ;;  %v2249_v28 = vadd.f32 %v2248_v13, %v1728_v57 }
 0x16b   :  { %2403 = vmatmul.bf16.vlgmr.msra.gmra.mxu1 %v9754_v31  ;;  %2373 = vmatpush.bf16.msra.mxu0 %v6360_v14  ;;  %v6201_v31 = vld [vmem:[%s12179_s4 + $0x138] sm:$0xf0] }
 0x16c   :  { %2412 = vmatpush.bf16.msra.mxu2 %v6236_v15  ;;  %v6204_v26 = vor.u32 %v7901_v23, %v6201_v31  ;;  %2679 = vmatpush.bf16.msrb.mxu1 %v7975_v3 }
 0x16f   :  { %2374 = vmatpush.bf16.msra.mxu0 %v6344_v19 }
 0x170   :  { %2413 = vmatpush.bf16.msra.mxu2 %v6220_v20  ;;  %2680 = vmatpush.bf16.msrb.mxu1 %v7974_v5 }
 0x171   :  { %v2250_v24 = vpop.f32.mrf.mxu3 }
 0x173   :  { %2375 = vmatpush.bf16.msra.mxu0 %v6328_v25 }
 0x174   :  { %2414 = vmatpush.bf16.msra.mxu2 %v6204_v26  ;;  %v2261_v30 = vpop.f32.mrf.mxu1  ;;  %2681 = vmatpush.bf16.msrb.mxu1 %v7973_v8 }
 0x175   :  { %v2262_v43 = vadd.f32 %v2261_v30, %v2249_v28 }
 0x177   :  { %2376 = vmatpush.bf16.msra.mxu0 %v6312_v38 }
 0x178   :  { %2415 = vmatpush.bf16.msra.mxu2 %v6188_v51  ;;  %2682 = vmatpush.bf16.msrb.mxu1 %v7972_v10 }
 0x17a   :  { %2377 = vmatmul.bf16.vlgmr.msra.gmra.mxu0 %v10068_v39 }
 0x17b   :  { %2441 = vmatpush.bf16.msrb.mxu0 %v6444_v40  ;;  %2416 = vmatmul.bf16.vlgmr.msra.gmra.mxu2 %v9856_v34  ;;  %v7970_v34 = vld [vmem:[%s12182_s6 + $0x30] sm:$0xff] }
 0x17c   :  { %v2263_v46 = vpop.f32.mrf.mxu1  ;;  %2688 = vmatpush.bf16.msrb.mxu2 %v7987_v2  ;;  %v8270_v2 = vld [vmem:[%s12181_s7] ss:$0 sm:$0xff]  ;;  %s8301_s7 = smov 126  }
 0x17f   :  { %2662 = vmatpush.bf16.msra.mxu0 %v7971_v48 }
 0x180   :  { %2689 = vmatpush.bf16.msrb.mxu2 %v7986_v4 }
 0x183   :  { %2663 = vmatpush.bf16.msra.mxu0 %v7970_v34 }
 0x184   :  { %2690 = vmatpush.bf16.msrb.mxu2 %v7985_v6 }
 0x187   :  { %2664 = vmatpush.bf16.msra.mxu0 %v7969_v49 }
 0x188   :  { %2691 = vmatpush.bf16.msrb.mxu2 %v7984_v9 }
 0x189   :  { %v10289_v44 = vpop.f32.mrf.mxu3 }
 0x18a   :  { %6448 = vmatmul.msk.bf16.vlgmr.msrb.gmra.mxu0 %vm1250_vm0, %v10180_v50  ;;  %v2301_v31 = vadd.f32 %v10289_v44, %v1729_v22  ;;  %v6776_v22 = vld [vmem:[%s12184_s10 + $0x1c0] sm:$0xf] }
 0x18b   :  { %2665 = vmatpush.bf16.msra.mxu0 %v7968_v35 }
 0x18c   :  { %2692 = vmatpush.bf16.msrb.mxu2 %v7983_v45  ;;  %v8302_v45 = vmov 1  }
 0x18d   :  { %8268 = vset.pattern.permute.xlu1 %v8302_v45 }
 0x18f   :  { %2666 = vmatpush.bf16.msra.mxu0 %v7967_v52 }
 0x190   :  { %2693 = vmatpush.bf16.msrb.mxu2 %v7982_v55  ;;  %v8303_v55 = vmov 0  }
 0x191   :  { %v2302_v47 = vpop.f32.mrf.mxu3  ;;  %8267 = vset.pattern.permute.xlu0 %v8303_v55  ;;  %v6856_v55 = vld [vmem:[%s12184_s10 + $0x260] sm:$0xf] }
 0x192   :  { %v1731_v47 = vperm.slane %v10284_v42, 3 }
 0x193   :  { %2667 = vmatpush.bf16.msra.mxu0 %v7966_v54 }
 0x194   :  { %2694 = vmatpush.bf16.msrb.mxu2 %v7981_v16  ;;  %v8015_v16 = vld [vmem:[%s12184_s10 + $0xcc] sm:$0xf0] }
 0x197   :  { %2668 = vmatpush.bf16.msra.mxu0 %v7965_v58 }
 0x198   :  { %2695 = vmatpush.bf16.msrb.mxu2 %v7980_v11  ;;  %v6632_v11 = vld [vmem:[%s12184_s10 + $0xa0] sm:$0xf] }
 0x19b   :  { %2669 = vmatpush.bf16.msra.mxu0 %v7964_v61 }
 0x1a9   :  { %v10296_v39 = vpop.f32.mrf.mxu3 }
 0x1af   :  { %v2326_v56 = vpop.f32.mrf.mxu1 }
 0x1b1   :  { %v2367_v50 = vpop.f32.mrf.mxu3 }
 0x1b5   :  { %v2274_v60 = vpop.f32.mrf.mxu2 }
 0x1b6   :  { %v2275_v12 = vadd.f32 %v2274_v60, %v2262_v43 }
 0x1b7   :  { %v2328_v63 = vpop.f32.mrf.mxu1 }
 0x1bd   :  { %v2276_v62 = vpop.f32.mrf.mxu2 }
 0x1c9   :  { %v10328_v0 = vpop.f32.mrf.mxu3 }
 0x1d1   :  { %v2432_v53 = vpop.f32.mrf.mxu3 }
 0x1d7   :  { %v2287_v13 = vpop.f32.mrf.mxu0 }
 0x1d8   :  { %v2288_v14 = vadd.f32 %v2287_v13, %v2275_v12  ;;  %v2391_v15 = vpop.f32.mrf.mxu1  ;;  %v6664_v12 = vld [vmem:[%s12184_s10 + $0xe0] sm:$0xf]  ;;  %v8019_v13 = vld [vmem:[%s12184_s10 + $0xec] sm:$0xf0] }
 0x1da   :  { %v2447_v7 = vmax.f32 %v2288_v14, 0.0  ;;  %v6648_v14 = vld [vmem:[%s12184_s10 + $0xc0] sm:$0xf] }
 0x1dc   :  { %v2451_v18 = vpack.c.bf16 %v2447_v7, %v2447_v7  ;;  %v6792_v7 = vld [vmem:[%s12184_s10 + $0x1e0] sm:$0xf] }
 0x1dd   :  { %v2339_v19 = vpop.f32.mrf.mxu2 }
 0x1de   :  { %2670 = vmatmul.bf16.vlgmr.msra.gmra.mxu0 %v2451_v18  ;;  %v6649_v18 = vor.u32 %v8015_v16, %v6648_v14  ;;  %v7995_v14 = vld [vmem:[%s12184_s10 + $0x2c] sm:$0xf0]  ;;  %v8001_v16 = vld [vmem:[%s12184_s10 + $0x64] sm:$0xf] }
 0x1df   :  { %v2289_v20 = vpop.f32.mrf.mxu0 }
 0x1e0   :  { %v2393_v21 = vpop.f32.mrf.mxu1  ;;  %v8011_v20 = vld [vmem:[%s12184_s10 + $0xac] sm:$0xf0] }
 0x1e5   :  { %v2341_v23 = vpop.f32.mrf.mxu2 }
 0x1e6   :  { %v8047_v23 = vld [vmem:[%s12184_s10 + $0x1cc] sm:$0xf0] }
 0x1e7   :  { %v2313_v24 = vpop.f32.mrf.mxu0 }
 0x1e8   :  { %v2314_v25 = vadd.f32 %v2313_v24, %v2301_v31  ;;  %v2404_v26 = vpop.f32.mrf.mxu1  ;;  %v6616_v31 = vld [vmem:[%s12184_s10 + $0x80] sm:$0xf]  ;;  %v6777_v24 = vor.u32 %v8047_v23, %v6776_v22  ;;  %v8063_v23 = vld [vmem:[%s12184_s10 + $0x24c] sm:$0xf0] }
 0x1e9   :  { %v2405_v35 = vadd.f32 %v2404_v26, %v1731_v47  ;;  %v6633_v26 = vor.u32 %v8011_v20, %v6632_v11  ;;  %v6744_v47 = vld [vmem:[%s12184_s10 + $0x180] sm:$0xf] }
 0x1ea   :  { %v2327_v27 = vadd.f32 %v2326_v56, %v2314_v25  ;;  %v6760_v25 = vld [vmem:[%s12184_s10 + $0x1a0] sm:$0xf] }
 0x1eb   :  { %v6696_v11 = vld [vmem:[%s12184_s10 + $0x120] sm:$0xf] }
 0x1ec   :  { %v2340_v32 = vadd.f32 %v2339_v19, %v2327_v27  ;;  %v8051_v19 = vld [vmem:[%s12184_s10 + $0x1ec] sm:$0xf0]  ;;  %v6840_v22 = vld [vmem:[%s12184_s10 + $0x240] sm:$0xf] }
 0x1ed   :  { %v2352_v33 = vpop.f32.mrf.mxu2  ;;  %v6793_v21 = vor.u32 %v8051_v19, %v6792_v7  ;;  %v8043_v27 = vld [vmem:[%s12184_s10 + $0x1ac] sm:$0xf0]  ;;  %v6602_v7 = vld [vmem:[%s12184_s10 + $0x70] sm:$0xf0] }
 0x1ee   :  { %v2448_v17 = vmax.f32 %v2340_v32, 0.0  ;;  %v2353_v57 = vadd.f32 %v2352_v33, %v1730_v37  ;;  %v8083_v32 = vld [vmem:[%s12184_s10 + $0x2ec] sm:$0xf0]  ;;  %v6936_v37 = vld [vmem:[%s12184_s10 + $0x300] sm:$0xf] }
 0x1ef   :  { %v2315_v38 = vpop.f32.mrf.mxu0  ;;  %3419 = vmatpush.bf16.msrb.mxu0 %v6793_v21  ;;  %v8007_v33 = vld [vmem:[%s12184_s10 + $0x8c] sm:$0xf0] }
 0x1f0   :  { %v2452_v51 = vpack.c.bf16 %v2448_v17, %v2448_v17  ;;  %v2406_v40 = vpop.f32.mrf.mxu1  ;;  %v2366_v30 = vadd.f32 %v10296_v39, %v2353_v57  ;;  %v6921_v17 = vor.u32 %v8083_v32, %v6920_v29  ;;  %v8087_v38 = vld [vmem:[%s12184_s10 + $0x30c] sm:$0xf0]  ;;  %v6666_v57 = vld [vmem:[%s12184_s10 + $0xf0] sm:$0xf0] }
 0x1f1   :  { %v8017_v40 = vld [vmem:[%s12184_s10 + $0xe4] sm:$0xf]  ;;  %v8027_v21 = vld [vmem:[%s12184_s10 + $0x12c] sm:$0xf0]  ;;  %v6794_v29 = vld [vmem:[%s12184_s10 + $0x1f0] sm:$0xf0] }
 0x1f2   :  { %2683 = vmatmul.bf16.vlgmr.msrb.gmra.mxu1 %v2452_v51  ;;  %v6937_v51 = vor.u32 %v8087_v38, %v6936_v37  ;;  %v6697_v32 = vor.u32 %v8027_v21, %v6696_v11  ;;  %v6680_v38 = vld [vmem:[%s12184_s10 + $0x100] sm:$0xf]  ;;  %v7989_v11 = vld [vmem:[%s12184_s10 + $0x4] sm:$0xf] }
 0x1f3   :  { %3420 = vmatpush.bf16.msrb.mxu0 %v6777_v24  ;;  %3432 = vmatpush.bf16.msra.mxu1 %v6921_v17  ;;  %v7991_v24 = vld [vmem:[%s12184_s10 + $0xc] sm:$0xf0] }
 0x1f4   :  { %3452 = vmatpush.bf16.msra.mxu2 %v6937_v51  ;;  %v8023_v51 = vld [vmem:[%s12184_s10 + $0x10c] sm:$0xf0] }
 0x1f5   :  { %v2354_v28 = vpop.f32.mrf.mxu2 }
 0x1f6   :  { %v6600_v28 = vld [vmem:[%s12184_s10 + $0x60] sm:$0xf] }
 0x1f7   :  { %v2378_v43 = vpop.f32.mrf.mxu0 }
 0x1f8   :  { %v2379_v44 = vadd.f32 %v2378_v43, %v2366_v30  ;;  %v6761_v30 = vor.u32 %v8043_v27, %v6760_v25  ;;  %v6669_v43 = vor.u32 %v8017_v40, %v6666_v57  ;;  %v6605_v25 = vor.u32 %v8001_v16, %v6602_v7  ;;  %v8049_v27 = vld [vmem:[%s12184_s10 + $0x1e4] sm:$0xf]  ;;  %v6874_v16 = vld [vmem:[%s12184_s10 + $0x290] sm:$0xf0] }
 0x1f9   :  { %v8081_v57 = vld [vmem:[%s12184_s10 + $0x2e4] sm:$0xf] }
 0x1fa   :  { %v2392_v46 = vadd.f32 %v2391_v15, %v2379_v44  ;;  %v6665_v15 = vor.u32 %v8019_v13, %v6664_v12  ;;  %v6904_v44 = vld [vmem:[%s12184_s10 + $0x2c0] sm:$0xf]  ;;  %3421 = vmatpush.bf16.msrb.mxu0 %v6761_v30  ;;  %v8067_v12 = vld [vmem:[%s12184_s10 + $0x26c] sm:$0xf0]  ;;  %v6797_v30 = vor.u32 %v8049_v27, %v6794_v29  ;;  %v6858_v27 = vld [vmem:[%s12184_s10 + $0x270] sm:$0xf0] }
 0x1fb   :  { %v6568_v13 = vld [vmem:[%s12184_s10 + $0x20] sm:$0xf]  ;;  %v6857_v19 = vor.u32 %v8067_v12, %v6856_v55  ;;  %v8055_v55 = vld [vmem:[%s12184_s10 + $0x20c] sm:$0xf0]  ;;  %v8025_v12 = vld [vmem:[%s12184_s10 + $0x124] sm:$0xf] }
 0x1fc   :  { %v2449_v48 = vmax.f32 %v2392_v46, 0.0  ;;  %3406 = vmatpush.bf16.msrb.mxu3 %v6665_v15  ;;  %v6617_v46 = vor.u32 %v8007_v33, %v6616_v31  ;;  %v6569_v20 = vor.u32 %v7995_v14, %v6568_v13  ;;  %v6552_v31 = vld [vmem:[%s12184_s10] sm:$0xf]  ;;  %v6841_v33 = vor.u32 %v8063_v23, %v6840_v22  ;;  %v6698_v14 = vld [vmem:[%s12184_s10 + $0x130] sm:$0xf0] }
 0x1fd   :  { %v6553_v37 = vor.u32 %v7991_v24, %v6552_v31  ;;  %v6701_v7 = vor.u32 %v8025_v12, %v6698_v14  ;;  %v6938_v22 = vld [vmem:[%s12184_s10 + $0x310] sm:$0xf0]  ;;  %v8021_v31 = vld [vmem:[%s12184_s10 + $0x104] sm:$0xf]  ;;  %v6672_v12 = vld [vmem:[%s12184_s10 + $0xe8] sm:$0xf] }
 0x1fe   :  { %v2453_v34 = vpack.c.bf16 %v2449_v48, %v2449_v48  ;;  %v2417_v49 = vpop.f32.mrf.mxu2  ;;  %v8039_v48 = vld [vmem:[%s12184_s10 + $0x18c] sm:$0xf0]  ;;  %v6682_v24 = vld [vmem:[%s12184_s10 + $0x110] sm:$0xf0] }
 0x1ff   :  { %v2380_v36 = vpop.f32.mrf.mxu0  ;;  %v2418_v50 = vadd.f32 %v2417_v49, %v2405_v35  ;;  %v8003_v49 = vld [vmem:[%s12184_s10 + $0x6c] sm:$0xf0]  ;;  %v8013_v35 = vld [vmem:[%s12184_s10 + $0xc4] sm:$0xf] }
 0x200   :  { %2696 = vmatmul.bf16.vlgmr.msrb.gmra.mxu2 %v2453_v34  ;;  %3407 = vmatpush.bf16.msrb.mxu3 %v6649_v18  ;;  %v8079_v34 = vld [vmem:[%s12184_s10 + $0x2cc] sm:$0xf0] }
 0x201   :  { %v2431_v54 = vadd.f32 %v10328_v0, %v2418_v50  ;;  %3458 = vmatpush.bf16.msrb.mxu2 %v6669_v43  ;;  %v6905_v36 = vor.u32 %v8079_v34, %v6904_v44  ;;  %v6650_v50 = vld [vmem:[%s12184_s10 + $0xd0] sm:$0xf0]  ;;  %v8045_v44 = vld [vmem:[%s12184_s10 + $0x1c4] sm:$0xf] }
 0x202   :  { %v8077_v34 = vld [vmem:[%s12184_s10 + $0x2c4] sm:$0xf] }
 0x203   :  { %3433 = vmatpush.bf16.msra.mxu1 %v6905_v36  ;;  %v8041_v36 = vld [vmem:[%s12184_s10 + $0x1a4] sm:$0xf] }
 0x204   :  { %3408 = vmatpush.bf16.msrb.mxu3 %v6633_v26  ;;  %v2717_v26 = vld [vmem:[%s12185_s1] sm:$0xff] }
 0x206   :  { %v2419_v52 = vpop.f32.mrf.mxu2 }
 0x207   :  { %v2443_v56 = vpop.f32.mrf.mxu0  ;;  %v6653_v52 = vor.u32 %v8013_v35, %v6650_v50  ;;  %v6762_v35 = vld [vmem:[%s12184_s10 + $0x1b0] sm:$0xf0] }
 0x208   :  { %v2444_v58 = vadd.f32 %v2443_v56, %v2431_v54  ;;  %v6888_v54 = vld [vmem:[%s12184_s10 + $0x2a0] sm:$0xf]  ;;  %v8075_v56 = vld [vmem:[%s12184_s10 + $0x2ac] sm:$0xf0]  ;;  %3409 = vmatpush.bf16.msrb.mxu3 %v6617_v46  ;;  %v6778_v46 = vld [vmem:[%s12184_s10 + $0x1d0] sm:$0xf0] }
 0x209   :  { %3459 = vmatpush.bf16.msrb.mxu2 %v6653_v52  ;;  %v6765_v52 = vor.u32 %v8041_v36, %v6762_v35  ;;  %v2725_v36 = vld [vmem:[%s12187_s9] sm:$0xf] }
 0x20a   :  { %v2450_v59 = vmax.f32 %v2444_v58, 0.0  ;;  %v6584_v58 = vld [vmem:[%s12184_s10 + $0x40] sm:$0xf] }
 0x20c   :  { %v2454_v60 = vpack.c.bf16 %v2450_v59, %v2450_v59  ;;  %v6745_v59 = vor.u32 %v8039_v48, %v6744_v47  ;;  %v6681_v47 = vor.u32 %v8023_v51, %v6680_v38  ;;  %v6826_v38 = vld [vmem:[%s12184_s10 + $0x230] sm:$0xf0] }
 0x20e   :  { %6549 = vmatmul.msk.bf16.vlgmr.msra.gmra.mxu3 %vm1250_vm0, %v2454_v60  ;;  %v6889_v60 = vor.u32 %v8075_v56, %v6888_v54  ;;  %3422 = vmatpush.bf16.msrb.mxu0 %v6745_v59  ;;  %v8037_v54 = vld [vmem:[%s12184_s10 + $0x184] sm:$0xf]  ;;  %v6746_v56 = vld [vmem:[%s12184_s10 + $0x190] sm:$0xf0] }
 0x20f   :  { %v2445_v39 = vpop.f32.mrf.mxu0  ;;  %v8033_v59 = vld [vmem:[%s12184_s10 + $0x164] sm:$0xf] }
 0x210   :  { %v8009_v39 = vld [vmem:[%s12184_s10 + $0xa4] sm:$0xf]  ;;  %3434 = vmatpush.bf16.msra.mxu1 %v6889_v60  ;;  %v6730_v60 = vld [vmem:[%s12184_s10 + $0x170] sm:$0xf0] }
 0x25b   :  { %v2671_v61 = vpop.f32.mrf.mxu0 }
 0x25c   :  { %v2672_v62 = vadd.f32 %v8270_v2, %v2671_v61  ;;  %v6601_v61 = vor.u32 %v8003_v49, %v6600_v28  ;;  %v6922_v28 = vld [vmem:[%s12184_s10 + $0x2f0] sm:$0xf0]  ;;  %v6781_v49 = vor.u32 %v8045_v44, %v6778_v46 }
 0x25d   :  { %v6925_v48 = vor.u32 %v8081_v57, %v6922_v28  ;;  %v8053_v57 = vld [vmem:[%s12184_s10 + $0x204] sm:$0xf]  ;;  %v6810_v28 = vld [vmem:[%s12184_s10 + $0x210] sm:$0xf0] }
 0x25e   :  { %3410 = vmatpush.bf16.msrb.mxu3 %v6601_v61  ;;  %v7997_v61 = vld [vmem:[%s12184_s10 + $0x44] sm:$0xf] }
 0x263   :  { %v2673_v41 = vpop.f32.mrf.mxu0 }
 0x264   :  { %v6728_v41 = vld [vmem:[%s12184_s10 + $0x160] sm:$0xf] }
 0x26f   :  { %v2684_v42 = vpop.f32.mrf.mxu1 }
 0x270   :  { %v2685_v4 = vadd.f32 %v2684_v42, %v2672_v62  ;;  %v8035_v42 = vld [vmem:[%s12184_s10 + $0x16c] sm:$0xf0] }
 0x271   :  { %v8071_v62 = vld [vmem:[%s12184_s10 + $0x28c] sm:$0xf0] }
 0x277   :  { %v2686_v63 = vpop.f32.mrf.mxu1 }
 0x278   :  { %v6634_v63 = vld [vmem:[%s12184_s10 + $0xb0] sm:$0xf0] }
 0x279   :  { %v6637_v2 = vor.u32 %v8009_v39, %v6634_v63  ;;  %v6733_v39 = vor.u32 %v8033_v59, %v6730_v60 }
 0x27b   :  { %3460 = vmatpush.bf16.msrb.mxu2 %v6637_v2  ;;  %v8029_v2 = vld [vmem:[%s12184_s10 + $0x144] sm:$0xf] }
 0x283   :  { %v2697_v1 = vpop.f32.mrf.mxu2 }
 0x284   :  { %v2698_v0 = vadd.f32 %v2697_v1, %v2685_v4  ;;  %v7999_v1 = vld [vmem:[%s12184_s10 + $0x4c] sm:$0xf0]  ;;  %v8005_v4 = vld [vmem:[%s12184_s10 + $0x84] sm:$0xf] }
 0x28b   :  { %v2699_v3 = vpop.f32.mrf.mxu2 }
 0x28c   :  { %v6872_v3 = vld [vmem:[%s12184_s10 + $0x280] sm:$0xf] }
 0x291   :  { %v2710_v53 = vpop.f32.mrf.mxu3 }
 0x292   :  { %v10382_v5 = vadd.f32 %v2710_v53, %v2698_v0  ;;  %v6618_v0 = vld [vmem:[%s12184_s10 + $0x90] sm:$0xf0]  ;;  %v6729_v53 = vor.u32 %v8035_v42, %v6728_v41  ;;  %v6824_v41 = vld [vmem:[%s12184_s10 + $0x220] sm:$0xf]  ;;  %v8059_v42 = vld [vmem:[%s12184_s10 + $0x22c] sm:$0xf0] }
 0x293   :  { %v6621_v15 = vor.u32 %v8005_v4, %v6618_v0  ;;  %v6890_v0 = vld [vmem:[%s12184_s10 + $0x2b0] sm:$0xf0] }
 0x294   :  { %v2714_v6 = vmul.f32 0.5, %v10382_v5  ;;  %5248 = vst.msk [vmem:[%s12183_s15] sm:$0xff] %vm5247_vm1, %v10382_v5  ;;  %3423 = vmatpush.bf16.msrb.mxu0 %v6729_v53  ;;  %v7993_v53 = vld [vmem:[%s12184_s10 + $0x24] sm:$0xf] }
 0x295   :  { %3461 = vmatpush.bf16.msrb.mxu2 %v6621_v15  ;;  %v8069_v15 = vld [vmem:[%s12184_s10 + $0x284] sm:$0xf] }
 0x296   :  { %v2715_v8 = vmul.f32 1.442695, %v2714_v6  ;;  %v6712_v6 = vld [vmem:[%s12184_s10 + $0x140] sm:$0xf] }
 0x298   :  { %8271 = vpow2.f32 %v2715_v8  ;;  %v6873_v8 = vor.u32 %v8071_v62, %v6872_v3  ;;  %v6714_v3 = vld [vmem:[%s12184_s10 + $0x150] sm:$0xf0]  ;;  %v8073_v62 = vld [vmem:[%s12184_s10 + $0x2a4] sm:$0xf] }
 0x299   :  { %v2712_v9 = vpop.f32.mrf.mxu3  ;;  %3462 = vmatpush.bf16.msrb.mxu2 %v6605_v25  ;;  %v6717_v4 = vor.u32 %v8029_v2, %v6714_v3  ;;  %v6685_v25 = vor.u32 %v8021_v31, %v6682_v24 }
 0x29a   :  { %v6585_v9 = vor.u32 %v7999_v1, %v6584_v58  ;;  %3435 = vmatpush.bf16.msra.mxu1 %v6873_v8  ;;  %v6749_v58 = vor.u32 %v8037_v54, %v6746_v56  ;;  %v6825_v1 = vor.u32 %v8059_v42, %v6824_v41  ;;  %v6893_v8 = vor.u32 %v8073_v62, %v6890_v0 }
 0x29b   :  { %v2751_v41 = vperm.slane %v2725_v36, 2  ;;  %v2752_v42 = vperm.slane %v2725_v36, 3 }
 0x29c   :  { %3411 = vmatpush.bf16.msrb.mxu3 %v6585_v9 }
 0x29e   :  { %v8272_v10 = vpop.eup %8271  ;;  %3436 = vmatpush.bf16.msra.mxu1 %v6857_v19  ;;  %v6554_v19 = vld [vmem:[%s12184_s10 + $0x10] sm:$0xf0] }
 0x29f   :  { %2719 = vrot.lane.b32.xlu0 %v8272_v10, %s8301_s7  ;;  %v8031_v10 = vld [vmem:[%s12184_s10 + $0x14c] sm:$0xf0]  ;;  %v6557_v21 = vor.u32 %v7989_v11, %v6554_v19  ;;  %v8052_v11 = vld [vmem:[%s12184_s10 + $0x1f4] sm:$0xf0]  ;;  %v6928_v19 = vld [vmem:[%s12184_s10 + $0x2e8] sm:$0xf] }
 0x2a0   :  { %v6713_v18 = vor.u32 %v8031_v10, %v6712_v6  ;;  %3412 = vmatpush.bf16.msrb.mxu3 %v6569_v20  ;;  %v6570_v6 = vld [vmem:[%s12184_s10 + $0x30] sm:$0xf0]  ;;  %v6808_v10 = vld [vmem:[%s12184_s10 + $0x200] sm:$0xf]  ;;  %v8085_v20 = vld [vmem:[%s12184_s10 + $0x304] sm:$0xf] }
 0x2a1   :  { %v6573_v9 = vor.u32 %v7993_v53, %v6570_v6  ;;  %v6809_v13 = vor.u32 %v8055_v55, %v6808_v10  ;;  %v6941_v23 = vor.u32 %v8085_v20, %v6938_v22  ;;  %v8084_v20 = vld [vmem:[%s12184_s10 + $0x2f4] sm:$0xf0] }
 0x2a2   :  { %3424 = vmatpush.bf16.msrb.mxu0 %v6713_v18  ;;  %3437 = vmatpush.bf16.msra.mxu1 %v6841_v33  ;;  %v6877_v18 = vor.u32 %v8069_v15, %v6874_v16  ;;  %v6842_v33 = vld [vmem:[%s12184_s10 + $0x250] sm:$0xf0] }
 0x2a4   :  { %3413 = vmatpush.bf16.msrb.mxu3 %v6553_v37  ;;  %v8057_v37 = vld [vmem:[%s12184_s10 + $0x224] sm:$0xf] }
 0x2a5   :  { %v6829_v51 = vor.u32 %v8057_v37, %v6826_v38  ;;  %v6656_v37 = vld [vmem:[%s12184_s10 + $0xc8] sm:$0xf]  ;;  %v6929_v38 = vor.u32 %v8084_v20, %v6928_v19 }
 0x2a6   :  { %3425 = vmatpush.bf16.msrb.mxu0 %v6697_v32  ;;  %3438 = vmatpush.bf16.msra.mxu1 %v6825_v1  ;;  %v8061_v32 = vld [vmem:[%s12184_s10 + $0x244] sm:$0xf]  ;;  %v6576_v20 = vld [vmem:[%s12184_s10 + $0x28] sm:$0xf] }
 0x2a8   :  { %3471 = vmatpush.bf16.msra.mxu3 %v6797_v30  ;;  %v6813_v30 = vor.u32 %v8053_v57, %v6810_v28  ;;  %v8048_v57 = vld [vmem:[%s12184_s10 + $0x1d4] sm:$0xf0] }
 0x2aa   :  { %3426 = vmatpush.bf16.msrb.mxu0 %v6681_v47  ;;  %3439 = vmatpush.bf16.msra.mxu1 %v6809_v13 }
 0x2ac   :  { %3472 = vmatpush.bf16.msra.mxu3 %v6781_v49 }
 0x2ae   :  { %3484 = vmatpush.bf16.msra.mxu0 %v6925_v48  ;;  %3504 = vmatpush.bf16.msrb.mxu1 %v6941_v23 }
 0x2b0   :  { %3473 = vmatpush.bf16.msra.mxu3 %v6765_v52 }
 0x2b4   :  { %3474 = vmatpush.bf16.msra.mxu3 %v6749_v58 }
 0x2b8   :  { %3475 = vmatpush.bf16.msra.mxu3 %v6733_v39 }
 0x2bc   :  { %3476 = vmatpush.bf16.msra.mxu3 %v6717_v4 }
 0x2c0   :  { %3477 = vmatpush.bf16.msra.mxu3 %v6701_v7  ;;  %v8020_v7 = vld [vmem:[%s12184_s10 + $0xf4] sm:$0xf0] }
 0x2c4   :  { %3478 = vmatpush.bf16.msra.mxu3 %v6685_v25  ;;  %v8088_v25 = vld [vmem:[%s12184_s10 + $0x314] sm:$0xf0] }
 0x311   :  { %v2720_v17 = vpop.permute.xlu0 %2719 }
 0x312   :  { %v2722_v40 = vmul.f32 %v2720_v17, %v2717_v26  ;;  %v8065_v26 = vld [vmem:[%s12184_s10 + $0x264] sm:$0xf]  ;;  %v6845_v17 = vor.u32 %v8061_v32, %v6842_v33 }
 0x313   :  { %v6861_v29 = vor.u32 %v8065_v26, %v6858_v27  ;;  %v6673_v26 = vor.u32 %v8020_v7, %v6672_v12  ;;  %v8014_v7 = vld [vmem:[%s12184_s10 + $0xcc] sm:$0xf] }
 0x314   :  { %v2723_v43 = vadd.f32 %v2722_v40, %v10382_v5  ;;  %v6906_v5 = vld [vmem:[%s12184_s10 + $0x2d0] sm:$0xf0]  ;;  %v2724_v40 = vld [vmem:[%s12186_s8] sm:$0xff] }
 0x315   :  { %v6909_v50 = vor.u32 %v8077_v34, %v6906_v5  ;;  %v2733_v44 = vperm.slane %v2724_v40, 2  ;;  %v2734_v46 = vperm.slane %v2724_v40, 4  ;;  %v2735_v47 = vperm.slane %v2724_v40, 6 }
 0x316   :  { %2762 = vperm.xlu1 %8268, %v2723_v43   ;;  %2728 = vperm.xlu0 %8267, %v2723_v43   ;;  %v2732_v43 = vperm.slane %v2724_v40, 0  ;;  %v2765_v48 = vperm.slane %v2724_v40, 1  ;;  %v2766_v34 = vperm.slane %v2724_v40, 3  ;;  %v2767_v5 = vperm.slane %v2724_v40, 5 }
 0x317   :  { %3485 = vmatpush.bf16.msra.mxu0 %v6909_v50  ;;  %v2768_v49 = vperm.slane %v2724_v40, 7  ;;  %v2741_v50 = vperm.slane %v2733_v44, 0  ;;  %v2742_v52 = vperm.slane %v2734_v46, 0  ;;  %v2743_v54 = vperm.slane %v2735_v47, 0  ;;  %v6784_v40 = vld [vmem:[%s12184_s10 + $0x1c8] sm:$0xf] }
 0x318   :  { %v2740_v35 = vperm.slane %v2732_v43, 0  ;;  %v2773_v56 = vperm.slane %v2765_v48, 1  ;;  %v2774_v58 = vperm.slane %v2766_v34, 1  ;;  %v2775_v59 = vperm.slane %v2767_v5, 1  ;;  %v8080_v43 = vld [vmem:[%s12184_s10 + $0x2d4] sm:$0xf0] }
 0x319   :  { %v2776_v60 = vperm.slane %v2768_v49, 1  ;;  %v6785_v46 = vor.u32 %v8048_v57, %v6784_v40  ;;  %v6640_v47 = vld [vmem:[%s12184_s10 + $0xa8] sm:$0xf]  ;;  %v8012_v34 = vld [vmem:[%s12184_s10 + $0xb4] sm:$0xf0] }
 0x31a   :  { %v6768_v5 = vld [vmem:[%s12184_s10 + $0x1a8] sm:$0xf]  ;;  %v8044_v49 = vld [vmem:[%s12184_s10 + $0x1b4] sm:$0xf0] }
 0x31b   :  { %3486 = vmatpush.bf16.msra.mxu0 %v6893_v8  ;;  %v6560_v40 = vld [vmem:[%s12184_s10 + $0x8] sm:$0xf]  ;;  %v7992_v57 = vld [vmem:[%s12184_s10 + $0x14] sm:$0xf0] }
 0x31e   :  { %8269 = vset.pattern.permute.xlu0 %v8302_v45  ;;  %v6586_v45 = vld [vmem:[%s12184_s10 + $0x50] sm:$0xf0] }
 0x31f   :  { %v6589_v63 = vor.u32 %v7997_v61, %v6586_v45  ;;  %3487 = vmatpush.bf16.msra.mxu0 %v6877_v18  ;;  %v2749_v61 = vperm.slane %v2725_v36, 0  ;;  %v2750_v45 = vperm.slane %v2725_v36, 1  ;;  %v6800_v18 = vld [vmem:[%s12184_s10 + $0x1e8] sm:$0xf] }
 0x320   :  { %v6801_v27 = vor.u32 %v8052_v11, %v6800_v18  ;;  %v6896_v36 = vld [vmem:[%s12184_s10 + $0x2a8] sm:$0xf]  ;;  %v6658_v18 = vld [vmem:[%s12184_s10 + $0xd8] sm:$0xf0] }
 0x321   :  { %3463 = vmatpush.bf16.msrb.mxu2 %v6589_v63 }
 0x323   :  { %3488 = vmatpush.bf16.msra.mxu0 %v6861_v29 }
 0x325   :  { %3464 = vmatpush.bf16.msrb.mxu2 %v6573_v9 }
 0x327   :  { %3489 = vmatpush.bf16.msra.mxu0 %v6845_v17 }
 0x329   :  { %3465 = vmatpush.bf16.msrb.mxu2 %v6557_v21  ;;  %v6944_v21 = vld [vmem:[%s12184_s10 + $0x308] sm:$0xf] }
 0x32a   :  { %v6945_v28 = vor.u32 %v8088_v25, %v6944_v21  ;;  %v7996_v21 = vld [vmem:[%s12184_s10 + $0x34] sm:$0xf0]  ;;  %v6832_v25 = vld [vmem:[%s12184_s10 + $0x228] sm:$0xf] }
 0x32b   :  { %3490 = vmatpush.bf16.msra.mxu0 %v6829_v51  ;;  %v8016_v51 = vld [vmem:[%s12184_s10 + $0xd4] sm:$0xf0] }
 0x32c   :  { %v6657_v44 = vor.u32 %v8016_v51, %v6656_v37  ;;  %v6642_v37 = vld [vmem:[%s12184_s10 + $0xb8] sm:$0xf0] }
 0x32f   :  { %3491 = vmatpush.bf16.msra.mxu0 %v6813_v30  ;;  %v6912_v30 = vld [vmem:[%s12184_s10 + $0x2c8] sm:$0xf] }
 0x330   :  { %v6913_v48 = vor.u32 %v8080_v43, %v6912_v30 }
 0x388   :  { %v2763_v39 = vpop.permute.xlu1 %2762  ;;  %v2729_v63 = vpop.permute.xlu0 %2728 }
 0x389   :  { %v2744_v1 = vmul.f32 %v2740_v35, %v2729_v63  ;;  %v2745_v2 = vmul.f32 %v2741_v50, %v2729_v63  ;;  %v2746_v3 = vmul.f32 %v2742_v52, %v2729_v63  ;;  %v2747_v62 = vmul.f32 %v2743_v54, %v2729_v63  ;;  %v8076_v35 = vld [vmem:[%s12184_s10 + $0x2b4] sm:$0xf0]  ;;  %v6624_v54 = vld [vmem:[%s12184_s10 + $0x88] sm:$0xf] }
 0x38a   :  { %v2777_v4 = vmul.f32 %v2773_v56, %v2763_v39  ;;  %v2778_v0 = vmul.f32 %v2774_v58, %v2763_v39  ;;  %v2779_v53 = vmul.f32 %v2775_v59, %v2763_v39  ;;  %v2780_v6 = vmul.f32 %v2776_v60, %v2763_v39  ;;  %v8008_v58 = vld [vmem:[%s12184_s10 + $0x94] sm:$0xf0]  ;;  %v6752_v59 = vld [vmem:[%s12184_s10 + $0x188] sm:$0xf] }
 0x38b   :  { %v2757_v8 = vadd.f32 %v2749_v61, %v2744_v1  ;;  %v2758_v9 = vadd.f32 %v2750_v45, %v2745_v2  ;;  %v2759_v10 = vadd.f32 %v2751_v41, %v2746_v3  ;;  %v2760_v55 = vadd.f32 %v2752_v42, %v2747_v62  ;;  %v8040_v60 = vld [vmem:[%s12184_s10 + $0x194] sm:$0xf0]  ;;  %v6880_v39 = vld [vmem:[%s12184_s10 + $0x288] sm:$0xf] }
 0x38c   :  { %v6641_v50 = vor.u32 %v8012_v34, %v6640_v47  ;;  %v6769_v52 = vor.u32 %v8044_v49, %v6768_v5  ;;  %v6897_v56 = vor.u32 %v8076_v35, %v6896_v36  ;;  %v8072_v61 = vld [vmem:[%s12184_s10 + $0x294] sm:$0xf0]  ;;  %v6625_v45 = vor.u32 %v8008_v58, %v6624_v54  ;;  %v6608_v42 = vld [vmem:[%s12184_s10 + $0x68] sm:$0xf]  ;;  %v6626_v34 = vld [vmem:[%s12184_s10 + $0x98] sm:$0xf0] }
 0x38d   :  { %v2781_v13 = vadd.f32 %v2777_v4, %v2757_v8  ;;  %v2782_v14 = vadd.f32 %v2778_v0, %v2758_v9  ;;  %v2783_v15 = vadd.f32 %v2779_v53, %v2759_v10  ;;  %v2784_v16 = vadd.f32 %v2780_v6, %v2760_v55  ;;  %v8004_v63 = vld [vmem:[%s12184_s10 + $0x74] sm:$0xf0]  ;;  %v6736_v2 = vld [vmem:[%s12184_s10 + $0x168] sm:$0xf]  ;;  %v8018_v0 = vld [vmem:[%s12184_s10 + $0xec] sm:$0xf] }
 0x38e   :  { %v6753_v41 = vor.u32 %v8040_v60, %v6752_v59  ;;  %v6881_v1 = vor.u32 %v8072_v61, %v6880_v39  ;;  %v8036_v3 = vld [vmem:[%s12184_s10 + $0x174] sm:$0xf0]  ;;  %v6864_v62 = vld [vmem:[%s12184_s10 + $0x268] sm:$0xf]  ;;  %v6674_v53 = vld [vmem:[%s12184_s10 + $0xf8] sm:$0xf0]  ;;  %v6609_v6 = vor.u32 %v8004_v63, %v6608_v42 }
 0x38f   :  { %v2786_v22 = vmax.f32 %v2782_v14, 0.0  ;;  %v2787_v23 = vmax.f32 %v2783_v15, 0.0  ;;  %v2788_v31 = vmax.f32 %v2784_v16, 0.0  ;;  %v2785_v24 = vmax.f32 %v2781_v13, 0.0  ;;  %v8068_v4 = vld [vmem:[%s12184_s10 + $0x274] sm:$0xf0] }
 0x390   :  { %v6737_v8 = vor.u32 %v8036_v3, %v6736_v2  ;;  %v6592_v9 = vld [vmem:[%s12184_s10 + $0x48] sm:$0xf]  ;;  %v8000_v10 = vld [vmem:[%s12184_s10 + $0x54] sm:$0xf0]  ;;  %v6865_v55 = vor.u32 %v8068_v4, %v6864_v62  ;;  %v6677_v12 = vor.u32 %v8018_v0, %v6674_v53  ;;  %v8050_v5 = vld [vmem:[%s12184_s10 + $0x1ec] sm:$0xf] }
 0x391   :  { %v10725_v29 = vpack.c.bf16 %v2786_v22, %v2786_v22  ;;  %v10727_v32 = vpack.c.bf16 %v2787_v23, %v2787_v23  ;;  %v10729_v33 = vpack.c.bf16 %v2788_v31, %v2788_v31  ;;  %v10731_v17 = vpack.c.bf16 %v2785_v24, %v2785_v24  ;;  %v6720_v13 = vld [vmem:[%s12184_s10 + $0x148] sm:$0xf]  ;;  %v8032_v14 = vld [vmem:[%s12184_s10 + $0x154] sm:$0xf0]  ;;  %v6802_v49 = vld [vmem:[%s12184_s10 + $0x1f8] sm:$0xf0] }
 0x392   :  { %v6848_v15 = vld [vmem:[%s12184_s10 + $0x248] sm:$0xf]  ;;  %v8064_v16 = vld [vmem:[%s12184_s10 + $0x254] sm:$0xf0]  ;;  %v6593_v11 = vor.u32 %v8000_v10, %v6592_v9  ;;  %v6721_v19 = vor.u32 %v8032_v14, %v6720_v13  ;;  %v6661_v23 = vor.u32 %v8014_v7, %v6658_v18  ;;  %v8082_v36 = vld [vmem:[%s12184_s10 + $0x2ec] sm:$0xf]  ;;  %v6805_v60 = vor.u32 %v8050_v5, %v6802_v49 }
 0x393   :  { %3414 = vmatmul.bf16.vlgmr.msrb.gmra.mxu3 %v10731_v17  ;;  %3427 = vmatmul.bf16.vlgmr.msrb.gmra.mxu0 %v10725_v29  ;;  %v6849_v22 = vor.u32 %v8064_v16, %v6848_v15  ;;  %v6704_v31 = vld [vmem:[%s12184_s10 + $0x128] sm:$0xf]  ;;  %v8028_v24 = vld [vmem:[%s12184_s10 + $0x134] sm:$0xf0]  ;;  %v6930_v35 = vld [vmem:[%s12184_s10 + $0x2f8] sm:$0xf0] }
 0x394   :  { %3440 = vmatmul.bf16.vlgmr.msra.gmra.mxu1 %v10727_v32  ;;  %6950 = vmatmul.msk.bf16.vlgmr.msra.gmra.mxu2 %vm1250_vm0, %v10729_v33  ;;  %v6705_v51 = vor.u32 %v8028_v24, %v6704_v31  ;;  %v8056_v47 = vld [vmem:[%s12184_s10 + $0x214] sm:$0xf0]  ;;  %v8002_v58 = vld [vmem:[%s12184_s10 + $0x6c] sm:$0xf]  ;;  %v6610_v59 = vld [vmem:[%s12184_s10 + $0x78] sm:$0xf0]  ;;  %v6933_v39 = vor.u32 %v8082_v36, %v6930_v35 }
 0x395   :  { %3510 = vmatpush.bf16.msra.mxu1 %v6673_v26  ;;  %3523 = vmatpush.bf16.msra.mxu2 %v6801_v27  ;;  %v8060_v26 = vld [vmem:[%s12184_s10 + $0x234] sm:$0xf0]  ;;  %v8010_v27 = vld [vmem:[%s12184_s10 + $0xac] sm:$0xf]  ;;  %v6786_v42 = vld [vmem:[%s12184_s10 + $0x1d8] sm:$0xf0]  ;;  %v6613_v2 = vor.u32 %v8002_v58, %v6610_v59 }
 0x396   :  { %3536 = vmatpush.bf16.msrb.mxu3 %v6929_v38  ;;  %3556 = vmatpush.bf16.msrb.mxu0 %v6945_v28  ;;  %v6577_v38 = vor.u32 %v7996_v21, %v6576_v20  ;;  %v6688_v28 = vld [vmem:[%s12184_s10 + $0x108] sm:$0xf]  ;;  %v6833_v30 = vor.u32 %v8060_v26, %v6832_v25  ;;  %v6645_v43 = vor.u32 %v8010_v27, %v6642_v37  ;;  %v8046_v61 = vld [vmem:[%s12184_s10 + $0x1cc] sm:$0xf]  ;;  %v8141_v4 = vld [vmem:[%s12188_s12 + $0x1a0] sm:$0xf0] }
 0x397   :  { %v8078_v63 = vld [vmem:[%s12184_s10 + $0x2cc] sm:$0xf]  ;;  %v7152_v62 = vld [vmem:[%s12188_s12 + $0x188] sm:$0xf]  ;;  %v6789_v0 = vor.u32 %v8046_v61, %v6786_v42  ;;  %v6770_v10 = vld [vmem:[%s12184_s10 + $0x1b8] sm:$0xf0] }
 0x398   :  { %v8042_v9 = vld [vmem:[%s12184_s10 + $0x1ac] sm:$0xf]  ;;  %v7153_v13 = vor.u32 %v8141_v4, %v7152_v62  ;;  %v7124_v14 = vld [vmem:[%s12188_s12 + $0x150] sm:$0xf]  ;;  %v6754_v21 = vld [vmem:[%s12184_s10 + $0x198] sm:$0xf0] }
 0x399   :  { %3511 = vmatpush.bf16.msra.mxu1 %v6657_v44  ;;  %3524 = vmatpush.bf16.msra.mxu2 %v6785_v46  ;;  %v8024_v44 = vld [vmem:[%s12184_s10 + $0x114] sm:$0xf0]  ;;  %v6816_v46 = vld [vmem:[%s12184_s10 + $0x208] sm:$0xf]  ;;  %v8134_v15 = vld [vmem:[%s12188_s12 + $0x168] sm:$0xf0]  ;;  %v6773_v7 = vor.u32 %v8042_v9, %v6770_v10 }
 0x39a   :  { %3537 = vmatpush.bf16.msrb.mxu3 %v6913_v48  ;;  %v8006_v48 = vld [vmem:[%s12184_s10 + $0x8c] sm:$0xf]  ;;  %v6817_v54 = vor.u32 %v8056_v47, %v6816_v46  ;;  %v7125_v31 = vor.u32 %v8134_v15, %v7124_v14  ;;  %v7096_v24 = vld [vmem:[%s12188_s12 + $0x118] sm:$0xf]  ;;  %v8127_v25 = vld [vmem:[%s12188_s12 + $0x130] sm:$0xf0] }
 0x39b   :  { %v8038_v20 = vld [vmem:[%s12184_s10 + $0x18c] sm:$0xf]  ;;  %v8120_v46 = vld [vmem:[%s12188_s12 + $0xf8] sm:$0xf0]  ;;  %v7376_v47 = vld [vmem:[%s12188_s12 + $0x348] sm:$0xf] }
 0x39c   :  { %v7990_v27 = vld [vmem:[%s12184_s10 + $0xc] sm:$0xf]  ;;  %v6757_v37 = vor.u32 %v8038_v20, %v6754_v21  ;;  %v6722_v35 = vld [vmem:[%s12184_s10 + $0x158] sm:$0xf0]  ;;  %v8113_v59 = vld [vmem:[%s12188_s12 + $0xc0] sm:$0xf0] }
 0x39d   :  { %3512 = vmatpush.bf16.msra.mxu1 %v6641_v50  ;;  %3525 = vmatpush.bf16.msra.mxu2 %v6769_v52  ;;  %v6561_v50 = vor.u32 %v7992_v57, %v6560_v40  ;;  %v6689_v52 = vor.u32 %v8024_v44, %v6688_v28  ;;  %v8034_v40 = vld [vmem:[%s12184_s10 + $0x16c] sm:$0xf]  ;;  %v6738_v57 = vld [vmem:[%s12184_s10 + $0x178] sm:$0xf0]  ;;  %v7068_v44 = vld [vmem:[%s12188_s12 + $0xe0] sm:$0xf] }
 0x39e   :  { %3538 = vmatpush.bf16.msrb.mxu3 %v6897_v56  ;;  %v6629_v56 = vor.u32 %v8006_v48, %v6626_v34  ;;  %v8066_v28 = vld [vmem:[%s12184_s10 + $0x26c] sm:$0xf]  ;;  %v8197_v48 = vld [vmem:[%s12188_s12 + $0x360] sm:$0xf0]  ;;  %v6741_v5 = vor.u32 %v8034_v40, %v6738_v57  ;;  %v6706_v42 = vld [vmem:[%s12184_s10 + $0x138] sm:$0xf0] }
 0x39f   :  { %v8030_v36 = vld [vmem:[%s12184_s10 + $0x14c] sm:$0xf]  ;;  %v7377_v58 = vor.u32 %v8197_v48, %v7376_v47  ;;  %v6818_v10 = vld [vmem:[%s12184_s10 + $0x218] sm:$0xf0]  ;;  %v8099_v14 = vld [vmem:[%s12188_s12 + $0x50] sm:$0xf0] }
 0x3a0   :  { %v6725_v61 = vor.u32 %v8030_v36, %v6722_v35  ;;  %v8106_v4 = vld [vmem:[%s12188_s12 + $0x88] sm:$0xf0]  ;;  %v7378_v20 = vld [vmem:[%s12188_s12 + $0x364] sm:$0xf0]  ;;  %v7236_v47 = vld [vmem:[%s12188_s12 + $0x230] sm:$0xf] }
 0x3a1   :  { %3513 = vmatpush.bf16.msra.mxu1 %v6625_v45  ;;  %3526 = vmatpush.bf16.msra.mxu2 %v6753_v41  ;;  %v8086_v45 = vld [vmem:[%s12184_s10 + $0x30c] sm:$0xf]  ;;  %v6946_v41 = vld [vmem:[%s12184_s10 + $0x318] sm:$0xf0]  ;;  %v7264_v57 = vld [vmem:[%s12188_s12 + $0x268] sm:$0xf] }
 0x3a2   :  { %3539 = vmatpush.bf16.msrb.mxu3 %v6881_v1  ;;  %v6914_v1 = vld [vmem:[%s12184_s10 + $0x2d8] sm:$0xf0]  ;;  %v6949_v3 = vor.u32 %v8086_v45, %v6946_v41  ;;  %v8026_v41 = vld [vmem:[%s12184_s10 + $0x12c] sm:$0xf]  ;;  %v7208_v35 = vld [vmem:[%s12188_s12 + $0x1f8] sm:$0xf] }
 0x3a3   :  { %3479 = vmatmul.bf16.vlgmr.msra.gmra.mxu3 %v10725_v29  ;;  %3492 = vmatmul.bf16.vlgmr.msra.gmra.mxu0 %v10727_v32  ;;  %v6917_v53 = vor.u32 %v8078_v63, %v6914_v1  ;;  %v8058_v63 = vld [vmem:[%s12184_s10 + $0x22c] sm:$0xf]  ;;  %v6834_v1 = vld [vmem:[%s12184_s10 + $0x238] sm:$0xf0] }
 0x3a4   :  { %3466 = vmatmul.bf16.vlgmr.msrb.gmra.mxu2 %v10731_v17  ;;  %6951 = vmatmul.msk.bf16.vlgmr.msrb.gmra.mxu1 %vm1250_vm0, %v10729_v33  ;;  %v8054_v9 = vld [vmem:[%s12184_s10 + $0x20c] sm:$0xf] }
 0x3a5   :  { %3514 = vmatpush.bf16.msra.mxu1 %v6609_v6  ;;  %3527 = vmatpush.bf16.msra.mxu2 %v6737_v8  ;;  %v7998_v6 = vld [vmem:[%s12184_s10 + $0x4c] sm:$0xf]  ;;  %v6594_v8 = vld [vmem:[%s12184_s10 + $0x58] sm:$0xf0] }
 0x3a6   :  { %3540 = vmatpush.bf16.msrb.mxu3 %v6865_v55  ;;  %3562 = vmatpush.bf16.msra.mxu0 %v6677_v12  ;;  %v8074_v55 = vld [vmem:[%s12184_s10 + $0x2ac] sm:$0xf]  ;;  %v6898_v12 = vld [vmem:[%s12184_s10 + $0x2b8] sm:$0xf0]  ;;  %v6597_v16 = vor.u32 %v7998_v6, %v6594_v8  ;;  %v6709_v6 = vor.u32 %v8026_v41, %v6706_v42  ;;  %v6837_v8 = vor.u32 %v8058_v63, %v6834_v1  ;;  %v8145_v41 = vld [vmem:[%s12188_s12 + $0x1c4] sm:$0xf] }
 0x3a7   :  { %v6901_v18 = vor.u32 %v8074_v55, %v6898_v12  ;;  %v8162_v48 = vld [vmem:[%s12188_s12 + $0x248] sm:$0xf0]  ;;  %v7182_v42 = vld [vmem:[%s12188_s12 + $0x1dc] sm:$0xf0] }
 0x3a8   :  { %v7185_v1 = vor.u32 %v8145_v41, %v7182_v42  ;;  %v7154_v41 = vld [vmem:[%s12188_s12 + $0x1a4] sm:$0xf0] }
 0x3a9   :  { %3515 = vmatpush.bf16.msra.mxu1 %v6593_v11  ;;  %3528 = vmatpush.bf16.msra.mxu2 %v6721_v19  ;;  %v7994_v11 = vld [vmem:[%s12184_s10 + $0x2c] sm:$0xf]  ;;  %v6578_v19 = vld [vmem:[%s12184_s10 + $0x38] sm:$0xf0] }
 0x3aa   :  { %3541 = vmatpush.bf16.msrb.mxu3 %v6849_v22  ;;  %3563 = vmatpush.bf16.msra.mxu0 %v6661_v23  ;;  %v8070_v22 = vld [vmem:[%s12184_s10 + $0x28c] sm:$0xf]  ;;  %v6882_v23 = vld [vmem:[%s12184_s10 + $0x298] sm:$0xf0]  ;;  %v6581_v26 = vor.u32 %v7994_v11, %v6578_v19 }
 0x3ab   :  { %v8092_v11 = vld [vmem:[%s12188_s12 + $0x18] sm:$0xf0]  ;;  %v8194_v19 = vld [vmem:[%s12188_s12 + $0x34c] sm:$0xf] }
 0x3ad   :  { %3516 = vmatpush.bf16.msra.mxu1 %v6577_v38  ;;  %3529 = vmatpush.bf16.msra.mxu2 %v6705_v51  ;;  %v6885_v38 = vor.u32 %v8070_v22, %v6882_v23  ;;  %v6562_v51 = vld [vmem:[%s12184_s10 + $0x18] sm:$0xf0]  ;;  %v7381_v22 = vor.u32 %v8194_v19, %v7378_v20  ;;  %v8187_v23 = vld [vmem:[%s12188_s12 + $0x314] sm:$0xf]  ;;  %v11224_v19 = vld [vmem:[%s12189_s11] sm:$0xf] }
 0x3ae   :  { %3542 = vmatpush.bf16.msrb.mxu3 %v6833_v30  ;;  %3564 = vmatpush.bf16.msra.mxu0 %v6645_v43  ;;  %v6866_v30 = vld [vmem:[%s12184_s10 + $0x278] sm:$0xf0]  ;;  %v7097_v43 = vor.u32 %v8127_v25, %v7096_v24  ;;  %v6565_v34 = vor.u32 %v7990_v27, %v6562_v51  ;;  %v7294_v51 = vld [vmem:[%s12188_s12 + $0x2bc] sm:$0xf0] }
 0x3af   :  { %v6869_v49 = vor.u32 %v8066_v28, %v6866_v30  ;;  %v8180_v25 = vld [vmem:[%s12188_s12 + $0x2dc] sm:$0xf]  ;;  %v8169_v28 = vld [vmem:[%s12188_s12 + $0x280] sm:$0xf0]  ;;  %v8166_v30 = vld [vmem:[%s12188_s12 + $0x26c] sm:$0xf] }
 0x3b0   :  { %v8176_v27 = vld [vmem:[%s12188_s12 + $0x2b8] sm:$0xf0] }
 0x3b1   :  { %3517 = vmatpush.bf16.msra.mxu1 %v6561_v50  ;;  %3530 = vmatpush.bf16.msra.mxu2 %v6689_v52  ;;  %v8062_v50 = vld [vmem:[%s12184_s10 + $0x24c] sm:$0xf]  ;;  %v6850_v52 = vld [vmem:[%s12184_s10 + $0x258] sm:$0xf0] }
 0x3b2   :  { %3543 = vmatpush.bf16.msrb.mxu3 %v6817_v54  ;;  %3565 = vmatpush.bf16.msra.mxu0 %v6629_v56  ;;  %v7069_v54 = vor.u32 %v8120_v46, %v7068_v44  ;;  %v7040_v56 = vld [vmem:[%s12188_s12 + $0xa8] sm:$0xf]  ;;  %v6853_v45 = vor.u32 %v8062_v50, %v6850_v52  ;;  %v8155_v50 = vld [vmem:[%s12188_s12 + $0x210] sm:$0xf0]  ;;  %v8152_v52 = vld [vmem:[%s12188_s12 + $0x1fc] sm:$0xf] }
 0x3b3   :  { %6952 = vmatmul.msk.bf16.vlgmr.msrb.gmra.mxu0 %vm1250_vm0, %v10729_v33  ;;  %v7266_v44 = vld [vmem:[%s12188_s12 + $0x284] sm:$0xf0] }
 0x3b4   :  { %3518 = vmatmul.bf16.vlgmr.msra.gmra.mxu1 %v10731_v17  ;;  %3531 = vmatmul.bf16.vlgmr.msra.gmra.mxu2 %v10725_v29  ;;  %v7269_v46 = vor.u32 %v8166_v30, %v7266_v44 }
 0x3b5   :  { %3575 = vmatpush.bf16.msrb.mxu1 %v6805_v60  ;;  %3588 = vmatpush.bf16.msrb.mxu2 %v6933_v39  ;;  %v7348_v60 = vld [vmem:[%s12188_s12 + $0x310] sm:$0xf]  ;;  %v8190_v39 = vld [vmem:[%s12188_s12 + $0x328] sm:$0xf0] }
 0x3b6   :  { %3544 = vmatmul.bf16.vlgmr.msrb.gmra.mxu3 %v10727_v32  ;;  %3566 = vmatpush.bf16.msra.mxu0 %v6613_v2  ;;  %v7041_v2 = vor.u32 %v8113_v59, %v7040_v56  ;;  %v7349_v62 = vor.u32 %v8190_v39, %v7348_v60  ;;  %v7210_v56 = vld [vmem:[%s12188_s12 + $0x214] sm:$0xf0]  ;;  %v7600_v59 = vld [vmem:[%s12188_s12 + $0x508] sm:$0xf]  ;;  %v8253_v60 = vld [vmem:[%s12188_s12 + $0x520] sm:$0xf0] }
 0x3b7   :  { %3608 = vmatpush.bf16.msra.mxu3 %v6949_v3  ;;  %v7012_v3 = vld [vmem:[%s12188_s12 + $0x70] sm:$0xf]  ;;  %v7180_v39 = vld [vmem:[%s12188_s12 + $0x1c0] sm:$0xf] }
 0x3b8   :  { %v7013_v55 = vor.u32 %v8106_v4, %v7012_v3  ;;  %v7602_v3 = vld [vmem:[%s12188_s12 + $0x524] sm:$0xf0]  ;;  %v7572_v4 = vld [vmem:[%s12188_s12 + $0x4d0] sm:$0xf] }
 0x3b9   :  { %3576 = vmatpush.bf16.msrb.mxu1 %v6789_v0  ;;  %3589 = vmatpush.bf16.msrb.mxu2 %v6917_v53  ;;  %v7320_v0 = vld [vmem:[%s12188_s12 + $0x2d8] sm:$0xf]  ;;  %v8183_v53 = vld [vmem:[%s12188_s12 + $0x2f0] sm:$0xf0] }
 0x3ba   :  { %3567 = vmatpush.bf16.msra.mxu0 %v6597_v16  ;;  %v7321_v12 = vor.u32 %v8183_v53, %v7320_v0  ;;  %v6821_v16 = vor.u32 %v8054_v9, %v6818_v10  ;;  %v8246_v0 = vld [vmem:[%s12188_s12 + $0x4e8] sm:$0xf0]  ;;  %v8239_v9 = vld [vmem:[%s12188_s12 + $0x4b0] sm:$0xf0] }
 0x3bb   :  { %4741 = vmatpush.bf16.msrb.mxu3 %v7153_v13  ;;  %v6984_v13 = vld [vmem:[%s12188_s12 + $0x38] sm:$0xf]  ;;  %v7573_v53 = vor.u32 %v8246_v0, %v7572_v4 }
 0x3bd   :  { %3577 = vmatpush.bf16.msrb.mxu1 %v6773_v7  ;;  %3590 = vmatpush.bf16.msrb.mxu2 %v6901_v18  ;;  %v6985_v7 = vor.u32 %v8099_v14, %v6984_v13  ;;  %v6956_v18 = vld [vmem:[%s12188_s12] sm:$0xf] }
 0x3be   :  { %3568 = vmatpush.bf16.msra.mxu0 %v6581_v26  ;;  %v6957_v21 = vor.u32 %v8092_v11, %v6956_v18  ;;  %v7292_v26 = vld [vmem:[%s12188_s12 + $0x2a0] sm:$0xf] }
 0x3bf   :  { %4742 = vmatpush.bf16.msrb.mxu3 %v7125_v31  ;;  %v7350_v31 = vld [vmem:[%s12188_s12 + $0x32c] sm:$0xf0]  ;;  %v7516_v14 = vld [vmem:[%s12188_s12 + $0x460] sm:$0xf] }
 0x3c0   :  { %v7353_v24 = vor.u32 %v8187_v23, %v7350_v31  ;;  %v7518_v18 = vld [vmem:[%s12188_s12 + $0x47c] sm:$0xf0]  ;;  %v8225_v23 = vld [vmem:[%s12188_s12 + $0x440] sm:$0xf0] }
 0x3c1   :  { %3578 = vmatpush.bf16.msrb.mxu1 %v6757_v37  ;;  %3591 = vmatpush.bf16.msrb.mxu2 %v6885_v38  ;;  %v8173_v37 = vld [vmem:[%s12188_s12 + $0x2a4] sm:$0xf]  ;;  %v7293_v38 = vor.u32 %v8176_v27, %v7292_v26  ;;  %v7460_v26 = vld [vmem:[%s12188_s12 + $0x3f0] sm:$0xf]  ;;  %v8218_v27 = vld [vmem:[%s12188_s12 + $0x408] sm:$0xf0] }
 0x3c2   :  { %3569 = vmatpush.bf16.msra.mxu0 %v6565_v34  ;;  %v7297_v40 = vor.u32 %v8173_v37, %v7294_v51  ;;  %v8159_v34 = vld [vmem:[%s12188_s12 + $0x234] sm:$0xf] }
 0x3c3   :  { %4743 = vmatpush.bf16.msrb.mxu3 %v7097_v43  ;;  %v7265_v43 = vor.u32 %v8169_v28, %v7264_v57  ;;  %v8215_v57 = vld [vmem:[%s12188_s12 + $0x3f4] sm:$0xf]  ;;  %v7462_v28 = vld [vmem:[%s12188_s12 + $0x40c] sm:$0xf0] }
 0x3c5   :  { %3579 = vmatpush.bf16.msrb.mxu1 %v6741_v5  ;;  %3592 = vmatpush.bf16.msrb.mxu2 %v6869_v49  ;;  %v7237_v5 = vor.u32 %v8162_v48, %v7236_v47  ;;  %v7238_v49 = vld [vmem:[%s12188_s12 + $0x24c] sm:$0xf0]  ;;  %v7432_v47 = vld [vmem:[%s12188_s12 + $0x3b8] sm:$0xf]  ;;  %v8211_v48 = vld [vmem:[%s12188_s12 + $0x3d0] sm:$0xf0] }
 0x3c6   :  { %4754 = vmatpush.bf16.msrb.mxu0 %v7377_v58  ;;  %6953 = vmatmul.msk.bf16.vlgmr.msra.gmra.mxu3 %vm1250_vm0, %v10729_v33  ;;  %v8022_v33 = vld [vmem:[%s12184_s10 + $0x10c] sm:$0xf]  ;;  %v7241_v36 = vor.u32 %v8159_v34, %v7238_v49  ;;  %v7213_v58 = vor.u32 %v8152_v52, %v7210_v56  ;;  %v7433_v34 = vor.u32 %v8211_v48, %v7432_v47  ;;  %v8208_v49 = vld [vmem:[%s12188_s12 + $0x3bc] sm:$0xf]  ;;  %v7404_v56 = vld [vmem:[%s12188_s12 + $0x380] sm:$0xf] }
 0x3c7   :  { %4744 = vmatpush.bf16.msrb.mxu3 %v7069_v54  ;;  %3570 = vmatmul.bf16.vlgmr.msra.gmra.mxu0 %v10731_v17  ;;  %v6690_v17 = vld [vmem:[%s12184_s10 + $0x118] sm:$0xf0]  ;;  %v7209_v54 = vor.u32 %v8155_v50, %v7208_v35  ;;  %v7608_v35 = vld [vmem:[%s12188_s12 + $0x510] sm:$0xf]  ;;  %v8254_v50 = vld [vmem:[%s12188_s12 + $0x528] sm:$0xf0] }
 0x3c8   :  { %v6693_v15 = vor.u32 %v8022_v33, %v6690_v17  ;;  %v7544_v17 = vld [vmem:[%s12188_s12 + $0x498] sm:$0xf]  ;;  %v7609_v0 = vor.u32 %v8254_v50, %v7608_v35  ;;  %v8261_v47 = vld [vmem:[%s12188_s12 + $0x560] sm:$0xf0]  ;;  %v8110_v48 = vld [vmem:[%s12188_s12 + $0xac] sm:$0xf] }
 0x3c9   :  { %3580 = vmatpush.bf16.msrb.mxu1 %v6725_v61  ;;  %3593 = vmatpush.bf16.msrb.mxu2 %v6853_v45  ;;  %v7601_v61 = vor.u32 %v8253_v60, %v7600_v59  ;;  %v8148_v45 = vld [vmem:[%s12188_s12 + $0x1d8] sm:$0xf0]  ;;  %v7545_v10 = vor.u32 %v8239_v9, %v7544_v17  ;;  %v7628_v59 = vld [vmem:[%s12188_s12 + $0x540] sm:$0xf]  ;;  %v7580_v17 = vld [vmem:[%s12188_s12 + $0x4d8] sm:$0xf] }
 0x3ca   :  { %4755 = vmatpush.bf16.msrb.mxu0 %v7349_v62  ;;  %v7181_v63 = vor.u32 %v8148_v45, %v7180_v39  ;;  %v8138_v45 = vld [vmem:[%s12188_s12 + $0x18c] sm:$0xf]  ;;  %v8247_v9 = vld [vmem:[%s12188_s12 + $0x4f0] sm:$0xf0]  ;;  %v2897_v35 = vperm.slane %v11224_v19, 2 }
 0x3cb   :  { %4745 = vmatpush.bf16.msrb.mxu3 %v7041_v2  ;;  %v8250_v2 = vld [vmem:[%s12188_s12 + $0x50c] sm:$0xf] }
 0x3cc   :  { %v7605_v62 = vor.u32 %v8250_v2, %v7602_v3  ;;  %v7157_v2 = vor.u32 %v8138_v45, %v7154_v41  ;;  %v8201_v3 = vld [vmem:[%s12188_s12 + $0x384] sm:$0xf] }
 0x3cd   :  { %3581 = vmatpush.bf16.msrb.mxu1 %v6709_v6  ;;  %3594 = vmatpush.bf16.msrb.mxu2 %v6837_v8  ;;  %v8243_v6 = vld [vmem:[%s12188_s12 + $0x4d4] sm:$0xf]  ;;  %v7574_v8 = vld [vmem:[%s12188_s12 + $0x4ec] sm:$0xf0] }
 0x3ce   :  { %4756 = vmatpush.bf16.msrb.mxu0 %v7321_v12  ;;  %v7577_v33 = vor.u32 %v8243_v6, %v7574_v8  ;;  %v7546_v12 = vld [vmem:[%s12188_s12 + $0x4b4] sm:$0xf0]  ;;  %v8257_v6 = vld [vmem:[%s12188_s12 + $0x544] sm:$0xf] }
 0x3cf   :  { %4746 = vmatpush.bf16.msrb.mxu3 %v7013_v55  ;;  %v8236_v55 = vld [vmem:[%s12188_s12 + $0x49c] sm:$0xf] }
 0x3d0   :  { %v7549_v13 = vor.u32 %v8236_v55, %v7546_v12  ;;  %v8131_v12 = vld [vmem:[%s12188_s12 + $0x154] sm:$0xf] }
 0x3d1   :  { %3582 = vmatpush.bf16.msrb.mxu1 %v6693_v15  ;;  %3595 = vmatpush.bf16.msrb.mxu2 %v6821_v16  ;;  %v8232_v15 = vld [vmem:[%s12188_s12 + $0x478] sm:$0xf0] }
 0x3d2   :  { %4757 = vmatpush.bf16.msrb.mxu0 %v7293_v38  ;;  %v7517_v16 = vor.u32 %v8232_v15, %v7516_v14  ;;  %v7461_v38 = vor.u32 %v8218_v27, %v7460_v26  ;;  %v2896_v15 = vperm.slane %v11224_v19, 1  ;;  %v8233_v26 = vld [vmem:[%s12188_s12 + $0x480] sm:$0xf0] }
 0x3d3   :  { %4747 = vmatpush.bf16.msrb.mxu3 %v6985_v7  ;;  %v8229_v7 = vld [vmem:[%s12188_s12 + $0x464] sm:$0xf] }
 0x3d4   :  { %3583 = vmatmul.bf16.vlgmr.msrb.gmra.mxu1 %v10725_v29  ;;  %3596 = vmatmul.bf16.vlgmr.msrb.gmra.mxu2 %v10727_v32  ;;  %v7322_v29 = vld [vmem:[%s12188_s12 + $0x2f4] sm:$0xf0]  ;;  %v7521_v20 = vor.u32 %v8229_v7, %v7518_v18  ;;  %v7552_v7 = vld [vmem:[%s12188_s12 + $0x4a0] sm:$0xf]  ;;  %v8240_v18 = vld [vmem:[%s12188_s12 + $0x4b8] sm:$0xf0] }
 0x3d5   :  { %v7325_v32 = vor.u32 %v8180_v25, %v7322_v29  ;;  %4767 = vmatpush.bf16.msra.mxu1 %v7601_v61  ;;  %v8222_v25 = vld [vmem:[%s12188_s12 + $0x42c] sm:$0xf]  ;;  %v7490_v29 = vld [vmem:[%s12188_s12 + $0x444] sm:$0xf0]  ;;  %v8260_v61 = vld [vmem:[%s12188_s12 + $0x558] sm:$0xf0] }
 0x3d6   :  { %4758 = vmatpush.bf16.msrb.mxu0 %v7265_v43  ;;  %v7465_v43 = vor.u32 %v8215_v57, %v7462_v28  ;;  %v7496_v28 = vld [vmem:[%s12188_s12 + $0x430] sm:$0xf] }
 0x3d7   :  { %4748 = vmatpush.bf16.msrb.mxu3 %v6957_v21 }
 0x3d9   :  { %4768 = vmatpush.bf16.msra.mxu1 %v7573_v53 }
 0x3da   :  { %4759 = vmatpush.bf16.msrb.mxu0 %v7237_v5 }
 0x3db   :  { %4806 = vmatpush.bf16.msra.mxu3 %v7381_v22  ;;  %v7488_v22 = vld [vmem:[%s12188_s12 + $0x428] sm:$0xf] }
 0x3dc   :  { %v7489_v31 = vor.u32 %v8225_v23, %v7488_v22 }
 0x3dd   :  { %4769 = vmatpush.bf16.msra.mxu1 %v7545_v10  ;;  %v7630_v10 = vld [vmem:[%s12188_s12 + $0x55c] sm:$0xf0] }
 0x3de   :  { %4760 = vmatpush.bf16.msrb.mxu0 %v7209_v54  ;;  %v7633_v55 = vor.u32 %v8257_v6, %v7630_v10 }
 0x3df   :  { %4807 = vmatpush.bf16.msra.mxu3 %v7353_v24  ;;  %v2895_v24 = vperm.slane %v11224_v19, 0 }
 0x3e1   :  { %4770 = vmatpush.bf16.msra.mxu1 %v7517_v16  ;;  %v7581_v16 = vor.u32 %v8247_v9, %v7580_v17  ;;  %v7412_v17 = vld [vmem:[%s12188_s12 + $0x388] sm:$0xf] }
 0x3e2   :  { %4761 = vmatpush.bf16.msrb.mxu0 %v7181_v63 }
 0x3e3   :  { %4808 = vmatpush.bf16.msra.mxu3 %v7325_v32  ;;  %v7493_v32 = vor.u32 %v8222_v25, %v7490_v29  ;;  %v7553_v25 = vor.u32 %v8240_v18, %v7552_v7  ;;  %v7160_v18 = vld [vmem:[%s12188_s12 + $0x190] sm:$0xf] }
 0x3e5   :  { %4771 = vmatpush.bf16.msra.mxu1 %v7489_v31 }
 0x3e6   :  { %4819 = vmatpush.bf16.msra.mxu0 %v7605_v62  ;;  %v7406_v62 = vld [vmem:[%s12188_s12 + $0x39c] sm:$0xf0] }
 0x3e7   :  { %4809 = vmatpush.bf16.msra.mxu3 %v7297_v40  ;;  %v7409_v53 = vor.u32 %v8201_v3, %v7406_v62  ;;  %v6986_v3 = vld [vmem:[%s12188_s12 + $0x54] sm:$0xf0] }
 0x3e9   :  { %4772 = vmatpush.bf16.msra.mxu1 %v7461_v38  ;;  %v7070_v38 = vld [vmem:[%s12188_s12 + $0xfc] sm:$0xf0] }
 0x3ea   :  { %4820 = vmatpush.bf16.msra.mxu0 %v7577_v33 }
 0x3eb   :  { %4810 = vmatpush.bf16.msra.mxu3 %v7269_v46 }
 0x3ed   :  { %4773 = vmatpush.bf16.msra.mxu1 %v7433_v34  ;;  %v7042_v34 = vld [vmem:[%s12188_s12 + $0xc4] sm:$0xf0] }
 0x3ee   :  { %4821 = vmatpush.bf16.msra.mxu0 %v7549_v13  ;;  %v7126_v13 = vld [vmem:[%s12188_s12 + $0x16c] sm:$0xf0] }
 0x3ef   :  { %4811 = vmatpush.bf16.msra.mxu3 %v7241_v36  ;;  %v7434_v36 = vld [vmem:[%s12188_s12 + $0x3d4] sm:$0xf0]  ;;  %v7129_v14 = vor.u32 %v8131_v12, %v7126_v13  ;;  %v8089_v12 = vld [vmem:[%s12188_s12 + $0x4] sm:$0xf]  ;;  %v6958_v13 = vld [vmem:[%s12188_s12 + $0x1c] sm:$0xf0] }
 0x3f0   :  { %v7437_v52 = vor.u32 %v8208_v49, %v7434_v36  ;;  %v7045_v49 = vor.u32 %v8110_v48, %v7042_v34  ;;  %v8128_v48 = vld [vmem:[%s12188_s12 + $0x138] sm:$0xf0] }
 0x3f2   :  { %4822 = vmatpush.bf16.msra.mxu0 %v7521_v20  ;;  %v8124_v20 = vld [vmem:[%s12188_s12 + $0x11c] sm:$0xf] }
 0x3f3   :  { %4812 = vmatpush.bf16.msra.mxu3 %v7213_v58  ;;  %v8204_v58 = vld [vmem:[%s12188_s12 + $0x398] sm:$0xf0] }
 0x3f4   :  { %v7405_v39 = vor.u32 %v8204_v58, %v7404_v56 }
 0x3f6   :  { %4823 = vmatpush.bf16.msra.mxu0 %v7493_v32  ;;  %4774 = vmatpush.bf16.msra.mxu1 %v7405_v39  ;;  %v7524_v32 = vld [vmem:[%s12188_s12 + $0x468] sm:$0xf]  ;;  %v8103_v39 = vld [vmem:[%s12188_s12 + $0x74] sm:$0xf] }
 0x3f7   :  { %4813 = vmatpush.bf16.msra.mxu3 %v7185_v1  ;;  %v7629_v1 = vor.u32 %v8260_v61, %v7628_v59  ;;  %v7525_v57 = vor.u32 %v8233_v26, %v7524_v32  ;;  %v7014_v61 = vld [vmem:[%s12188_s12 + $0x8c] sm:$0xf0] }
 0x3f8   :  { %v7017_v45 = vor.u32 %v8103_v39, %v7014_v61  ;;  %v8118_v61 = vld [vmem:[%s12188_s12 + $0xec] sm:$0xf] }
 0x3f9   :  { %4787 = vmatpush.bf16.msra.mxu2 %v7629_v1  ;;  %v8212_v1 = vld [vmem:[%s12188_s12 + $0x3d8] sm:$0xf0] }
 0x3fa   :  { %4824 = vmatpush.bf16.msra.mxu0 %v7465_v43  ;;  %4839 = vmatpush.bf16.msrb.mxu1 %v7633_v55  ;;  %v7636_v43 = vld [vmem:[%s12188_s12 + $0x548] sm:$0xf]  ;;  %v8205_v55 = vld [vmem:[%s12188_s12 + $0x3a0] sm:$0xf0] }
 0x3fb   :  { %v7637_v56 = vor.u32 %v8261_v47, %v7636_v43  ;;  %v7140_v43 = vld [vmem:[%s12188_s12 + $0x160] sm:$0xf] }
 0x3fc   :  { %v7104_v47 = vld [vmem:[%s12188_s12 + $0x120] sm:$0xf] }
 0x3fd   :  { %4793 = vmatpush.bf16.msrb.mxu2 %v7157_v2  ;;  %v8096_v2 = vld [vmem:[%s12188_s12 + $0x3c] sm:$0xf] }
 0x3fe   :  { %4825 = vmatpush.bf16.msra.mxu0 %v7437_v52 }
 0x401   :  { %4794 = vmatpush.bf16.msrb.mxu2 %v7129_v14  ;;  %v8258_v14 = vld [vmem:[%s12188_s12 + $0x54c] sm:$0xf] }
 0x402   :  { %4826 = vmatpush.bf16.msra.mxu0 %v7409_v53 }
 0x410   :  { %v3428_v11 = vpop.f32.mrf.mxu0 }
 0x411   :  { %v3441_v21 = vpop.f32.mrf.mxu1 }
 0x416   :  { %v3415_v37 = vpop.f32.mrf.mxu3 }
 0x417   :  { %v3416_v51 = vadd.f32 %v3415_v37, %v2895_v24  ;;  %v3454_v40 = vpop.f32.mrf.mxu2  ;;  %v8117_v37 = vld [vmem:[%s12188_s12 + $0xe4] sm:$0xf] }
 0x418   :  { %v3430_v30 = vpop.f32.mrf.mxu0 }
 0x419   :  { %v3429_v44 = vadd.f32 %v3428_v11, %v3416_v51  ;;  %v3443_v46 = vpop.f32.mrf.mxu1  ;;  %v7073_v51 = vor.u32 %v8117_v37, %v7070_v38  ;;  %v8226_v30 = vld [vmem:[%s12188_s12 + $0x448] sm:$0xf0]  ;;  %v7132_v37 = vld [vmem:[%s12188_s12 + $0x158] sm:$0xf]  ;;  %v8135_v38 = vld [vmem:[%s12188_s12 + $0x170] sm:$0xf0] }
 0x41a   :  { %v7497_v52 = vor.u32 %v8226_v30, %v7496_v28  ;;  %v7134_v30 = vld [vmem:[%s12188_s12 + $0x174] sm:$0xf0] }
 0x41b   :  { %v3442_v5 = vadd.f32 %v3441_v21, %v3429_v44  ;;  %v7098_v21 = vld [vmem:[%s12188_s12 + $0x134] sm:$0xf0] }
 0x41c   :  { %v7101_v23 = vor.u32 %v8124_v20, %v7098_v21  ;;  %v7413_v20 = vor.u32 %v8205_v55, %v7412_v17  ;;  %v8139_v21 = vld [vmem:[%s12188_s12 + $0x194] sm:$0xf]  ;;  %v7020_v55 = vld [vmem:[%s12188_s12 + $0x78] sm:$0xf] }
 0x41d   :  { %v3455_v54 = vadd.f32 %v3454_v40, %v3442_v5 }
 0x41e   :  { %v3417_v60 = vpop.f32.mrf.mxu3  ;;  %4795 = vmatpush.bf16.msrb.mxu2 %v7101_v23 }
 0x41f   :  { %v3614_v42 = vmax.f32 %v3455_v54, 0.0  ;;  %v3456_v63 = vpop.f32.mrf.mxu2  ;;  %v7468_v54 = vld [vmem:[%s12188_s12 + $0x3f8] sm:$0xf]  ;;  %v8219_v60 = vld [vmem:[%s12188_s12 + $0x410] sm:$0xf0] }
 0x420   :  { %v3493_v4 = vpop.f32.mrf.mxu0  ;;  %v7469_v41 = vor.u32 %v8219_v60, %v7468_v54 }
 0x421   :  { %v11296_v8 = vpack.c.bf16 %v3614_v42, %v3614_v42  ;;  %v3506_v33 = vpop.f32.mrf.mxu1  ;;  %v7440_v42 = vld [vmem:[%s12188_s12 + $0x3c0] sm:$0xf] }
 0x422   :  { %4796 = vmatpush.bf16.msrb.mxu2 %v7073_v51 }
 0x423   :  { %4749 = vmatmul.bf16.vlgmr.msrb.gmra.mxu3 %v11296_v8 }
 0x424   :  { %4871 = vmatpush.bf16.msrb.mxu3 %v7609_v0 }
 0x426   :  { %v3480_v11 = vpop.f32.mrf.mxu3  ;;  %4797 = vmatpush.bf16.msrb.mxu2 %v7045_v49  ;;  %v8125_v49 = vld [vmem:[%s12188_s12 + $0x124] sm:$0xf] }
 0x427   :  { %v3467_v22 = vpop.f32.mrf.mxu2 }
 0x428   :  { %v3468_v31 = vadd.f32 %v3467_v22, %v2896_v15  ;;  %4872 = vmatpush.bf16.msrb.mxu3 %v7581_v16  ;;  %v3495_v24 = vpop.f32.mrf.mxu0  ;;  %v7638_v15 = vld [vmem:[%s12188_s12 + $0x564] sm:$0xf0]  ;;  %v6961_v16 = vor.u32 %v8089_v12, %v6958_v13  ;;  %v7162_v22 = vld [vmem:[%s12188_s12 + $0x1ac] sm:$0xf0]  ;;  %v8107_v12 = vld [vmem:[%s12188_s12 + $0x90] sm:$0xf0] }
 0x429   :  { %v3508_v29 = vpop.f32.mrf.mxu1  ;;  %v7168_v24 = vld [vmem:[%s12188_s12 + $0x198] sm:$0xf]  ;;  %v7165_v51 = vor.u32 %v8139_v21, %v7162_v22  ;;  %v6992_v22 = vld [vmem:[%s12188_s12 + $0x40] sm:$0xf] }
 0x42a   :  { %v3481_v27 = vadd.f32 %v3480_v11, %v3468_v31  ;;  %4798 = vmatpush.bf16.msrb.mxu2 %v7017_v45  ;;  %v8142_v11 = vld [vmem:[%s12188_s12 + $0x1a8] sm:$0xf0]  ;;  %v7641_v31 = vor.u32 %v8258_v14, %v7638_v15  ;;  %v8104_v15 = vld [vmem:[%s12188_s12 + $0x7c] sm:$0xf] }
 0x42b   :  { %v7161_v32 = vor.u32 %v8142_v11, %v7160_v18  ;;  %v7028_v18 = vld [vmem:[%s12188_s12 + $0x80] sm:$0xf]  ;;  %v8108_v11 = vld [vmem:[%s12188_s12 + $0x98] sm:$0xf0] }
 0x42c   :  { %v3494_v40 = vadd.f32 %v3493_v4, %v3481_v27  ;;  %4873 = vmatpush.bf16.msrb.mxu3 %v7553_v25  ;;  %v6989_v4 = vor.u32 %v8096_v2, %v6986_v3  ;;  %v8143_v25 = vld [vmem:[%s12188_s12 + $0x1b0] sm:$0xf0]  ;;  %v7048_v2 = vld [vmem:[%s12188_s12 + $0xb0] sm:$0xf]  ;;  %v8114_v3 = vld [vmem:[%s12188_s12 + $0xc8] sm:$0xf0] }
 0x42e   :  { %v3507_v44 = vadd.f32 %v3506_v33, %v3494_v40  ;;  %v3482_v46 = vpop.f32.mrf.mxu3  ;;  %v7441_v33 = vor.u32 %v8212_v1, %v7440_v42  ;;  %4799 = vmatpush.bf16.msrb.mxu2 %v6989_v4  ;;  %v7169_v40 = vor.u32 %v8143_v25, %v7168_v24  ;;  %v7084_v42 = vld [vmem:[%s12188_s12 + $0xf0] sm:$0xf]  ;;  %v7029_v25 = vor.u32 %v8108_v11, %v7028_v18  ;;  %v7336_v18 = vld [vmem:[%s12188_s12 + $0x2e8] sm:$0xf]  ;;  %v8185_v11 = vld [vmem:[%s12188_s12 + $0x300] sm:$0xf0] }
 0x42f   :  { %v3469_v5 = vpop.f32.mrf.mxu2  ;;  %v7133_v46 = vor.u32 %v8135_v38, %v7132_v37  ;;  %v7000_v37 = vld [vmem:[%s12188_s12 + $0x48] sm:$0xf]  ;;  %v8101_v38 = vld [vmem:[%s12188_s12 + $0x60] sm:$0xf0] }
 0x430   :  { %v3615_v36 = vmax.f32 %v3507_v44, 0.0  ;;  %4874 = vmatpush.bf16.msrb.mxu3 %v7525_v57  ;;  %v3558_v59 = vpop.f32.mrf.mxu0  ;;  %v8132_v57 = vld [vmem:[%s12188_s12 + $0x15c] sm:$0xf] }
 0x431   :  { %v3519_v50 = vpop.f32.mrf.mxu1  ;;  %v8136_v44 = vld [vmem:[%s12188_s12 + $0x178] sm:$0xf0]  ;;  %v7137_v34 = vor.u32 %v8132_v57, %v7134_v30  ;;  %v7384_v57 = vld [vmem:[%s12188_s12 + $0x350] sm:$0xf]  ;;  %v8198_v30 = vld [vmem:[%s12188_s12 + $0x368] sm:$0xf0] }
 0x432   :  { %v11361_v58 = vpack.c.bf16 %v3615_v36, %v3615_v36  ;;  %v3520_v63 = vadd.f32 %v3519_v50, %v2897_v35  ;;  %4800 = vmatpush.bf16.msrb.mxu2 %v6961_v16  ;;  %v7141_v5 = vor.u32 %v8136_v44, %v7140_v43  ;;  %v7106_v36 = vld [vmem:[%s12188_s12 + $0x13c] sm:$0xf0]  ;;  %v7112_v35 = vld [vmem:[%s12188_s12 + $0x128] sm:$0xf]  ;;  %v8129_v50 = vld [vmem:[%s12188_s12 + $0x140] sm:$0xf0] }
 0x433   :  { %v7109_v60 = vor.u32 %v8125_v49, %v7106_v36  ;;  %v7113_v39 = vor.u32 %v8129_v50, %v7112_v35  ;;  %v6964_v43 = vld [vmem:[%s12188_s12 + $0x8] sm:$0xf]  ;;  %v8093_v44 = vld [vmem:[%s12188_s12 + $0x20] sm:$0xf0]  ;;  %v7356_v36 = vld [vmem:[%s12188_s12 + $0x318] sm:$0xf] }
 0x434   :  { %4762 = vmatmul.bf16.vlgmr.msrb.gmra.mxu0 %v11361_v58  ;;  %4814 = vmatmul.bf16.vlgmr.msra.gmra.mxu3 %v11361_v58  ;;  %v6966_v35 = vld [vmem:[%s12188_s12 + $0x24] sm:$0xf0]  ;;  %v6972_v50 = vld [vmem:[%s12188_s12 + $0x10] sm:$0xf] }
 0x435   :  { %4875 = vmatpush.bf16.msrb.mxu3 %v7497_v52  ;;  %4891 = vmatpush.bf16.msrb.mxu0 %v7637_v56  ;;  %v7105_v52 = vor.u32 %v8128_v48, %v7104_v47  ;;  %v7076_v56 = vld [vmem:[%s12188_s12 + $0xe8] sm:$0xf]  ;;  %v7001_v47 = vor.u32 %v8101_v38, %v7000_v37  ;;  %v8195_v48 = vld [vmem:[%s12188_s12 + $0x354] sm:$0xf]  ;;  %v8170_v37 = vld [vmem:[%s12188_s12 + $0x288] sm:$0xf0] }
 0x437   :  { %v3532_v62 = vpop.f32.mrf.mxu2 }
 0x438   :  { %v3533_v0 = vadd.f32 %v3532_v62, %v3520_v63  ;;  %v3560_v10 = vpop.f32.mrf.mxu0  ;;  %v8122_v63 = vld [vmem:[%s12188_s12 + $0x108] sm:$0xf0]  ;;  %v2898_v62 = vperm.slane %v11224_v19, 3  ;;  %v8115_v19 = vld [vmem:[%s12188_s12 + $0xd0] sm:$0xf0] }
 0x439   :  { %v3545_v53 = vpop.f32.mrf.mxu3  ;;  %4876 = vmatpush.bf16.msrb.mxu3 %v7469_v41  ;;  %v3521_v6 = vpop.f32.mrf.mxu1  ;;  %v7078_v41 = vld [vmem:[%s12188_s12 + $0x104] sm:$0xf0] }
 0x43a   :  { %v3546_v9 = vadd.f32 %v3545_v53, %v3533_v0  ;;  %v7081_v4 = vor.u32 %v8118_v61, %v7078_v41  ;;  %v7085_v0 = vor.u32 %v8122_v63, %v7084_v42  ;;  %v8111_v53 = vld [vmem:[%s12188_s12 + $0xb4] sm:$0xf]  ;;  %v7050_v6 = vld [vmem:[%s12188_s12 + $0xcc] sm:$0xf0]  ;;  %v7394_v41 = vld [vmem:[%s12188_s12 + $0x374] sm:$0xf0] }
 0x43b   :  { %v7053_v13 = vor.u32 %v8111_v53, %v7050_v6  ;;  %v8191_v61 = vld [vmem:[%s12188_s12 + $0x330] sm:$0xf0]  ;;  %v7328_v6 = vld [vmem:[%s12188_s12 + $0x2e0] sm:$0xf] }
 0x43c   :  { %v3559_v7 = vadd.f32 %v3558_v59, %v3546_v9  ;;  %v8121_v59 = vld [vmem:[%s12188_s12 + $0x100] sm:$0xf0]  ;;  %v7049_v9 = vor.u32 %v8114_v3, %v7048_v2 }
 0x43d   :  { %4877 = vmatpush.bf16.msrb.mxu3 %v7441_v33  ;;  %v7077_v1 = vor.u32 %v8121_v59, %v7076_v56  ;;  %v7056_v33 = vld [vmem:[%s12188_s12 + $0xb8] sm:$0xf]  ;;  %v8199_v59 = vld [vmem:[%s12188_s12 + $0x370] sm:$0xf0] }
 0x43e   :  { %v3616_v23 = vmax.f32 %v3559_v7, 0.0  ;;  %v7057_v14 = vor.u32 %v8115_v19, %v7056_v33  ;;  %v7022_v7 = vld [vmem:[%s12188_s12 + $0x94] sm:$0xf0]  ;;  %v7364_v33 = vld [vmem:[%s12188_s12 + $0x320] sm:$0xf] }
 0x43f   :  { %v3534_v29 = vpop.f32.mrf.mxu2  ;;  %v7025_v24 = vor.u32 %v8104_v15, %v7022_v7  ;;  %v7392_v56 = vld [vmem:[%s12188_s12 + $0x358] sm:$0xf]  ;;  %v8192_v19 = vld [vmem:[%s12188_s12 + $0x338] sm:$0xf0]  ;;  %v7300_v7 = vld [vmem:[%s12188_s12 + $0x2a8] sm:$0xf] }
 0x440   :  { %v11422_v26 = vpack.c.bf16 %v3616_v23, %v3616_v23  ;;  %v8100_v23 = vld [vmem:[%s12188_s12 + $0x58] sm:$0xf0]  ;;  %v8097_v29 = vld [vmem:[%s12188_s12 + $0x44] sm:$0xf]  ;;  %v7393_v3 = vor.u32 %v8199_v59, %v7392_v56 }
 0x441   :  { %v3547_v27 = vpop.f32.mrf.mxu3  ;;  %4878 = vmatpush.bf16.msrb.mxu3 %v7413_v20  ;;  %v7021_v20 = vor.u32 %v8107_v12, %v7020_v55  ;;  %v7365_v12 = vor.u32 %v8192_v19, %v7364_v33  ;;  %v8251_v33 = vld [vmem:[%s12188_s12 + $0x514] sm:$0xf]  ;;  %v7610_v19 = vld [vmem:[%s12188_s12 + $0x52c] sm:$0xf0] }
 0x442   :  { %4775 = vmatmul.bf16.vlgmr.msra.gmra.mxu1 %v11422_v26  ;;  %v6994_v27 = vld [vmem:[%s12188_s12 + $0x5c] sm:$0xf0] }
 0x443   :  { %4845 = vmatpush.bf16.msra.mxu1 %v7161_v32 }
 0x444   :  { %v3571_v28 = vpop.f32.mrf.mxu0  ;;  %4827 = vmatmul.bf16.vlgmr.msra.gmra.mxu0 %v11422_v26  ;;  %4879 = vmatmul.bf16.vlgmr.msrb.gmra.mxu3 %v11422_v26 }
 0x445   :  { %4943 = vmatpush.bf16.msra.mxu3 %v7641_v31  ;;  %4897 = vmatpush.bf16.msra.mxu0 %v7165_v51  ;;  %v3572_v16 = vadd.f32 %v3571_v28, %v2898_v62  ;;  %v8188_v62 = vld [vmem:[%s12188_s12 + $0x31c] sm:$0xf] }
 0x447   :  { %4846 = vmatpush.bf16.msra.mxu1 %v7133_v46  ;;  %v6997_v46 = vor.u32 %v8097_v29, %v6994_v27  ;;  %v7272_v27 = vld [vmem:[%s12188_s12 + $0x270] sm:$0xf] }
 0x449   :  { %4949 = vmatpush.bf16.msrb.mxu3 %v7169_v40  ;;  %v3610_v54 = vpop.f32.mrf.mxu3  ;;  %4898 = vmatpush.bf16.msra.mxu0 %v7137_v34  ;;  %v6993_v40 = vor.u32 %v8100_v23, %v6992_v22  ;;  %v7386_v34 = vld [vmem:[%s12188_s12 + $0x36c] sm:$0xf0]  ;;  %v7338_v22 = vld [vmem:[%s12188_s12 + $0x304] sm:$0xf0] }
 0x44a   :  { %v7389_v63 = vor.u32 %v8195_v48, %v7386_v34  ;;  %v8163_v48 = vld [vmem:[%s12188_s12 + $0x250] sm:$0xf0] }
 0x44b   :  { %4847 = vmatpush.bf16.msra.mxu1 %v7105_v52  ;;  %v7385_v52 = vor.u32 %v8198_v30, %v7384_v57  ;;  %v8175_v57 = vld [vmem:[%s12188_s12 + $0x2b4] sm:$0xf] }
 0x44c   :  { %v3573_v45 = vpop.f32.mrf.mxu0  ;;  %v8167_v30 = vld [vmem:[%s12188_s12 + $0x274] sm:$0xf] }
 0x44d   :  { %4950 = vmatpush.bf16.msrb.mxu3 %v7141_v5  ;;  %4899 = vmatpush.bf16.msra.mxu0 %v7109_v60  ;;  %v8090_v5 = vld [vmem:[%s12188_s12 + $0xc] sm:$0xf]  ;;  %v8196_v45 = vld [vmem:[%s12188_s12 + $0x35c] sm:$0xf] }
 0x44e   :  { %v7397_v53 = vor.u32 %v8196_v45, %v7394_v41 }
 0x44f   :  { %4848 = vmatpush.bf16.msra.mxu1 %v7077_v1  ;;  %v6969_v1 = vor.u32 %v8090_v5, %v6966_v35  ;;  %v8168_v35 = vld [vmem:[%s12188_s12 + $0x27c] sm:$0xf] }
 0x451   :  { %4951 = vmatpush.bf16.msrb.mxu3 %v7113_v39  ;;  %v3584_v17 = vpop.f32.mrf.mxu1  ;;  %v3612_v10 = vpop.f32.mrf.mxu3  ;;  %4900 = vmatpush.bf16.msra.mxu0 %v7081_v4  ;;  %v6965_v39 = vor.u32 %v8093_v44, %v6964_v43  ;;  %v7358_v4 = vld [vmem:[%s12188_s12 + $0x334] sm:$0xf0]  ;;  %v7274_v43 = vld [vmem:[%s12188_s12 + $0x28c] sm:$0xf0]  ;;  %v7273_v44 = vor.u32 %v8170_v37, %v7272_v27  ;;  %v8252_v37 = vld [vmem:[%s12188_s12 + $0x51c] sm:$0xf] }
 0x452   :  { %v3585_v21 = vadd.f32 %v3584_v17, %v3572_v16  ;;  %v8184_v17 = vld [vmem:[%s12188_s12 + $0x2f8] sm:$0xf0]  ;;  %v7366_v10 = vld [vmem:[%s12188_s12 + $0x33c] sm:$0xf0]  ;;  %v7361_v55 = vor.u32 %v8188_v62, %v7358_v4  ;;  %v7277_v5 = vor.u32 %v8167_v30, %v7274_v43  ;;  %v7198_v27 = vld [vmem:[%s12188_s12 + $0x1ec] sm:$0xf0] }
 0x453   :  { %4849 = vmatpush.bf16.msra.mxu1 %v7049_v9  ;;  %v8189_v9 = vld [vmem:[%s12188_s12 + $0x324] sm:$0xf]  ;;  %v7329_v15 = vor.u32 %v8184_v17, %v7328_v6  ;;  %v7218_v62 = vld [vmem:[%s12188_s12 + $0x21c] sm:$0xf0]  ;;  %v8248_v43 = vld [vmem:[%s12188_s12 + $0x4f8] sm:$0xf0] }
 0x454   :  { %v7369_v16 = vor.u32 %v8189_v9, %v7366_v10  ;;  %v8149_v6 = vld [vmem:[%s12188_s12 + $0x1e0] sm:$0xf0]  ;;  %v7224_v10 = vld [vmem:[%s12188_s12 + $0x208] sm:$0xf]  ;;  %v7588_v30 = vld [vmem:[%s12188_s12 + $0x4e0] sm:$0xf] }
 0x455   :  { %4952 = vmatpush.bf16.msrb.mxu3 %v7085_v0  ;;  %4901 = vmatpush.bf16.msra.mxu0 %v7053_v13  ;;  %v7357_v0 = vor.u32 %v8191_v61, %v7356_v36  ;;  %v8181_v13 = vld [vmem:[%s12188_s12 + $0x2e4] sm:$0xf]  ;;  %v8171_v36 = vld [vmem:[%s12188_s12 + $0x290] sm:$0xf0]  ;;  %v8156_v61 = vld [vmem:[%s12188_s12 + $0x218] sm:$0xf0] }
 0x457   :  { %v3597_v31 = vpop.f32.mrf.mxu2  ;;  %4850 = vmatpush.bf16.msra.mxu1 %v7021_v20  ;;  %v8177_v20 = vld [vmem:[%s12188_s12 + $0x2c0] sm:$0xf0] }
 0x458   :  { %v3598_v32 = vadd.f32 %v3597_v31, %v3585_v21  ;;  %v8182_v21 = vld [vmem:[%s12188_s12 + $0x2ec] sm:$0xf]  ;;  %v7337_v31 = vor.u32 %v8185_v11, %v7336_v18  ;;  %v7301_v29 = vor.u32 %v8177_v20, %v7300_v7  ;;  %v7616_v7 = vld [vmem:[%s12188_s12 + $0x518] sm:$0xf]  ;;  %v8255_v18 = vld [vmem:[%s12188_s12 + $0x530] sm:$0xf0]  ;;  %v7613_v11 = vor.u32 %v8251_v33, %v7610_v19 }
 0x459   :  { %4953 = vmatpush.bf16.msrb.mxu3 %v7057_v14  ;;  %v3586_v51 = vpop.f32.mrf.mxu1  ;;  %4902 = vmatpush.bf16.msra.mxu0 %v7025_v24  ;;  %v7330_v14 = vld [vmem:[%s12188_s12 + $0x2fc] sm:$0xf0]  ;;  %v8174_v24 = vld [vmem:[%s12188_s12 + $0x2ac] sm:$0xf]  ;;  %v8231_v19 = vld [vmem:[%s12188_s12 + $0x474] sm:$0xf] }
 0x45a   :  { %v3611_v28 = vadd.f32 %v3610_v54, %v3598_v32  ;;  %v8094_v54 = vld [vmem:[%s12188_s12 + $0x28] sm:$0xf0]  ;;  %v7333_v23 = vor.u32 %v8181_v13, %v7330_v14  ;;  %v7341_v32 = vor.u32 %v8182_v21, %v7338_v22  ;;  %v7308_v51 = vld [vmem:[%s12188_s12 + $0x2b0] sm:$0xf]  ;;  %v7226_v13 = vld [vmem:[%s12188_s12 + $0x224] sm:$0xf0] }
 0x45b   :  { %4851 = vmatpush.bf16.msra.mxu1 %v6993_v40  ;;  %v6973_v2 = vor.u32 %v8094_v54, %v6972_v50  ;;  %v8178_v40 = vld [vmem:[%s12188_s12 + $0x2c8] sm:$0xf0]  ;;  %v7282_v50 = vld [vmem:[%s12188_s12 + $0x294] sm:$0xf0]  ;;  %v8244_v21 = vld [vmem:[%s12188_s12 + $0x4dc] sm:$0xf] }
 0x45c   :  { %v3617_v49 = vmax.f32 %v3611_v28, 0.0  ;;  %v7310_v28 = vld [vmem:[%s12188_s12 + $0x2cc] sm:$0xf0]  ;;  %v7246_v54 = vld [vmem:[%s12188_s12 + $0x254] sm:$0xf0]  ;;  %v7285_v45 = vor.u32 %v8168_v35, %v7282_v50 }
 0x45d   :  { %4954 = vmatpush.bf16.msrb.mxu3 %v7029_v25  ;;  %4903 = vmatpush.bf16.msra.mxu0 %v6997_v46  ;;  %v7302_v25 = vld [vmem:[%s12188_s12 + $0x2c4] sm:$0xf0]  ;;  %v7309_v46 = vor.u32 %v8178_v40, %v7308_v51  ;;  %v7313_v34 = vor.u32 %v8175_v57, %v7310_v28  ;;  %v8146_v14 = vld [vmem:[%s12188_s12 + $0x1cc] sm:$0xf]  ;;  %v7624_v51 = vld [vmem:[%s12188_s12 + $0x520] sm:$0xf] }
 0x45e   :  { %v11575_v60 = vpack.c.bf16 %v3617_v49, %v3617_v49  ;;  %v7305_v38 = vor.u32 %v8174_v24, %v7302_v25  ;;  %v7280_v49 = vld [vmem:[%s12188_s12 + $0x278] sm:$0xf]  ;;  %v7196_v24 = vld [vmem:[%s12188_s12 + $0x1d0] sm:$0xf]  ;;  %v8150_v25 = vld [vmem:[%s12188_s12 + $0x1e8] sm:$0xf0] }
 0x45f   :  { %v3599_v42 = vpop.f32.mrf.mxu2  ;;  %4852 = vmatpush.bf16.msra.mxu1 %v6965_v39  ;;  %v7281_v59 = vor.u32 %v8171_v36, %v7280_v49  ;;  %v7216_v39 = vld [vmem:[%s12188_s12 + $0x200] sm:$0xf]  ;;  %v8256_v40 = vld [vmem:[%s12188_s12 + $0x538] sm:$0xf0]  ;;  %v7197_v28 = vor.u32 %v8150_v25, %v7196_v24  ;;  %v7589_v49 = vor.u32 %v8248_v43, %v7588_v30  ;;  %v7596_v35 = vld [vmem:[%s12188_s12 + $0x4e8] sm:$0xf] }
 0x460   :  { %7654 = vmatmul.msk.bf16.vlgmr.msra.gmra.mxu2 %vm1250_vm0, %v11575_v60  ;;  %7655 = vmatmul.msk.bf16.vlgmr.msrb.gmra.mxu1 %vm1250_vm0, %v11575_v60  ;;  %v7252_v42 = vld [vmem:[%s12188_s12 + $0x240] sm:$0xf]  ;;  %v7217_v4 = vor.u32 %v8156_v61, %v7216_v39  ;;  %v8249_v50 = vld [vmem:[%s12188_s12 + $0x500] sm:$0xf0]  ;;  %v7526_v39 = vld [vmem:[%s12188_s12 + $0x484] sm:$0xf0] }
 0x461   :  { %4955 = vmatpush.bf16.msrb.mxu3 %v7001_v47  ;;  %4858 = vmatpush.bf16.msra.mxu2 %v7385_v52  ;;  %v7244_v47 = vld [vmem:[%s12188_s12 + $0x238] sm:$0xf]  ;;  %v8160_v52 = vld [vmem:[%s12188_s12 + $0x23c] sm:$0xf]  ;;  %v7590_v36 = vld [vmem:[%s12188_s12 + $0x4fc] sm:$0xf0] }
 0x462   :  { %7656 = vmatmul.msk.bf16.vlgmr.msrb.gmra.mxu0 %vm1250_vm0, %v11575_v60  ;;  %7657 = vmatmul.msk.bf16.vlgmr.msra.gmra.mxu3 %vm1250_vm0, %v11575_v60  ;;  %v7245_v56 = vor.u32 %v8163_v48, %v7244_v47  ;;  %v7249_v41 = vor.u32 %v8160_v52, %v7246_v54  ;;  %v7554_v47 = vld [vmem:[%s12188_s12 + $0x4bc] sm:$0xf0]  ;;  %v7560_v54 = vld [vmem:[%s12188_s12 + $0x4a8] sm:$0xf]  ;;  %v8220_v25 = vld [vmem:[%s12188_s12 + $0x418] sm:$0xf0] }
 0x463   :  { %4910 = vmatpush.bf16.msrb.mxu1 %v7389_v63  ;;  %4904 = vmatpush.bf16.msra.mxu0 %v6969_v1  ;;  %v8164_v63 = vld [vmem:[%s12188_s12 + $0x258] sm:$0xf0]  ;;  %v8161_v1 = vld [vmem:[%s12188_s12 + $0x244] sm:$0xf]  ;;  %v7476_v24 = vld [vmem:[%s12188_s12 + $0x400] sm:$0xf] }
 0x464   :  { %v7448_v43 = vld [vmem:[%s12188_s12 + $0x3c8] sm:$0xf] }
 0x465   :  { %4956 = vmatpush.bf16.msrb.mxu3 %v6973_v2  ;;  %4859 = vmatpush.bf16.msra.mxu2 %v7357_v0  ;;  %v7254_v2 = vld [vmem:[%s12188_s12 + $0x25c] sm:$0xf0]  ;;  %v7188_v0 = vld [vmem:[%s12188_s12 + $0x1c8] sm:$0xf] }
 0x466   :  { %v7257_v17 = vor.u32 %v8161_v1, %v7254_v2  ;;  %v7568_v1 = vld [vmem:[%s12188_s12 + $0x4b0] sm:$0xf]  ;;  %v8242_v2 = vld [vmem:[%s12188_s12 + $0x4c8] sm:$0xf0] }
 0x467   :  { %4962 = vmatpush.bf16.msrb.mxu0 %v7393_v3  ;;  %4911 = vmatpush.bf16.msrb.mxu1 %v7361_v55  ;;  %v8153_v3 = vld [vmem:[%s12188_s12 + $0x204] sm:$0xf]  ;;  %v7569_v33 = vor.u32 %v8242_v2, %v7568_v1 }
 0x468   :  { %v7221_v9 = vor.u32 %v8153_v3, %v7218_v62  ;;  %v8157_v55 = vld [vmem:[%s12188_s12 + $0x220] sm:$0xf0]  ;;  %v7532_v62 = vld [vmem:[%s12188_s12 + $0x470] sm:$0xf] }
 0x469   :  { %5014 = vmatpush.bf16.msra.mxu3 %v7397_v53  ;;  %4860 = vmatpush.bf16.msra.mxu2 %v7329_v15  ;;  %v7253_v53 = vor.u32 %v8164_v63, %v7252_v42  ;;  %v7190_v15 = vld [vmem:[%s12188_s12 + $0x1e4] sm:$0xf0]  ;;  %v7225_v20 = vor.u32 %v8157_v55, %v7224_v10  ;;  %v7540_v10 = vld [vmem:[%s12188_s12 + $0x478] sm:$0xf]  ;;  %v8235_v55 = vld [vmem:[%s12188_s12 + $0x490] sm:$0xf0] }
 0x46a   :  { %v7562_v63 = vld [vmem:[%s12188_s12 + $0x4c4] sm:$0xf0] }
 0x46b   :  { %4963 = vmatpush.bf16.msrb.mxu0 %v7365_v12  ;;  %4912 = vmatpush.bf16.msrb.mxu1 %v7333_v23  ;;  %v8154_v12 = vld [vmem:[%s12188_s12 + $0x20c] sm:$0xf]  ;;  %v7193_v23 = vor.u32 %v8146_v14, %v7190_v15  ;;  %v8227_v14 = vld [vmem:[%s12188_s12 + $0x450] sm:$0xf0]  ;;  %v8216_v15 = vld [vmem:[%s12188_s12 + $0x3fc] sm:$0xf] }
 0x46c   :  { %v7229_v22 = vor.u32 %v8154_v12, %v7226_v13  ;;  %v7504_v13 = vld [vmem:[%s12188_s12 + $0x438] sm:$0xf] }
 0x46d   :  { %5015 = vmatpush.bf16.msra.mxu3 %v7369_v16  ;;  %4861 = vmatpush.bf16.msra.mxu2 %v7301_v29  ;;  %v7189_v16 = vor.u32 %v8149_v6, %v7188_v0  ;;  %v7617_v29 = vor.u32 %v8255_v18, %v7616_v7  ;;  %v8223_v0 = vld [vmem:[%s12188_s12 + $0x434] sm:$0xf]  ;;  %v7541_v18 = vor.u32 %v8235_v55, %v7540_v10  ;;  %v8144_v10 = vld [vmem:[%s12188_s12 + $0x1b8] sm:$0xf0]  ;;  %v8133_v55 = vld [vmem:[%s12188_s12 + $0x164] sm:$0xf] }
 0x46f   :  { %4964 = vmatpush.bf16.msrb.mxu0 %v7337_v31  ;;  %4913 = vmatpush.bf16.msrb.mxu1 %v7305_v38  ;;  %v7582_v31 = vld [vmem:[%s12188_s12 + $0x4f4] sm:$0xf0] }
 0x470   :  { %4801 = vmatmul.bf16.vlgmr.msrb.gmra.mxu2 %v11296_v8  ;;  %4853 = vmatmul.bf16.vlgmr.msra.gmra.mxu1 %v11296_v8  ;;  %v7618_v38 = vld [vmem:[%s12188_s12 + $0x534] sm:$0xf0]  ;;  %v7585_v57 = vor.u32 %v8244_v21, %v7582_v31 }
 0x471   :  { %5016 = vmatpush.bf16.msra.mxu3 %v7341_v32  ;;  %4862 = vmatpush.bf16.msra.mxu2 %v7273_v44  ;;  %v8147_v32 = vld [vmem:[%s12188_s12 + $0x1d4] sm:$0xf]  ;;  %v7621_v48 = vor.u32 %v8252_v37, %v7618_v38  ;;  %v7506_v21 = vld [vmem:[%s12188_s12 + $0x454] sm:$0xf0]  ;;  %v8217_v38 = vld [vmem:[%s12188_s12 + $0x404] sm:$0xf] }
 0x472   :  { %4905 = vmatmul.bf16.vlgmr.msra.gmra.mxu0 %v11296_v8  ;;  %4957 = vmatmul.bf16.vlgmr.msrb.gmra.mxu3 %v11296_v8  ;;  %v7201_v44 = vor.u32 %v8147_v32, %v7198_v27  ;;  %v7442_v32 = vld [vmem:[%s12188_s12 + $0x3dc] sm:$0xf0] }
 0x473   :  { %4965 = vmatpush.bf16.msrb.mxu0 %v7309_v46  ;;  %4914 = vmatpush.bf16.msrb.mxu1 %v7277_v5  ;;  %v8237_v46 = vld [vmem:[%s12188_s12 + $0x4a4] sm:$0xf] }
 0x474   :  { %v8245_v5 = vld [vmem:[%s12188_s12 + $0x4e4] sm:$0xf]  ;;  %v7557_v52 = vor.u32 %v8237_v46, %v7554_v47  ;;  %v8202_v46 = vld [vmem:[%s12188_s12 + $0x38c] sm:$0xf]  ;;  %v7414_v47 = vld [vmem:[%s12188_s12 + $0x3a4] sm:$0xf0] }
 0x475   :  { %5017 = vmatpush.bf16.msra.mxu3 %v7313_v34  ;;  %4863 = vmatpush.bf16.msra.mxu2 %v7245_v56  ;;  %v7625_v34 = vor.u32 %v8256_v40, %v7624_v51  ;;  %v8241_v56 = vld [vmem:[%s12188_s12 + $0x4c0] sm:$0xf0]  ;;  %v7593_v61 = vor.u32 %v8245_v5, %v7590_v36  ;;  %v7477_v51 = vor.u32 %v8220_v25, %v7476_v24  ;;  %v7478_v40 = vld [vmem:[%s12188_s12 + $0x41c] sm:$0xf0]  ;;  %v8210_v5 = vld [vmem:[%s12188_s12 + $0x3cc] sm:$0xf] }
 0x476   :  { %v7561_v42 = vor.u32 %v8241_v56, %v7560_v54  ;;  %v8262_v36 = vld [vmem:[%s12188_s12 + $0x568] sm:$0xf0]  ;;  %v7417_v56 = vor.u32 %v8202_v46, %v7414_v47  ;;  %v8119_v25 = vld [vmem:[%s12188_s12 + $0xf4] sm:$0xf]  ;;  %v8105_v46 = vld [vmem:[%s12188_s12 + $0x84] sm:$0xf] }
 0x477   :  { %4966 = vmatpush.bf16.msrb.mxu0 %v7281_v59  ;;  %4915 = vmatpush.bf16.msrb.mxu1 %v7249_v41  ;;  %v8230_v59 = vld [vmem:[%s12188_s12 + $0x46c] sm:$0xf]  ;;  %v7030_v47 = vld [vmem:[%s12188_s12 + $0x9c] sm:$0xf0] }
 0x478   :  { %v8238_v41 = vld [vmem:[%s12188_s12 + $0x4ac] sm:$0xf]  ;;  %v7529_v3 = vor.u32 %v8230_v59, %v7526_v39  ;;  %v7420_v59 = vld [vmem:[%s12188_s12 + $0x390] sm:$0xf] }
 0x479   :  { %5018 = vmatpush.bf16.msra.mxu3 %v7285_v45  ;;  %4864 = vmatpush.bf16.msra.mxu2 %v7217_v4  ;;  %v7597_v45 = vor.u32 %v8249_v50, %v7596_v35  ;;  %v8234_v4 = vld [vmem:[%s12188_s12 + $0x488] sm:$0xf0]  ;;  %v7565_v6 = vor.u32 %v8238_v41, %v7562_v63  ;;  %v7450_v50 = vld [vmem:[%s12188_s12 + $0x3e4] sm:$0xf0]  ;;  %v7170_v41 = vld [vmem:[%s12188_s12 + $0x1b4] sm:$0xf0] }
 0x47a   :  { %v8214_v54 = vld [vmem:[%s12188_s12 + $0x3e8] sm:$0xf0]  ;;  %v7646_v63 = vld [vmem:[%s12188_s12 + $0x56c] sm:$0xf0]  ;;  %v7453_v1 = vor.u32 %v8210_v5, %v7450_v50  ;;  %v7033_v5 = vor.u32 %v8105_v46, %v7030_v47  ;;  %v7002_v50 = vld [vmem:[%s12188_s12 + $0x64] sm:$0xf0] }
 0x47b   :  { %4967 = vmatpush.bf16.msrb.mxu0 %v7253_v53  ;;  %4916 = vmatpush.bf16.msrb.mxu1 %v7221_v9  ;;  %v7498_v53 = vld [vmem:[%s12188_s12 + $0x44c] sm:$0xf0]  ;;  %v8206_v39 = vld [vmem:[%s12188_s12 + $0x3a8] sm:$0xf0] }
 0x47c   :  { %v7534_v9 = vld [vmem:[%s12188_s12 + $0x48c] sm:$0xf0]  ;;  %v7501_v12 = vor.u32 %v8223_v0, %v7498_v53  ;;  %v7428_v0 = vld [vmem:[%s12188_s12 + $0x398] sm:$0xf]  ;;  %v8207_v53 = vld [vmem:[%s12188_s12 + $0x3b0] sm:$0xf0] }
 0x47d   :  { %5019 = vmatpush.bf16.msra.mxu3 %v7257_v17  ;;  %4865 = vmatpush.bf16.msra.mxu2 %v7189_v16  ;;  %v7533_v17 = vor.u32 %v8234_v4, %v7532_v62  ;;  %v7470_v16 = vld [vmem:[%s12188_s12 + $0x414] sm:$0xf0]  ;;  %v7537_v7 = vor.u32 %v8231_v19, %v7534_v9  ;;  %v7421_v62 = vor.u32 %v8206_v39, %v7420_v59  ;;  %v7422_v4 = vld [vmem:[%s12188_s12 + $0x3ac] sm:$0xf0]  ;;  %v7176_v19 = vld [vmem:[%s12188_s12 + $0x1a0] sm:$0xf] }
 0x47e   :  { %v7473_v31 = vor.u32 %v8216_v15, %v7470_v16  ;;  %v8263_v9 = vld [vmem:[%s12188_s12 + $0x570] sm:$0xf0]  ;;  %v7177_v16 = vor.u32 %v8144_v10, %v7176_v19  ;;  %v8130_v24 = vld [vmem:[%s12188_s12 + $0x148] sm:$0xf0]  ;;  %v7008_v39 = vld [vmem:[%s12188_s12 + $0x50] sm:$0xf] }
 0x47f   :  { %4968 = vmatpush.bf16.msrb.mxu0 %v7225_v20  ;;  %4917 = vmatpush.bf16.msrb.mxu1 %v7193_v23  ;;  %v7505_v20 = vor.u32 %v8227_v14, %v7504_v13  ;;  %v8228_v23 = vld [vmem:[%s12188_s12 + $0x458] sm:$0xf0]  ;;  %v7429_v14 = vor.u32 %v8207_v53, %v7428_v0  ;;  %v8095_v0 = vld [vmem:[%s12188_s12 + $0x30] sm:$0xf0]  ;;  %v7372_v53 = vld [vmem:[%s12188_s12 + $0x328] sm:$0xf] }
 0x480   :  { %4866 = vmatmul.bf16.vlgmr.msra.gmra.mxu2 %v11361_v58  ;;  %v7344_v10 = vld [vmem:[%s12188_s12 + $0x2f0] sm:$0xf] }
 0x481   :  { %4923 = vmatpush.bf16.msrb.mxu2 %v7613_v11  ;;  %5020 = vmatpush.bf16.msra.mxu3 %v7229_v22  ;;  %v8224_v11 = vld [vmem:[%s12188_s12 + $0x43c] sm:$0xf]  ;;  %v7512_v22 = vld [vmem:[%s12188_s12 + $0x440] sm:$0xf] }
 0x482   :  { %4918 = vmatmul.bf16.vlgmr.msrb.gmra.mxu1 %v11361_v58  ;;  %v7509_v27 = vor.u32 %v8224_v11, %v7506_v21  ;;  %v7513_v37 = vor.u32 %v8228_v23, %v7512_v22  ;;  %v8137_v11 = vld [vmem:[%s12188_s12 + $0x180] sm:$0xf0]  ;;  %v7114_v21 = vld [vmem:[%s12188_s12 + $0x144] sm:$0xf0] }
 0x483   :  { %4975 = vmatpush.bf16.msra.mxu1 %v7617_v29  ;;  %4969 = vmatpush.bf16.msrb.mxu0 %v7197_v28  ;;  %v8209_v29 = vld [vmem:[%s12188_s12 + $0x3c4] sm:$0xf] }
 0x484   :  { %v8221_v28 = vld [vmem:[%s12188_s12 + $0x420] sm:$0xf0]  ;;  %v7445_v30 = vor.u32 %v8209_v29, %v7442_v32  ;;  %v7086_v29 = vld [vmem:[%s12188_s12 + $0x10c] sm:$0xf0] }
 0x485   :  { %4924 = vmatpush.bf16.msrb.mxu2 %v7585_v57  ;;  %5021 = vmatpush.bf16.msra.mxu3 %v7201_v44  ;;  %v7484_v57 = vld [vmem:[%s12188_s12 + $0x408] sm:$0xf]  ;;  %v8213_v44 = vld [vmem:[%s12188_s12 + $0x3e0] sm:$0xf0] }
 0x486   :  { %4970 = vmatmul.bf16.vlgmr.msrb.gmra.mxu0 %v11361_v58  ;;  %v7449_v35 = vor.u32 %v8213_v44, %v7448_v43  ;;  %v7064_v43 = vld [vmem:[%s12188_s12 + $0xc0] sm:$0xf]  ;;  %v8116_v44 = vld [vmem:[%s12188_s12 + $0xd8] sm:$0xf0] }
 0x487   :  { %5027 = vmatpush.bf16.msra.mxu0 %v7621_v48  ;;  %4976 = vmatpush.bf16.msra.mxu1 %v7589_v49  ;;  %v7481_v48 = vor.u32 %v8217_v38, %v7478_v40  ;;  %v7644_v49 = vld [vmem:[%s12188_s12 + $0x550] sm:$0xf]  ;;  %v8112_v38 = vld [vmem:[%s12188_s12 + $0xbc] sm:$0xf] }
 0x488   :  { %5022 = vmatmul.bf16.vlgmr.msra.gmra.mxu3 %v11361_v58 }
 0x489   :  { %5079 = vmatpush.bf16.msrb.mxu3 %v7625_v34  ;;  %4925 = vmatpush.bf16.msrb.mxu2 %v7557_v52  ;;  %v7485_v34 = vor.u32 %v8221_v28, %v7484_v57  ;;  %v7456_v52 = vld [vmem:[%s12188_s12 + $0x3d0] sm:$0xf]  ;;  %v12035_v57 = vld [vmem:[%s12190_s13] sm:$0x7f] }
 0x48a   :  { %v7457_v2 = vor.u32 %v8214_v54, %v7456_v52 }
 0x48b   :  { %5028 = vmatpush.bf16.msra.mxu0 %v7593_v61  ;;  %4977 = vmatpush.bf16.msra.mxu1 %v7561_v42  ;;  %v8140_v61 = vld [vmem:[%s12188_s12 + $0x19c] sm:$0xf]  ;;  %v8259_v42 = vld [vmem:[%s12188_s12 + $0x554] sm:$0xf] }
 0x48d   :  { %5080 = vmatpush.bf16.msrb.mxu3 %v7597_v45  ;;  %4926 = vmatpush.bf16.msrb.mxu2 %v7529_v3  ;;  %v7645_v45 = vor.u32 %v8262_v36, %v7644_v49  ;;  %v8203_v3 = vld [vmem:[%s12188_s12 + $0x394] sm:$0xf]  ;;  %v7036_v49 = vld [vmem:[%s12188_s12 + $0x88] sm:$0xf]  ;;  %v8109_v36 = vld [vmem:[%s12188_s12 + $0xa0] sm:$0xf0] }
 0x48e   :  { %v7425_v13 = vor.u32 %v8203_v3, %v7422_v4  ;;  %v6980_v4 = vld [vmem:[%s12188_s12 + $0x18] sm:$0xf] }
 0x48f   :  { %5029 = vmatpush.bf16.msra.mxu0 %v7565_v6  ;;  %4978 = vmatpush.bf16.msra.mxu1 %v7533_v17  ;;  %v7173_v6 = vor.u32 %v8140_v61, %v7170_v41  ;;  %v7652_v17 = vld [vmem:[%s12188_s12 + $0x558] sm:$0xf]  ;;  %v8091_v41 = vld [vmem:[%s12188_s12 + $0x14] sm:$0xf]  ;;  %v6981_v19 = vor.u32 %v8095_v0, %v6980_v4 }
 0x490   :  { %v7653_v15 = vor.u32 %v8263_v9, %v7652_v17 }
 0x491   :  { %5081 = vmatpush.bf16.msrb.mxu3 %v7569_v33  ;;  %4927 = vmatpush.bf16.msrb.mxu2 %v7501_v12  ;;  %v7649_v33 = vor.u32 %v8259_v42, %v7646_v63  ;;  %v7142_v12 = vld [vmem:[%s12188_s12 + $0x17c] sm:$0xf0]  ;;  %v6974_v42 = vld [vmem:[%s12188_s12 + $0x2c] sm:$0xf0] }
 0x492   :  { %v6977_v3 = vor.u32 %v8091_v41, %v6974_v42 }
 0x493   :  { %5030 = vmatpush.bf16.msra.mxu0 %v7537_v7  ;;  %4979 = vmatpush.bf16.msra.mxu1 %v7505_v20  ;;  %v7145_v7 = vor.u32 %v8133_v55, %v7142_v12  ;;  %v8126_v20 = vld [vmem:[%s12188_s12 + $0x12c] sm:$0xf] }
 0x494   :  { %v7117_v23 = vor.u32 %v8126_v20, %v7114_v21  ;;  %v8186_v55 = vld [vmem:[%s12188_s12 + $0x308] sm:$0xf0]  ;;  %v8172_v20 = vld [vmem:[%s12188_s12 + $0x298] sm:$0xf0] }
 0x495   :  { %5082 = vmatpush.bf16.msrb.mxu3 %v7541_v18  ;;  %4928 = vmatpush.bf16.msrb.mxu2 %v7473_v31  ;;  %v7148_v18 = vld [vmem:[%s12188_s12 + $0x168] sm:$0xf]  ;;  %v7120_v31 = vld [vmem:[%s12188_s12 + $0x130] sm:$0xf]  ;;  %v7345_v12 = vor.u32 %v8186_v55, %v7344_v10 }
 0x496   :  { %v7149_v22 = vor.u32 %v8137_v11, %v7148_v18  ;;  %v7121_v32 = vor.u32 %v8130_v24, %v7120_v31  ;;  %v7288_v11 = vld [vmem:[%s12188_s12 + $0x280] sm:$0xf] }
 0x497   :  { %5031 = vmatpush.bf16.msra.mxu0 %v7509_v27  ;;  %4980 = vmatpush.bf16.msra.mxu1 %v7477_v51  ;;  %v7089_v27 = vor.u32 %v8119_v25, %v7086_v29  ;;  %v7058_v51 = vld [vmem:[%s12188_s12 + $0xd4] sm:$0xf0]  ;;  %v7289_v21 = vor.u32 %v8172_v20, %v7288_v11  ;;  %v7232_v29 = vld [vmem:[%s12188_s12 + $0x210] sm:$0xf] }
 0x499   :  { %5083 = vmatpush.bf16.msrb.mxu3 %v7513_v37  ;;  %4929 = vmatpush.bf16.msrb.mxu2 %v7445_v30  ;;  %v8123_v37 = vld [vmem:[%s12188_s12 + $0x110] sm:$0xf0]  ;;  %v7061_v30 = vor.u32 %v8112_v38, %v7058_v51 }
 0x49b   :  { %5032 = vmatpush.bf16.msra.mxu0 %v7481_v48  ;;  %4981 = vmatpush.bf16.msra.mxu1 %v7449_v35  ;;  %v3824_v48 = vperm.slane %v12035_v57, 0  ;;  %v8098_v35 = vld [vmem:[%s12188_s12 + $0x4c] sm:$0xf] }
 0x49c   :  { %v7005_v59 = vor.u32 %v8098_v35, %v7002_v50  ;;  %v3825_v50 = vperm.slane %v12035_v57, 1 }
 0x49d   :  { %5084 = vmatpush.bf16.msrb.mxu3 %v7485_v34  ;;  %4930 = vmatpush.bf16.msrb.mxu2 %v7417_v56  ;;  %v7065_v34 = vor.u32 %v8116_v44, %v7064_v43  ;;  %v7037_v56 = vor.u32 %v8109_v36, %v7036_v49 }
 0x49f   :  { %5033 = vmatpush.bf16.msra.mxu0 %v7453_v1  ;;  %4982 = vmatpush.bf16.msra.mxu1 %v7421_v62  ;;  %v7400_v1 = vld [vmem:[%s12188_s12 + $0x360] sm:$0xf] }
 0x4a0   :  { %4931 = vmatmul.bf16.vlgmr.msrb.gmra.mxu2 %v11422_v26 }
 0x4a1   :  { %4995 = vmatpush.bf16.msra.mxu2 %v7645_v45  ;;  %5085 = vmatpush.bf16.msrb.mxu3 %v7457_v2  ;;  %v8102_v45 = vld [vmem:[%s12188_s12 + $0x68] sm:$0xf0] }
 0x4a2   :  { %4983 = vmatmul.bf16.vlgmr.msra.gmra.mxu1 %v11422_v26  ;;  %v7009_v2 = vor.u32 %v8102_v45, %v7008_v39 }
 0x4a3   :  { %5047 = vmatpush.bf16.msrb.mxu1 %v7649_v33  ;;  %5034 = vmatpush.bf16.msra.mxu0 %v7425_v13  ;;  %v7316_v13 = vld [vmem:[%s12188_s12 + $0x2b8] sm:$0xf] }
 0x4a5   :  { %5001 = vmatpush.bf16.msrb.mxu2 %v7173_v6  ;;  %5086 = vmatpush.bf16.msrb.mxu3 %v7429_v14  ;;  %v8193_v6 = vld [vmem:[%s12188_s12 + $0x340] sm:$0xf0]  ;;  %v8179_v14 = vld [vmem:[%s12188_s12 + $0x2d0] sm:$0xf0] }
 0x4a6   :  { %5035 = vmatmul.bf16.vlgmr.msra.gmra.mxu0 %v11422_v26  ;;  %v4750_v40 = vpop.f32.mrf.mxu3  ;;  %v7373_v9 = vor.u32 %v8193_v6, %v7372_v53  ;;  %v7317_v18 = vor.u32 %v8179_v14, %v7316_v13 }
 0x4a7   :  { %5099 = vmatpush.bf16.msrb.mxu0 %v7653_v15  ;;  %5053 = vmatpush.bf16.msra.mxu1 %v7177_v16  ;;  %v4751_v54 = vadd.f32 %v4750_v40, %v3824_v48 }
 0x4a8   :  { %5087 = vmatmul.bf16.vlgmr.msrb.gmra.mxu3 %v11422_v26  ;;  %v7092_v26 = vld [vmem:[%s12188_s12 + $0xf8] sm:$0xf] }
 0x4a9   :  { %5002 = vmatpush.bf16.msrb.mxu2 %v7145_v7  ;;  %v7093_v28 = vor.u32 %v8123_v37, %v7092_v26  ;;  %v7204_v26 = vld [vmem:[%s12188_s12 + $0x1d8] sm:$0xf]  ;;  %v8151_v37 = vld [vmem:[%s12188_s12 + $0x1f0] sm:$0xf0] }
 0x4aa   :  { %v7205_v51 = vor.u32 %v8151_v37, %v7204_v26 }
 0x4ab   :  { %5054 = vmatpush.bf16.msra.mxu1 %v7149_v22  ;;  %v7260_v22 = vld [vmem:[%s12188_s12 + $0x248] sm:$0xf] }
 0x4ad   :  { %5003 = vmatpush.bf16.msrb.mxu2 %v7117_v23 }
 0x4ae   :  { %v4752_v52 = vpop.f32.mrf.mxu3 }
 0x4af   :  { %5055 = vmatpush.bf16.msra.mxu1 %v7121_v32  ;;  %v8158_v32 = vld [vmem:[%s12188_s12 + $0x228] sm:$0xf0] }
 0x4b0   :  { %7658 = vmatmul.msk.bf16.vlgmr.msra.gmra.mxu2 %vm1250_vm0, %v11575_v60 }
 0x4b1   :  { %5004 = vmatpush.bf16.msrb.mxu2 %v7089_v27  ;;  %v4763_v61 = vpop.f32.mrf.mxu0  ;;  %v7233_v27 = vor.u32 %v8158_v32, %v7232_v29 }
 0x4b2   :  { %7659 = vmatmul.msk.bf16.vlgmr.msrb.gmra.mxu1 %vm1250_vm0, %v11575_v60  ;;  %v4764_v63 = vadd.f32 %v4763_v61, %v4751_v54 }
 0x4b3   :  { %5056 = vmatpush.bf16.msra.mxu1 %v7093_v28 }
 0x4b5   :  { %5005 = vmatpush.bf16.msrb.mxu2 %v7061_v30 }
 0x4b6   :  { %7660 = vmatmul.msk.bf16.vlgmr.msrb.gmra.mxu0 %vm1250_vm0, %v11575_v60  ;;  %v8200_v60 = vld [vmem:[%s12188_s12 + $0x378] sm:$0xf0] }
 0x4b7   :  { %5057 = vmatpush.bf16.msra.mxu1 %v7065_v34  ;;  %v7401_v62 = vor.u32 %v8200_v60, %v7400_v1  ;;  %v12098_v33 = vpop.f32.mrf.mxu3  ;;  %v3828_v60 = vperm.slane %v12035_v57, 4 }
 0x4b9   :  { %5006 = vmatpush.bf16.msrb.mxu2 %v7033_v5  ;;  %v4765_v17 = vpop.f32.mrf.mxu0 }
 0x4bb   :  { %5058 = vmatpush.bf16.msra.mxu1 %v7037_v56 }
 0x4bd   :  { %5007 = vmatpush.bf16.msrb.mxu2 %v7005_v59 }
 0x4bf   :  { %5059 = vmatpush.bf16.msra.mxu1 %v7009_v2  ;;  %v4776_v15 = vpop.f32.mrf.mxu1  ;;  %v4817_v16 = vpop.f32.mrf.mxu3 }
 0x4c0   :  { %v4777_v43 = vadd.f32 %v4776_v15, %v4764_v63 }
 0x4c1   :  { %5008 = vmatpush.bf16.msrb.mxu2 %v6977_v3  ;;  %v4828_v7 = vpop.f32.mrf.mxu0  ;;  %v3826_v3 = vperm.slane %v12035_v57, 2 }
 0x4c3   :  { %5060 = vmatpush.bf16.msra.mxu1 %v6981_v19 }
 0x4c4   :  { %5009 = vmatmul.bf16.vlgmr.msrb.gmra.mxu2 %v11296_v8 }
 0x4c5   :  { %5066 = vmatpush.bf16.msra.mxu2 %v7401_v62 }
 0x4c6   :  { %5061 = vmatmul.bf16.vlgmr.msra.gmra.mxu1 %v11296_v8  ;;  %v8165_v8 = vld [vmem:[%s12188_s12 + $0x260] sm:$0xf0] }
 0x4c7   :  { %v4778_v23 = vpop.f32.mrf.mxu1  ;;  %v4880_v31 = vpop.f32.mrf.mxu3  ;;  %v7261_v25 = vor.u32 %v8165_v8, %v7260_v22 }
 0x4c9   :  { %5067 = vmatpush.bf16.msra.mxu2 %v7373_v9  ;;  %v4830_v24 = vpop.f32.mrf.mxu0 }
 0x4cd   :  { %5068 = vmatpush.bf16.msra.mxu2 %v7345_v12 }
 0x4cf   :  { %v4882_v38 = vpop.f32.mrf.mxu3 }
 0x4d1   :  { %5069 = vmatpush.bf16.msra.mxu2 %v7317_v18 }
 0x4d5   :  { %5070 = vmatpush.bf16.msra.mxu2 %v7289_v21 }
 0x4d9   :  { %5071 = vmatpush.bf16.msra.mxu2 %v7261_v25 }
 0x4dd   :  { %5072 = vmatpush.bf16.msra.mxu2 %v7233_v27  ;;  %v4841_v40 = vpop.f32.mrf.mxu1 }
 0x4df   :  { %v4893_v28 = vpop.f32.mrf.mxu0 }
 0x4e1   :  { %5073 = vmatpush.bf16.msra.mxu2 %v7205_v51 }
 0x4e3   :  { %v4789_v30 = vpop.f32.mrf.mxu2 }
 0x4e4   :  { %5074 = vmatmul.bf16.vlgmr.msra.gmra.mxu2 %v11361_v58  ;;  %v4790_v47 = vadd.f32 %v4789_v30, %v4777_v43 }
 0x4e5   :  { %v12139_v44 = vpop.f32.mrf.mxu3  ;;  %v4843_v46 = vpop.f32.mrf.mxu1 }
 0x4e6   :  { %v7661_v34 = vmul.f32 -1.442695, %v4790_v47  ;;  %v3827_v46 = vperm.slane %v12035_v57, 3 }
 0x4e7   :  { %v4895_v48 = vpop.f32.mrf.mxu0 }
 0x4e8   :  { %8273 = vpow2.f32 %v7661_v34 }
 0x4eb   :  { %v4791_v5 = vpop.f32.mrf.mxu2 }
 0x4ed   :  { %v4947_v49 = vpop.f32.mrf.mxu3  ;;  %v4854_v36 = vpop.f32.mrf.mxu1 }
 0x4ee   :  { %v8274_v58 = vpop.eup %8273  ;;  %v4855_v53 = vadd.f32 %v4854_v36, %v3826_v3 }
 0x4ef   :  { %v12141_v35 = vpop.f32.mrf.mxu0  ;;  %v5126_v45 = vadd.f32 1.0, %v8274_v58 }
 0x4f0   :  { %v4907_v48 = vadd.f32 %v12141_v35, %v3827_v46 }
 0x4f1   :  { %8275 = vrcp.f32 %v5126_v45  ;;  %vm5138_vm3 = vweird.f32 %v5126_v45  ;;  %v5144_v23 = vand.u32 2147483648, %v5126_v45  ;;  %v5142_v29 = vand.u32 2147483647, %v5126_v45 }
 0x4f3   :  { %v4802_v52 = vpop.f32.mrf.mxu2  ;;  %v5145_v38 = vor.u32 1.1754944e-38, %v5144_v23  ;;  %vm5143_vm8 = vcmp.eq.f32.partialorder %v5142_v29, 8.507059e+37 }
 0x4f4   :  { %v4803_v54 = vadd.f32 %v4802_v52, %v3825_v50 }
 0x4f5   :  { %v4958_v56 = vpop.f32.mrf.mxu3  ;;  %v4856_v59 = vpop.f32.mrf.mxu1 }
 0x4f6   :  { %v4816_v39 = vadd.f32 %v12098_v33, %v4803_v54  ;;  %v4959_v0 = vadd.f32 %v4958_v56, %v3828_v60 }
 0x4f7   :  { %v4908_v61 = vpop.f32.mrf.mxu0  ;;  %v8276_v4 = vpop.eup %8275 }
 0x4f8   :  { %v4829_v41 = vadd.f32 %v4828_v7, %v4816_v39  ;;  %v5134_v9 = vmul.f32 %v8276_v4, %v5126_v45  ;;  %vm5139_vm2 = vweird.f32 %v8276_v4 }
 0x4f9   :  { %vm5140_vm5 = vmor %vm5138_vm3, %vm5139_vm2 }
 0x4fa   :  { %v4842_v42 = vadd.f32 %v4841_v40, %v4829_v41  ;;  %v5135_v13 = vsub.f32 1.0, %v5134_v9 }
 0x4fb   :  { %v4804_v63 = vpop.f32.mrf.mxu2 }
 0x4fc   :  { %v7662_v1 = vmul.f32 -1.442695, %v4842_v42  ;;  %v5136_v11 = vmul.f32 %v8276_v4, %v5135_v13 }
 0x4fd   :  { %v4960_v2 = vpop.f32.mrf.mxu3 }
 0x4fe   :  { %8277 = vpow2.f32 %v7662_v1  ;;  %v5137_v22 = vadd.f32 %v8276_v4, %v5136_v11  ;;  %v3829_v11 = vperm.slane %v12035_v57, 5 }
 0x4ff   :  { %v4919_v62 = vpop.f32.mrf.mxu1 }
 0x500   :  { %v5141_v26 = vsel %vm5140_vm5, %v8276_v4, %v5137_v22  ;;  %v4920_v5 = vadd.f32 %v4919_v62, %v4907_v48 }
 0x503   :  { %v4971_v6 = vpop.f32.mrf.mxu0  ;;  %v4867_v33 = vpop.f32.mrf.mxu2 }
 0x504   :  { %v12147_v19 = vadd.f32 %v4971_v6, %v4959_v0  ;;  %v8278_v17 = vpop.eup %8277  ;;  %v4868_v10 = vadd.f32 %v4867_v33, %v4855_v53 }
 0x505   :  { %v5127_v55 = vadd.f32 1.0, %v8278_v17 }
 0x506   :  { %v4881_v12 = vadd.f32 %v4880_v31, %v4868_v10 }
 0x507   :  { %8279 = vrcp.f32 %v5127_v55  ;;  %v4921_v15 = vpop.f32.mrf.mxu1  ;;  %v5159_v24 = vand.u32 2147483648, %v5127_v55  ;;  %v5157_v32 = vand.u32 2147483647, %v5127_v55  ;;  %vm5153_vm6 = vweird.f32 %v5127_v55 }
 0x508   :  { %v4894_v14 = vadd.f32 %v4893_v28, %v4881_v12  ;;  %v5146_v28 = vsel %vm5143_vm8, %v5145_v38, %v5141_v26 }
 0x509   :  { %v5160_v51 = vor.u32 1.1754944e-38, %v5159_v24  ;;  %vm5158_vm9 = vcmp.eq.f32.partialorder %v5157_v32, 8.507059e+37 }
 0x50a   :  { %v7663_v27 = vmul.f32 -1.442695, %v4894_v14 }
 0x50b   :  { %v12149_v16 = vpop.f32.mrf.mxu3  ;;  %v4973_v7 = vpop.f32.mrf.mxu0 }
 0x50c   :  { %v4869_v18 = vpop.f32.mrf.mxu2  ;;  %8281 = vpow2.f32 %v7663_v27 }
 0x50d   :  { %v8280_v20 = vpop.eup %8279 }
 0x50e   :  { %v5149_v21 = vmul.f32 %v8280_v20, %v5127_v55  ;;  %vm5154_vm4 = vweird.f32 %v8280_v20 }
 0x50f   :  { %vm5155_vm7 = vmor %vm5153_vm6, %vm5154_vm4 }
 0x510   :  { %v5150_v8 = vsub.f32 1.0, %v5149_v21 }
 0x512   :  { %v5151_v31 = vmul.f32 %v8280_v20, %v5150_v8  ;;  %v8282_v47 = vpop.eup %8281 }
 0x513   :  { %v5025_v25 = vpop.f32.mrf.mxu3  ;;  %v5128_v49 = vadd.f32 1.0, %v8282_v47 }
 0x514   :  { %v5152_v37 = vadd.f32 %v8280_v20, %v5151_v31 }
 0x515   :  { %8283 = vrcp.f32 %v5128_v49  ;;  %vm5168_vm11 = vweird.f32 %v5128_v49  ;;  %v5172_v12 = vand.u32 2147483647, %v5128_v49  ;;  %v5174_v13 = vand.u32 2147483648, %v5128_v49 }
 0x516   :  { %v5156_v40 = vsel %vm5155_vm7, %v8280_v20, %v5152_v37 }
 0x517   :  { %v5161_v30 = vsel %vm5158_vm9, %v5160_v51, %v5156_v40  ;;  %v5175_v20 = vor.u32 1.1754944e-38, %v5174_v13  ;;  %vm5173_vm0 = vcmp.eq.f32.partialorder %v5172_v12, 8.507059e+37 }
 0x518   :  { %v5238_v43 = vpack.c.bf16 %v5161_v30, %v5146_v28 }
 0x51a   :  { %5242 = vst [vmem:[%s12191_s14] sm:$0xff] %v5238_v43 }
 0x51b   :  { %v8284_v45 = vpop.eup %8283 }
 0x51c   :  { %v5164_v42 = vmul.f32 %v8284_v45, %v5128_v49  ;;  %vm5169_vm10 = vweird.f32 %v8284_v45 }
 0x51d   :  { %vm5170_vm13 = vmor %vm5168_vm11, %vm5169_vm10 }
 0x51e   :  { %v5165_v3 = vsub.f32 1.0, %v5164_v42 }
 0x51f   :  { %v4984_v34 = vpop.f32.mrf.mxu1 }
 0x520   :  { %v5166_v4 = vmul.f32 %v8284_v45, %v5165_v3 }
 0x522   :  { %v5167_v10 = vadd.f32 %v8284_v45, %v5166_v4 }
 0x523   :  { %v5036_v36 = vpop.f32.mrf.mxu0  ;;  %v4932_v50 = vpop.f32.mrf.mxu2 }
 0x524   :  { %v4933_v52 = vadd.f32 %v4932_v50, %v4920_v5 }
 0x526   :  { %v4946_v58 = vadd.f32 %v12139_v44, %v4933_v52  ;;  %v4985_v44 = vadd.f32 %v4984_v34, %v12147_v19  ;;  %v5171_v19 = vsel %vm5170_vm13, %v8284_v45, %v5167_v10  ;;  %v3830_v34 = vperm.slane %v12035_v57, 6 }
 0x527   :  { %v4986_v56 = vpop.f32.mrf.mxu1  ;;  %v5176_v23 = vsel %vm5173_vm0, %v5175_v20, %v5171_v19 }
 0x528   :  { %v7664_v54 = vmul.f32 -1.442695, %v4946_v58 }
 0x52a   :  { %8285 = vpow2.f32 %v7664_v54 }
 0x52b   :  { %v12157_v59 = vpop.f32.mrf.mxu3  ;;  %v5038_v39 = vpop.f32.mrf.mxu0 }
 0x52c   :  { %v4934_v61 = vpop.f32.mrf.mxu2 }
 0x52f   :  { %v5049_v63 = vpop.f32.mrf.mxu1 }
 0x530   :  { %v8286_v41 = vpop.eup %8285 }
 0x531   :  { %v5129_v35 = vadd.f32 1.0, %v8286_v41 }
 0x533   :  { %v5090_v1 = vpop.f32.mrf.mxu3  ;;  %8287 = vrcp.f32 %v5129_v35  ;;  %v12159_v60 = vpop.f32.mrf.mxu0  ;;  %v5189_v14 = vand.u32 2147483648, %v5129_v35  ;;  %v5187_v7 = vand.u32 2147483647, %v5129_v35  ;;  %vm5183_vm14 = vweird.f32 %v5129_v35 }
 0x534   :  { %v4997_v2 = vpop.f32.mrf.mxu2 }
 0x535   :  { %v4998_v62 = vadd.f32 %v4997_v2, %v4985_v44  ;;  %v5190_v21 = vor.u32 1.1754944e-38, %v5189_v14  ;;  %vm5188_vm1 = vcmp.eq.f32.partialorder %v5187_v7, 8.507059e+37 }
 0x537   :  { %v5051_v53 = vpop.f32.mrf.mxu1  ;;  %v7665_v33 = vmul.f32 -1.442695, %v4998_v62 }
 0x539   :  { %v8288_v0 = vpop.eup %8287  ;;  %8289 = vpow2.f32 %v7665_v33 }
 0x53a   :  { %v5179_v6 = vmul.f32 %v8288_v0, %v5129_v35  ;;  %vm5184_vm12 = vweird.f32 %v8288_v0 }
 0x53b   :  { %v5103_v17 = vpop.f32.mrf.mxu0  ;;  %vm5185_vm15 = vmor %vm5183_vm14, %vm5184_vm12  ;;  %vm5245_vm14 = vcmask 125952  }
 0x53c   :  { %v4999_v9 = vpop.f32.mrf.mxu2  ;;  %v5180_v55 = vsub.f32 1.0, %v5179_v6 }
 0x53e   :  { %v5181_v15 = vmul.f32 %v8288_v0, %v5180_v55 }
 0x53f   :  { %v8290_v29 = vpop.eup %8289 }
 0x540   :  { %v5182_v18 = vadd.f32 %v8288_v0, %v5181_v15  ;;  %v5130_v26 = vadd.f32 1.0, %v8290_v29 }
 0x542   :  { %v5186_v8 = vsel %vm5185_vm15, %v8288_v0, %v5182_v18  ;;  %8291 = vrcp.f32 %v5130_v26  ;;  %vm5198_vm3 = vweird.f32 %v5130_v26  ;;  %v5204_v54 = vand.u32 2147483648, %v5130_v26 }
 0x543   :  { %v5062_v22 = vpop.f32.mrf.mxu1  ;;  %v5191_v24 = vsel %vm5188_vm1, %v5190_v21, %v5186_v8  ;;  %v5202_v61 = vand.u32 2147483647, %v5130_v26 }
 0x544   :  { %v5239_v31 = vpack.c.bf16 %v5191_v24, %v5176_v23 }
 0x545   :  { %vm5203_vm8 = vcmp.eq.f32.partialorder %v5202_v61, 8.507059e+37 }
 0x546   :  { %5243 = vst [vmem:[%s12191_s14 + $0x8] sm:$0xff] %v5239_v31 }
 0x547   :  { %v5010_v25 = vpop.f32.mrf.mxu2 }
 0x548   :  { %v5011_v32 = vadd.f32 %v5010_v25, %v3829_v11  ;;  %v8292_v30 = vpop.eup %8291 }
 0x549   :  { %v5194_v46 = vmul.f32 %v8292_v30, %v5130_v26  ;;  %vm5199_vm2 = vweird.f32 %v8292_v30 }
 0x54a   :  { %v5024_v27 = vadd.f32 %v12149_v16, %v5011_v32  ;;  %v5063_v16 = vadd.f32 %v5062_v22, %v3830_v34  ;;  %vm5200_vm5 = vmor %vm5198_vm3, %vm5199_vm2 }
 0x54b   :  { %v5064_v38 = vpop.f32.mrf.mxu1  ;;  %v5195_v48 = vsub.f32 1.0, %v5194_v46 }
 0x54c   :  { %v5037_v37 = vadd.f32 %v5036_v36, %v5024_v27 }
 0x54d   :  { %v5196_v5 = vmul.f32 %v8292_v30, %v5195_v48 }
 0x54e   :  { %v5050_v51 = vadd.f32 %v5049_v63, %v5037_v37  ;;  %v5205_v63 = vor.u32 1.1754944e-38, %v5204_v54 }
 0x54f   :  { %v5012_v40 = vpop.f32.mrf.mxu2  ;;  %v5197_v52 = vadd.f32 %v8292_v30, %v5196_v5 }
 0x550   :  { %v7666_v28 = vmul.f32 -1.442695, %v5050_v51 }
 0x551   :  { %v5201_v57 = vsel %vm5200_vm5, %v8292_v30, %v5197_v52 }
 0x552   :  { %8293 = vpow2.f32 %v7666_v28  ;;  %v5206_v44 = vsel %vm5203_vm8, %v5205_v63, %v5201_v57 }
 0x558   :  { %v8294_v43 = vpop.eup %8293 }
 0x559   :  { %v5131_v47 = vadd.f32 1.0, %v8294_v43 }
 0x55b   :  { %8295 = vrcp.f32 %v5131_v47  ;;  %v5219_v56 = vand.u32 2147483648, %v5131_v47  ;;  %v5217_v41 = vand.u32 2147483647, %v5131_v47  ;;  %vm5213_vm6 = vweird.f32 %v5131_v47 }
 0x55d   :  { %v5220_v1 = vor.u32 1.1754944e-38, %v5219_v56  ;;  %vm5218_vm9 = vcmp.eq.f32.partialorder %v5217_v41, 8.507059e+37 }
 0x561   :  { %v8296_v49 = vpop.eup %8295 }
 0x562   :  { %v5209_v50 = vmul.f32 %v8296_v49, %v5131_v47  ;;  %vm5214_vm4 = vweird.f32 %v8296_v49 }
 0x563   :  { %vm5215_vm7 = vmor %vm5213_vm6, %vm5214_vm4 }
 0x564   :  { %v5210_v36 = vsub.f32 1.0, %v5209_v50 }
 0x566   :  { %v5211_v45 = vmul.f32 %v8296_v49, %v5210_v36 }
 0x567   :  { %v5075_v58 = vpop.f32.mrf.mxu2 }
 0x568   :  { %v5076_v39 = vadd.f32 %v5075_v58, %v5063_v16  ;;  %v5212_v35 = vadd.f32 %v8296_v49, %v5211_v45 }
 0x56a   :  { %v5089_v42 = vadd.f32 %v12157_v59, %v5076_v39  ;;  %v5216_v3 = vsel %vm5215_vm7, %v8296_v49, %v5212_v35 }
 0x56b   :  { %v5221_v62 = vsel %vm5218_vm9, %v5220_v1, %v5216_v3 }
 0x56c   :  { %v5102_v2 = vadd.f32 %v12159_v60, %v5089_v42  ;;  %v5240_v0 = vpack.c.bf16 %v5221_v62, %v5206_v44 }
 0x56e   :  { %v7667_v4 = vmul.f32 -1.442695, %v5102_v2  ;;  %5244 = vst [vmem:[%s12191_s14 + $0x10] sm:$0xff] %v5240_v0 }
 0x56f   :  { %v5077_v53 = vpop.f32.mrf.mxu2 }
 0x570   :  { %8297 = vpow2.f32 %v7667_v4 }
 0x576   :  { %v8298_v59 = vpop.eup %8297 }
 0x577   :  { %v5132_v6 = vadd.f32 1.0, %v8298_v59 }
 0x579   :  { %8299 = vrcp.f32 %v5132_v6  ;;  %v5234_v60 = vand.u32 2147483648, %v5132_v6  ;;  %v5232_v55 = vand.u32 2147483647, %v5132_v6  ;;  %vm5228_vm11 = vweird.f32 %v5132_v6 }
 0x57b   :  { %v5235_v13 = vor.u32 1.1754944e-38, %v5234_v60  ;;  %vm5233_vm13 = vcmp.eq.f32.partialorder %v5232_v55, 8.507059e+37 }
 0x57f   :  { %v8300_v33 = vpop.eup %8299 }
 0x580   :  { %v5224_v17 = vmul.f32 %v8300_v33, %v5132_v6  ;;  %vm5229_vm10 = vweird.f32 %v8300_v33 }
 0x581   :  { %vm5230_vm12 = vmor %vm5228_vm11, %vm5229_vm10 }
 0x582   :  { %v5225_v9 = vsub.f32 1.0, %v5224_v17 }
 0x584   :  { %v5226_v10 = vmul.f32 %v8300_v33, %v5225_v9 }
 0x586   :  { %v5227_v12 = vadd.f32 %v8300_v33, %v5226_v10 }
 0x588   :  { %v5231_v14 = vsel %vm5230_vm12, %v8300_v33, %v5227_v12 }
 0x589   :  { %v5236_v15 = vsel %vm5233_vm13, %v5235_v13, %v5231_v14 }
 0x58a   :  { %v5241_v7 = vpack.c.bf16 %v5236_v15, %v5236_v15 }
 0x58c   :  { %5246 = vst.msk [vmem:[%s12191_s14 + $0x18] sm:$0xf] %vm5245_vm14, %v5241_v7 }

</bundles_post_ra>
